<compile_context>
chip_gen: v5e
topology: v5e:2x2
jax: 0.10.0
libtpu: 0.0.40
codegen_flags: <defaults>
</compile_context>

<pallas_src>
import functools

import jax
import jax.numpy as jnp
from jax.experimental import pallas as pl
from jax.experimental.pallas import tpu as pltpu


_SELU_SCALE = 1.0507009873554805
_SELU_ALPHA = 1.6732632423543772


def _selu(x):
    # Exactly the SELU formula of the PyTorch module in the spec.
    t1 = _SELU_SCALE * jnp.maximum(x, 0.0)
    t2 = (_SELU_SCALE * _SELU_ALPHA) * (-jnp.maximum(1.0 - jnp.exp(x), 0.0))
    return t1 + t2


# ------------------------------ Pallas kernel ------------------------------ #
def _conv_mm_kernel(w_ref, p_ref, b_ref, o_ref, *, apply_selu):
    # w_ref: (CO, Kp) bf16 resident weights, p_ref: (Kp, TM) bf16 patch tile,
    # b_ref: (CO, 1) f32 bias, o_ref: (CO, TM) f32 lane-dense output tile.
    acc = jnp.dot(w_ref[...], p_ref[...], preferred_element_type=jnp.float32)
    acc = acc + b_ref[...]
    if apply_selu:
        acc = _selu(acc)
    o_ref[...] = acc.astype(o_ref.dtype)


def _conv_matmul_bias(w_flat, patches, bias, *, apply_selu, tm):
    CO, Kp = w_flat.shape
    _, Mpad = patches.shape
    kernel = functools.partial(_conv_mm_kernel, apply_selu=apply_selu)
    return pl.pallas_call(
        kernel,
        out_shape=jax.ShapeDtypeStruct((CO, Mpad), jnp.float32),
        grid_spec=pltpu.PrefetchScalarGridSpec(
            num_scalar_prefetch=0,
            grid=(Mpad // tm,),
            in_specs=[
                pl.BlockSpec((CO, Kp), lambda i: (0, 0)),   # resident weights
                pl.BlockSpec((Kp, tm), lambda i: (0, i)),   # lane-dense patch tile
                pl.BlockSpec((CO, 1), lambda i: (0, 0)),    # resident bias
            ],
            out_specs=pl.BlockSpec((CO, tm), lambda i: (0, i)),
        ),
        compiler_params=pltpu.CompilerParams(
            dimension_semantics=("parallel",),
        ),
    )(w_flat, patches, bias)


# ------------------------------ helpers ------------------------------------ #
def _round_up(x, m):
    return (x + m - 1) // m * m


def _pick_tile_m(M, max_tile=2048):
    # Big lane-dense tiles to amortize ~0.35us/grid-step overhead, but keep at
    # least two tiles when possible so v7x's two TensorCores both get work.
    lanes = _round_up(M, 128) // 128
    if lanes <= 1:
        return 128
    n_tiles = max(2, -(-(lanes * 128) // max_tile))
    return -(-lanes // n_tiles) * 128


# ------------------------------ conv3d layer -------------------------------- #
def conv3d(x, weight, bias, *, stride=(1, 1, 1), apply_selu=False):
    """Conv3d(kernel=3, padding=1) + optional fused SELU.

    x:      [C_in, N, D, H, W]   (channel-major activation layout)
    weight: [C_out, C_in, 3, 3, 3]  (PyTorch layout)
    bias:   [C_out]
    returns [C_out, N, Do, Ho, Wo]
    """
    C, N, D, H, W = x.shape
    CO = weight.shape[0]
    sD, sH, sW = stride
    Do = (D + 2 - 3) // sD + 1
    Ho = (H + 2 - 3) // sH + 1
    Wo = (W + 2 - 3) // sW + 1
    M = N * Do * Ho * Wo
    K = C * 27

    # im2col directly in [K, M] layout: pad, 27 strided taps stacked on a new
    # leading axis, contiguity-preserving reshape (no 6-D transpose needed).
    xp = jnp.pad(x, ((0, 0), (0, 0), (1, 1), (1, 1), (1, 1)))
    taps = []
    for kd in range(3):
        for kh in range(3):
            for kw in range(3):
                taps.append(
                    xp[:, :,
                       kd:kd + sD * (Do - 1) + 1:sD,
                       kh:kh + sH * (Ho - 1) + 1:sH,
                       kw:kw + sW * (Wo - 1) + 1:sW])
    patches = jnp.stack(taps, axis=0).reshape(K, M)

    # Zero-pad K up to a full 128-lane contraction; pad M up to a tile multiple
    # (replaces the old hard "M % tm == 0" assert).
    Kp = max(128, _round_up(K, 128))
    tm = _pick_tile_m(M)
    Mpad = _round_up(M, tm)
    patches = jnp.pad(patches.astype(jnp.bfloat16), ((0, Kp - K), (0, Mpad - M)))

    # Weight flattened as (kd, kh, kw, ci) to match the tap-major K ordering.
    w_flat = weight.transpose(0, 2, 3, 4, 1).reshape(CO, K)
    w_flat = jnp.pad(w_flat.astype(jnp.bfloat16), ((0, 0), (0, Kp - K)))
    b2 = bias.reshape(CO, 1).astype(jnp.float32)

    out = _conv_matmul_bias(w_flat, patches, b2, apply_selu=apply_selu, tm=tm)
    return out[:, :M].reshape(CO, N, Do, Ho, Wo)


def maxpool_depth(x, p):
    # nn.MaxPool3d(kernel_size=[p, 1, 1]) in [C, N, D, H, W] layout (floor mode).
    C, N, D, H, W = x.shape
    Do = D // p
    return jnp.max(x[:, :, :Do * p].reshape(C, N, Do, p, H, W), axis=3)


# ------------------------------ IPN forward --------------------------------- #
def ipn_forward(x, params):
    """IPN forward. x: [N, C_in, D, H, W] (NCDHW). Returns (logits, feature)."""
    h = jnp.transpose(x, (1, 0, 2, 3, 4)).astype(jnp.float32)  # -> [C, N, D, H, W]
    # InConv3d: Conv3d + SELU
    h = conv3d(h, params["in_w"], params["in_b"], apply_selu=True)
    # PLM blocks: maxpool over depth, then the SAME Conv3d+SELU applied twice
    # (weight sharing exactly as in the PyTorch module).
    for name, p in (("plm1", 5), ("plm2", 4), ("plm3", 2), ("plm4", 2)):
        h = maxpool_depth(h, p)
        w, b = params[name + "_w"], params[name + "_b"]
        h = conv3d(h, w, b, apply_selu=True)
        h = conv3d(h, w, b, apply_selu=True)
    feature = h
    # OutConv3d: Conv3d(channels -> 64, stride (1,2,2)), no activation.
    logits = conv3d(feature, params["out_w"], params["out_b"],
                    stride=(1, 2, 2), apply_selu=False)
    # back to NCDHW
    logits = jnp.transpose(logits, (1, 0, 2, 3, 4))
    feature = jnp.transpose(feature, (1, 0, 2, 3, 4))
    return logits, feature


# ------------------------------ pure-JAX reference -------------------------- #
def _conv_ref(x, w, b, stride):
    # Same numerics as the kernel path: bf16 operands, f32 accumulation, f32 bias.
    y = jax.lax.conv_general_dilated(
        x.astype(jnp.bfloat16), w.astype(jnp.bfloat16),
        window_strides=stride, padding=((1, 1), (1, 1), (1, 1)),
        dimension_numbers=("NCDHW", "OIDHW", "NCDHW"),
        preferred_element_type=jnp.float32)
    return y + b.reshape(1, -1, 1, 1, 1).astype(jnp.float32)


def _maxpool_ref(x, p):
    N, C, D, H, W = x.shape
    Do = D // p
    return jnp.max(x[:, :, :Do * p].reshape(N, C, Do, p, H, W), axis=3)


def ipn_reference(x, params):
    h = x.astype(jnp.float32)
    h = _selu(_conv_ref(h, params["in_w"], params["in_b"], (1, 1, 1)))
    for name, p in (("plm1", 5), ("plm2", 4), ("plm3", 2), ("plm4", 2)):
        h = _maxpool_ref(h, p)
        w, b = params[name + "_w"], params[name + "_b"]
        h = _selu(_conv_ref(h, w, b, (1, 1, 1)))
        h = _selu(_conv_ref(h, w, b, (1, 1, 1)))
    feature = h
    logits = _conv_ref(feature, params["out_w"], params["out_b"], (1, 2, 2))
    return logits, feature


# ---------------------------------- main ------------------------------------ #
if __name__ == "__main__":
    key = jax.random.PRNGKey(0)
    ks = jax.random.split(key, 13)

    # Small shapes implied by the forward: the PLM pools shrink depth by
    # 5*4*2*2 = 80, so D = 80 is the minimal depth; batch=2, in_channels=2,
    # channels=4, n_class=64 (OutConv3d default), H = W = 16.
    N, CIN, C, D, H, W = 2, 2, 4, 80, 16, 16
    NCLS = 64

    def _kaiming(k, co, ci):
        return jax.random.normal(k, (co, ci, 3, 3, 3), jnp.float32) / jnp.sqrt(ci * 27.0)

    x = jax.random.normal(ks[0], (N, CIN, D, H, W), dtype=jnp.float32)
    params = {
        "in_w":   _kaiming(ks[1], C, CIN),
        "in_b":   0.01 * jax.random.normal(ks[2], (C,), jnp.float32),
        "plm1_w": _kaiming(ks[3], C, C),
        "plm1_b": 0.01 * jax.random.normal(ks[4], (C,), jnp.float32),
        "plm2_w": _kaiming(ks[5], C, C),
        "plm2_b": 0.01 * jax.random.normal(ks[6], (C,), jnp.float32),
        "plm3_w": _kaiming(ks[7], C, C),
        "plm3_b": 0.01 * jax.random.normal(ks[8], (C,), jnp.float32),
        "plm4_w": _kaiming(ks[9], C, C),
        "plm4_b": 0.01 * jax.random.normal(ks[10], (C,), jnp.float32),
        "out_w":  _kaiming(ks[11], NCLS, C),
        "out_b":  0.01 * jax.random.normal(ks[12], (NCLS,), jnp.float32),
    }

    logits, feature = jax.jit(ipn_forward)(x, params)
    logits, feature = jax.block_until_ready((logits, feature))

    assert logits.shape == (N, NCLS, 1, H // 2, W // 2), logits.shape
    assert feature.shape == (N, C, 1, H, W), feature.shape

    # Reference check (same bf16-operand / f32-accumulate numerics; tolerance
    # covers summation-order differences accumulated over the 10 conv layers).
    ref_logits, ref_feature = jax.jit(ipn_reference)(x, params)
    ref_logits, ref_feature = jax.block_until_ready((ref_logits, ref_feature))

    err_l = float(jnp.max(jnp.abs(logits - ref_logits)))
    err_f = float(jnp.max(jnp.abs(feature - ref_feature)))
    assert jnp.allclose(logits, ref_logits, atol=3e-2, rtol=3e-2), err_l
    assert jnp.allclose(feature, ref_feature, atol=3e-2, rtol=3e-2), err_f

    print("KERNEL_OK")
</pallas_src>

<mosaic_0001>
module attributes {stable_mosaic.version = 11 : i64} {
  func.func @_conv_mm_kernel(%arg0: i32, %arg1: memref<4x128xbf16, #tpu.memory_space<vmem>>, %arg2: memref<128x2048xbf16, #tpu.memory_space<vmem>>, %arg3: memref<4x1xf32, #tpu.memory_space<vmem>>, %arg4: memref<4x2048xf32, #tpu.memory_space<vmem>>) attributes {dimension_semantics = [#tpu.dimension_semantics<parallel>], iteration_bounds = array<i64: 20>, scalar_prefetch = 0 : i64, scratch_operands = 0 : i64, tpu.core_type = #tpu.core_type<tc>, window_params = [{pipeline_mode = #tpu.pipeline_mode<synchronous>, transform_indices = @transform_0, window_bounds = array<i64: 4, 128>}, {transform_indices = @transform_1, window_bounds = array<i64: 128, 2048>}, {pipeline_mode = #tpu.pipeline_mode<synchronous>, transform_indices = @transform_2, window_bounds = array<i64: 4, 1>}, {transform_indices = @transform_3, window_bounds = array<i64: 4, 2048>}]} {
    %c0 = arith.constant 0 : index
    %c0_0 = arith.constant 0 : index
    %0 = vector.load %arg1[%c0, %c0_0] : memref<4x128xbf16, #tpu.memory_space<vmem>>, vector<4x128xbf16>
    %c0_1 = arith.constant 0 : index
    %c0_2 = arith.constant 0 : index
    %1 = vector.load %arg2[%c0_1, %c0_2] : memref<128x2048xbf16, #tpu.memory_space<vmem>>, vector<128x2048xbf16>
    %cst = arith.constant dense<0.000000e+00> : vector<4x2048xf32>
    %2 = tpu.matmul %0, %1, %cst {dimension_numbers = #tpu.dot_dimension_numbers<[1], [0], [0], [1], [0, 0, 1, 1], [], []>} : vector<4x128xbf16>, vector<128x2048xbf16>, vector<4x2048xf32> -> vector<4x2048xf32>
    %c0_3 = arith.constant 0 : index
    %c0_4 = arith.constant 0 : index
    %3 = vector.load %arg3[%c0_3, %c0_4] : memref<4x1xf32, #tpu.memory_space<vmem>>, vector<4x1xf32>
    %4 = vector.broadcast %3 : vector<4x1xf32> to vector<4x2048xf32>
    %5 = arith.addf %2, %4 : vector<4x2048xf32>
    %cst_5 = arith.constant 0.000000e+00 : f32
    %6 = vector.broadcast %cst_5 : f32 to vector<4x2048xf32>
    %7 = arith.maximumf %5, %6 : vector<4x2048xf32>
    %cst_6 = arith.constant 1.05070102 : f32
    %8 = vector.broadcast %cst_6 : f32 to vector<4x2048xf32>
    %9 = arith.mulf %8, %7 : vector<4x2048xf32>
    %10 = math.exp %5 : vector<4x2048xf32>
    %cst_7 = arith.constant 1.000000e+00 : f32
    %11 = vector.broadcast %cst_7 : f32 to vector<4x2048xf32>
    %12 = arith.subf %11, %10 : vector<4x2048xf32>
    %cst_8 = arith.constant 0.000000e+00 : f32
    %13 = vector.broadcast %cst_8 : f32 to vector<4x2048xf32>
    %14 = arith.maximumf %12, %13 : vector<4x2048xf32>
    %cst_9 = arith.constant 0.000000e+00 : f32
    %15 = vector.broadcast %cst_9 : f32 to vector<4x2048xf32>
    %16 = arith.subf %15, %14 : vector<4x2048xf32>
    %cst_10 = arith.constant 1.75809932 : f32
    %17 = vector.broadcast %cst_10 : f32 to vector<4x2048xf32>
    %18 = arith.mulf %17, %16 : vector<4x2048xf32>
    %19 = arith.addf %9, %18 : vector<4x2048xf32>
    %c0_11 = arith.constant 0 : index
    %c0_12 = arith.constant 0 : index
    %20 = vector.load %arg4[%c0_11, %c0_12] : memref<4x2048xf32, #tpu.memory_space<vmem>>, vector<4x2048xf32>
    tpu.vector_store %arg4[%c0_11, %c0_12], %19 {strides = array<i32>} : memref<4x2048xf32, #tpu.memory_space<vmem>>, vector<4x2048xf32>,
    return
  }
  func.func @transform_0(%arg0: i32) -> (i32, i32) {
    %c0_i32 = arith.constant 0 : i32
    %c0_i32_0 = arith.constant 0 : i32
    %c0_i32_1 = arith.constant 0 : i32
    return %c0_i32, %c0_i32_0 : i32, i32
  }
  func.func @transform_1(%arg0: i32) -> (i32, i32) {
    %c0_i32 = arith.constant 0 : i32
    %c0_i32_0 = arith.constant 0 : i32
    return %c0_i32, %arg0 : i32, i32
  }
  func.func @transform_2(%arg0: i32) -> (i32, i32) {
    %c0_i32 = arith.constant 0 : i32
    %c0_i32_0 = arith.constant 0 : i32
    %c0_i32_1 = arith.constant 0 : i32
    return %c0_i32, %c0_i32_0 : i32, i32
  }
  func.func @transform_3(%arg0: i32) -> (i32, i32) {
    %c0_i32 = arith.constant 0 : i32
    %c0_i32_0 = arith.constant 0 : i32
    return %c0_i32, %arg0 : i32, i32
  }
}

module attributes {stable_mosaic.version = 11 : i64} {
  func.func @_conv_mm_kernel(%arg0: i32, %arg1: memref<4x128xbf16, #tpu.memory_space<vmem>>, %arg2: memref<128x2048xbf16, #tpu.memory_space<vmem>>, %arg3: memref<4x1xf32, #tpu.memory_space<vmem>>, %arg4: memref<4x2048xf32, #tpu.memory_space<vmem>>) attributes {dimension_semantics = [#tpu.dimension_semantics<parallel>], iteration_bounds = array<i64: 4>, scalar_prefetch = 0 : i64, scratch_operands = 0 : i64, tpu.core_type = #tpu.core_type<tc>, window_params = [{pipeline_mode = #tpu.pipeline_mode<synchronous>, transform_indices = @transform_0, window_bounds = array<i64: 4, 128>}, {transform_indices = @transform_1, window_bounds = array<i64: 128, 2048>}, {pipeline_mode = #tpu.pipeline_mode<synchronous>, transform_indices = @transform_2, window_bounds = array<i64: 4, 1>}, {transform_indices = @transform_3, window_bounds = array<i64: 4, 2048>}]} {
    %c0 = arith.constant 0 : index
    %c0_0 = arith.constant 0 : index
    %0 = vector.load %arg1[%c0, %c0_0] : memref<4x128xbf16, #tpu.memory_space<vmem>>, vector<4x128xbf16>
    %c0_1 = arith.constant 0 : index
    %c0_2 = arith.constant 0 : index
    %1 = vector.load %arg2[%c0_1, %c0_2] : memref<128x2048xbf16, #tpu.memory_space<vmem>>, vector<128x2048xbf16>
    %cst = arith.constant dense<0.000000e+00> : vector<4x2048xf32>
    %2 = tpu.matmul %0, %1, %cst {dimension_numbers = #tpu.dot_dimension_numbers<[1], [0], [0], [1], [0, 0, 1, 1], [], []>} : vector<4x128xbf16>, vector<128x2048xbf16>, vector<4x2048xf32> -> vector<4x2048xf32>
    %c0_3 = arith.constant 0 : index
    %c0_4 = arith.constant 0 : index
    %3 = vector.load %arg3[%c0_3, %c0_4] : memref<4x1xf32, #tpu.memory_space<vmem>>, vector<4x1xf32>
    %4 = vector.broadcast %3 : vector<4x1xf32> to vector<4x2048xf32>
    %5 = arith.addf %2, %4 : vector<4x2048xf32>
    %cst_5 = arith.constant 0.000000e+00 : f32
    %6 = vector.broadcast %cst_5 : f32 to vector<4x2048xf32>
    %7 = arith.maximumf %5, %6 : vector<4x2048xf32>
    %cst_6 = arith.constant 1.05070102 : f32
    %8 = vector.broadcast %cst_6 : f32 to vector<4x2048xf32>
    %9 = arith.mulf %8, %7 : vector<4x2048xf32>
    %10 = math.exp %5 : vector<4x2048xf32>
    %cst_7 = arith.constant 1.000000e+00 : f32
    %11 = vector.broadcast %cst_7 : f32 to vector<4x2048xf32>
    %12 = arith.subf %11, %10 : vector<4x2048xf32>
    %cst_8 = arith.constant 0.000000e+00 : f32
    %13 = vector.broadcast %cst_8 : f32 to vector<4x2048xf32>
    %14 = arith.maximumf %12, %13 : vector<4x2048xf32>
    %cst_9 = arith.constant 0.000000e+00 : f32
    %15 = vector.broadcast %cst_9 : f32 to vector<4x2048xf32>
    %16 = arith.subf %15, %14 : vector<4x2048xf32>
    %cst_10 = arith.constant 1.75809932 : f32
    %17 = vector.broadcast %cst_10 : f32 to vector<4x2048xf32>
    %18 = arith.mulf %17, %16 : vector<4x2048xf32>
    %19 = arith.addf %9, %18 : vector<4x2048xf32>
    %c0_11 = arith.constant 0 : index
    %c0_12 = arith.constant 0 : index
    %20 = vector.load %arg4[%c0_11, %c0_12] : memref<4x2048xf32, #tpu.memory_space<vmem>>, vector<4x2048xf32>
    tpu.vector_store %arg4[%c0_11, %c0_12], %19 {strides = array<i32>} : memref<4x2048xf32, #tpu.memory_space<vmem>>, vector<4x2048xf32>,
    return
  }
  func.func @transform_0(%arg0: i32) -> (i32, i32) {
    %c0_i32 = arith.constant 0 : i32
    %c0_i32_0 = arith.constant 0 : i32
    %c0_i32_1 = arith.constant 0 : i32
    return %c0_i32, %c0_i32_0 : i32, i32
  }
  func.func @transform_1(%arg0: i32) -> (i32, i32) {
    %c0_i32 = arith.constant 0 : i32
    %c0_i32_0 = arith.constant 0 : i32
    return %c0_i32, %arg0 : i32, i32
  }
  func.func @transform_2(%arg0: i32) -> (i32, i32) {
    %c0_i32 = arith.constant 0 : i32
    %c0_i32_0 = arith.constant 0 : i32
    %c0_i32_1 = arith.constant 0 : i32
    return %c0_i32, %c0_i32_0 : i32, i32
  }
  func.func @transform_3(%arg0: i32) -> (i32, i32) {
    %c0_i32 = arith.constant 0 : i32
    %c0_i32_0 = arith.constant 0 : i32
    return %c0_i32, %arg0 : i32, i32
  }
}

module attributes {stable_mosaic.version = 11 : i64} {
  func.func @_conv_mm_kernel(%arg0: i32, %arg1: memref<4x128xbf16, #tpu.memory_space<vmem>>, %arg2: memref<128x1024xbf16, #tpu.memory_space<vmem>>, %arg3: memref<4x1xf32, #tpu.memory_space<vmem>>, %arg4: memref<4x1024xf32, #tpu.memory_space<vmem>>) attributes {dimension_semantics = [#tpu.dimension_semantics<parallel>], iteration_bounds = array<i64: 2>, scalar_prefetch = 0 : i64, scratch_operands = 0 : i64, tpu.core_type = #tpu.core_type<tc>, window_params = [{pipeline_mode = #tpu.pipeline_mode<synchronous>, transform_indices = @transform_0, window_bounds = array<i64: 4, 128>}, {transform_indices = @transform_1, window_bounds = array<i64: 128, 1024>}, {pipeline_mode = #tpu.pipeline_mode<synchronous>, transform_indices = @transform_2, window_bounds = array<i64: 4, 1>}, {transform_indices = @transform_3, window_bounds = array<i64: 4, 1024>}]} {
    %c0 = arith.constant 0 : index
    %c0_0 = arith.constant 0 : index
    %0 = vector.load %arg1[%c0, %c0_0] : memref<4x128xbf16, #tpu.memory_space<vmem>>, vector<4x128xbf16>
    %c0_1 = arith.constant 0 : index
    %c0_2 = arith.constant 0 : index
    %1 = vector.load %arg2[%c0_1, %c0_2] : memref<128x1024xbf16, #tpu.memory_space<vmem>>, vector<128x1024xbf16>
    %cst = arith.constant dense<0.000000e+00> : vector<4x1024xf32>
    %2 = tpu.matmul %0, %1, %cst {dimension_numbers = #tpu.dot_dimension_numbers<[1], [0], [0], [1], [0, 0, 1, 1], [], []>} : vector<4x128xbf16>, vector<128x1024xbf16>, vector<4x1024xf32> -> vector<4x1024xf32>
    %c0_3 = arith.constant 0 : index
    %c0_4 = arith.constant 0 : index
    %3 = vector.load %arg3[%c0_3, %c0_4] : memref<4x1xf32, #tpu.memory_space<vmem>>, vector<4x1xf32>
    %4 = vector.broadcast %3 : vector<4x1xf32> to vector<4x1024xf32>
    %5 = arith.addf %2, %4 : vector<4x1024xf32>
    %cst_5 = arith.constant 0.000000e+00 : f32
    %6 = vector.broadcast %cst_5 : f32 to vector<4x1024xf32>
    %7 = arith.maximumf %5, %6 : vector<4x1024xf32>
    %cst_6 = arith.constant 1.05070102 : f32
    %8 = vector.broadcast %cst_6 : f32 to vector<4x1024xf32>
    %9 = arith.mulf %8, %7 : vector<4x1024xf32>
    %10 = math.exp %5 : vector<4x1024xf32>
    %cst_7 = arith.constant 1.000000e+00 : f32
    %11 = vector.broadcast %cst_7 : f32 to vector<4x1024xf32>
    %12 = arith.subf %11, %10 : vector<4x1024xf32>
    %cst_8 = arith.constant 0.000000e+00 : f32
    %13 = vector.broadcast %cst_8 : f32 to vector<4x1024xf32>
    %14 = arith.maximumf %12, %13 : vector<4x1024xf32>
    %cst_9 = arith.constant 0.000000e+00 : f32
    %15 = vector.broadcast %cst_9 : f32 to vector<4x1024xf32>
    %16 = arith.subf %15, %14 : vector<4x1024xf32>
    %cst_10 = arith.constant 1.75809932 : f32
    %17 = vector.broadcast %cst_10 : f32 to vector<4x1024xf32>
    %18 = arith.mulf %17, %16 : vector<4x1024xf32>
    %19 = arith.addf %9, %18 : vector<4x1024xf32>
    %c0_11 = arith.constant 0 : index
    %c0_12 = arith.constant 0 : index
    %20 = vector.load %arg4[%c0_11, %c0_12] : memref<4x1024xf32, #tpu.memory_space<vmem>>, vector<4x1024xf32>
    tpu.vector_store %arg4[%c0_11, %c0_12], %19 {strides = array<i32>} : memref<4x1024xf32, #tpu.memory_space<vmem>>, vector<4x1024xf32>,
    return
  }
  func.func @transform_0(%arg0: i32) -> (i32, i32) {
    %c0_i32 = arith.constant 0 : i32
    %c0_i32_0 = arith.constant 0 : i32
    %c0_i32_1 = arith.constant 0 : i32
    return %c0_i32, %c0_i32_0 : i32, i32
  }
  func.func @transform_1(%arg0: i32) -> (i32, i32) {
    %c0_i32 = arith.constant 0 : i32
    %c0_i32_0 = arith.constant 0 : i32
    return %c0_i32, %arg0 : i32, i32
  }
  func.func @transform_2(%arg0: i32) -> (i32, i32) {
    %c0_i32 = arith.constant 0 : i32
    %c0_i32_0 = arith.constant 0 : i32
    %c0_i32_1 = arith.constant 0 : i32
    return %c0_i32, %c0_i32_0 : i32, i32
  }
  func.func @transform_3(%arg0: i32) -> (i32, i32) {
    %c0_i32 = arith.constant 0 : i32
    %c0_i32_0 = arith.constant 0 : i32
    return %c0_i32, %arg0 : i32, i32
  }
}

module attributes {stable_mosaic.version = 11 : i64} {
  func.func @_conv_mm_kernel(%arg0: i32, %arg1: memref<4x128xbf16, #tpu.memory_space<vmem>>, %arg2: memref<128x512xbf16, #tpu.memory_space<vmem>>, %arg3: memref<4x1xf32, #tpu.memory_space<vmem>>, %arg4: memref<4x512xf32, #tpu.memory_space<vmem>>) attributes {dimension_semantics = [#tpu.dimension_semantics<parallel>], iteration_bounds = array<i64: 2>, scalar_prefetch = 0 : i64, scratch_operands = 0 : i64, tpu.core_type = #tpu.core_type<tc>, window_params = [{pipeline_mode = #tpu.pipeline_mode<synchronous>, transform_indices = @transform_0, window_bounds = array<i64: 4, 128>}, {transform_indices = @transform_1, window_bounds = array<i64: 128, 512>}, {pipeline_mode = #tpu.pipeline_mode<synchronous>, transform_indices = @transform_2, window_bounds = array<i64: 4, 1>}, {transform_indices = @transform_3, window_bounds = array<i64: 4, 512>}]} {
    %c0 = arith.constant 0 : index
    %c0_0 = arith.constant 0 : index
    %0 = vector.load %arg1[%c0, %c0_0] : memref<4x128xbf16, #tpu.memory_space<vmem>>, vector<4x128xbf16>
    %c0_1 = arith.constant 0 : index
    %c0_2 = arith.constant 0 : index
    %1 = vector.load %arg2[%c0_1, %c0_2] : memref<128x512xbf16, #tpu.memory_space<vmem>>, vector<128x512xbf16>
    %cst = arith.constant dense<0.000000e+00> : vector<4x512xf32>
    %2 = tpu.matmul %0, %1, %cst {dimension_numbers = #tpu.dot_dimension_numbers<[1], [0], [0], [1], [0, 0, 1, 1], [], []>} : vector<4x128xbf16>, vector<128x512xbf16>, vector<4x512xf32> -> vector<4x512xf32>
    %c0_3 = arith.constant 0 : index
    %c0_4 = arith.constant 0 : index
    %3 = vector.load %arg3[%c0_3, %c0_4] : memref<4x1xf32, #tpu.memory_space<vmem>>, vector<4x1xf32>
    %4 = vector.broadcast %3 : vector<4x1xf32> to vector<4x512xf32>
    %5 = arith.addf %2, %4 : vector<4x512xf32>
    %cst_5 = arith.constant 0.000000e+00 : f32
    %6 = vector.broadcast %cst_5 : f32 to vector<4x512xf32>
    %7 = arith.maximumf %5, %6 : vector<4x512xf32>
    %cst_6 = arith.constant 1.05070102 : f32
    %8 = vector.broadcast %cst_6 : f32 to vector<4x512xf32>
    %9 = arith.mulf %8, %7 : vector<4x512xf32>
    %10 = math.exp %5 : vector<4x512xf32>
    %cst_7 = arith.constant 1.000000e+00 : f32
    %11 = vector.broadcast %cst_7 : f32 to vector<4x512xf32>
    %12 = arith.subf %11, %10 : vector<4x512xf32>
    %cst_8 = arith.constant 0.000000e+00 : f32
    %13 = vector.broadcast %cst_8 : f32 to vector<4x512xf32>
    %14 = arith.maximumf %12, %13 : vector<4x512xf32>
    %cst_9 = arith.constant 0.000000e+00 : f32
    %15 = vector.broadcast %cst_9 : f32 to vector<4x512xf32>
    %16 = arith.subf %15, %14 : vector<4x512xf32>
    %cst_10 = arith.constant 1.75809932 : f32
    %17 = vector.broadcast %cst_10 : f32 to vector<4x512xf32>
    %18 = arith.mulf %17, %16 : vector<4x512xf32>
    %19 = arith.addf %9, %18 : vector<4x512xf32>
    %c0_11 = arith.constant 0 : index
    %c0_12 = arith.constant 0 : index
    %20 = vector.load %arg4[%c0_11, %c0_12] : memref<4x512xf32, #tpu.memory_space<vmem>>, vector<4x512xf32>
    tpu.vector_store %arg4[%c0_11, %c0_12], %19 {strides = array<i32>} : memref<4x512xf32, #tpu.memory_space<vmem>>, vector<4x512xf32>,
    return
  }
  func.func @transform_0(%arg0: i32) -> (i32, i32) {
    %c0_i32 = arith.constant 0 : i32
    %c0_i32_0 = arith.constant 0 : i32
    %c0_i32_1 = arith.constant 0 : i32
    return %c0_i32, %c0_i32_0 : i32, i32
  }
  func.func @transform_1(%arg0: i32) -> (i32, i32) {
    %c0_i32 = arith.constant 0 : i32
    %c0_i32_0 = arith.constant 0 : i32
    return %c0_i32, %arg0 : i32, i32
  }
  func.func @transform_2(%arg0: i32) -> (i32, i32) {
    %c0_i32 = arith.constant 0 : i32
    %c0_i32_0 = arith.constant 0 : i32
    %c0_i32_1 = arith.constant 0 : i32
    return %c0_i32, %c0_i32_0 : i32, i32
  }
  func.func @transform_3(%arg0: i32) -> (i32, i32) {
    %c0_i32 = arith.constant 0 : i32
    %c0_i32_0 = arith.constant 0 : i32
    return %c0_i32, %arg0 : i32, i32
  }
}

module attributes {stable_mosaic.version = 11 : i64} {
  func.func @_conv_mm_kernel(%arg0: i32, %arg1: memref<4x128xbf16, #tpu.memory_space<vmem>>, %arg2: memref<128x256xbf16, #tpu.memory_space<vmem>>, %arg3: memref<4x1xf32, #tpu.memory_space<vmem>>, %arg4: memref<4x256xf32, #tpu.memory_space<vmem>>) attributes {dimension_semantics = [#tpu.dimension_semantics<parallel>], iteration_bounds = array<i64: 2>, scalar_prefetch = 0 : i64, scratch_operands = 0 : i64, tpu.core_type = #tpu.core_type<tc>, window_params = [{pipeline_mode = #tpu.pipeline_mode<synchronous>, transform_indices = @transform_0, window_bounds = array<i64: 4, 128>}, {transform_indices = @transform_1, window_bounds = array<i64: 128, 256>}, {pipeline_mode = #tpu.pipeline_mode<synchronous>, transform_indices = @transform_2, window_bounds = array<i64: 4, 1>}, {transform_indices = @transform_3, window_bounds = array<i64: 4, 256>}]} {
    %c0 = arith.constant 0 : index
    %c0_0 = arith.constant 0 : index
    %0 = vector.load %arg1[%c0, %c0_0] : memref<4x128xbf16, #tpu.memory_space<vmem>>, vector<4x128xbf16>
    %c0_1 = arith.constant 0 : index
    %c0_2 = arith.constant 0 : index
    %1 = vector.load %arg2[%c0_1, %c0_2] : memref<128x256xbf16, #tpu.memory_space<vmem>>, vector<128x256xbf16>
    %cst = arith.constant dense<0.000000e+00> : vector<4x256xf32>
    %2 = tpu.matmul %0, %1, %cst {dimension_numbers = #tpu.dot_dimension_numbers<[1], [0], [0], [1], [0, 0, 1, 1], [], []>} : vector<4x128xbf16>, vector<128x256xbf16>, vector<4x256xf32> -> vector<4x256xf32>
    %c0_3 = arith.constant 0 : index
    %c0_4 = arith.constant 0 : index
    %3 = vector.load %arg3[%c0_3, %c0_4] : memref<4x1xf32, #tpu.memory_space<vmem>>, vector<4x1xf32>
    %4 = vector.broadcast %3 : vector<4x1xf32> to vector<4x256xf32>
    %5 = arith.addf %2, %4 : vector<4x256xf32>
    %cst_5 = arith.constant 0.000000e+00 : f32
    %6 = vector.broadcast %cst_5 : f32 to vector<4x256xf32>
    %7 = arith.maximumf %5, %6 : vector<4x256xf32>
    %cst_6 = arith.constant 1.05070102 : f32
    %8 = vector.broadcast %cst_6 : f32 to vector<4x256xf32>
    %9 = arith.mulf %8, %7 : vector<4x256xf32>
    %10 = math.exp %5 : vector<4x256xf32>
    %cst_7 = arith.constant 1.000000e+00 : f32
    %11 = vector.broadcast %cst_7 : f32 to vector<4x256xf32>
    %12 = arith.subf %11, %10 : vector<4x256xf32>
    %cst_8 = arith.constant 0.000000e+00 : f32
    %13 = vector.broadcast %cst_8 : f32 to vector<4x256xf32>
    %14 = arith.maximumf %12, %13 : vector<4x256xf32>
    %cst_9 = arith.constant 0.000000e+00 : f32
    %15 = vector.broadcast %cst_9 : f32 to vector<4x256xf32>
    %16 = arith.subf %15, %14 : vector<4x256xf32>
    %cst_10 = arith.constant 1.75809932 : f32
    %17 = vector.broadcast %cst_10 : f32 to vector<4x256xf32>
    %18 = arith.mulf %17, %16 : vector<4x256xf32>
    %19 = arith.addf %9, %18 : vector<4x256xf32>
    %c0_11 = arith.constant 0 : index
    %c0_12 = arith.constant 0 : index
    %20 = vector.load %arg4[%c0_11, %c0_12] : memref<4x256xf32, #tpu.memory_space<vmem>>, vector<4x256xf32>
    tpu.vector_store %arg4[%c0_11, %c0_12], %19 {strides = array<i32>} : memref<4x256xf32, #tpu.memory_space<vmem>>, vector<4x256xf32>,
    return
  }
  func.func @transform_0(%arg0: i32) -> (i32, i32) {
    %c0_i32 = arith.constant 0 : i32
    %c0_i32_0 = arith.constant 0 : i32
    %c0_i32_1 = arith.constant 0 : i32
    return %c0_i32, %c0_i32_0 : i32, i32
  }
  func.func @transform_1(%arg0: i32) -> (i32, i32) {
    %c0_i32 = arith.constant 0 : i32
    %c0_i32_0 = arith.constant 0 : i32
    return %c0_i32, %arg0 : i32, i32
  }
  func.func @transform_2(%arg0: i32) -> (i32, i32) {
    %c0_i32 = arith.constant 0 : i32
    %c0_i32_0 = arith.constant 0 : i32
    %c0_i32_1 = arith.constant 0 : i32
    return %c0_i32, %c0_i32_0 : i32, i32
  }
  func.func @transform_3(%arg0: i32) -> (i32, i32) {
    %c0_i32 = arith.constant 0 : i32
    %c0_i32_0 = arith.constant 0 : i32
    return %c0_i32, %arg0 : i32, i32
  }
}

module attributes {stable_mosaic.version = 11 : i64} {
  func.func @_conv_mm_kernel(%arg0: i32, %arg1: memref<64x128xbf16, #tpu.memory_space<vmem>>, %arg2: memref<128x128xbf16, #tpu.memory_space<vmem>>, %arg3: memref<64x1xf32, #tpu.memory_space<vmem>>, %arg4: memref<64x128xf32, #tpu.memory_space<vmem>>) attributes {dimension_semantics = [#tpu.dimension_semantics<parallel>], iteration_bounds = array<i64: 1>, scalar_prefetch = 0 : i64, scratch_operands = 0 : i64, tpu.core_type = #tpu.core_type<tc>, window_params = [{pipeline_mode = #tpu.pipeline_mode<synchronous>, transform_indices = @transform_0, window_bounds = array<i64: 64, 128>}, {transform_indices = @transform_1, window_bounds = array<i64: 128, 128>}, {pipeline_mode = #tpu.pipeline_mode<synchronous>, transform_indices = @transform_2, window_bounds = array<i64: 64, 1>}, {transform_indices = @transform_3, window_bounds = array<i64: 64, 128>}]} {
    %c0 = arith.constant 0 : index
    %c0_0 = arith.constant 0 : index
    %0 = vector.load %arg1[%c0, %c0_0] : memref<64x128xbf16, #tpu.memory_space<vmem>>, vector<64x128xbf16>
    %c0_1 = arith.constant 0 : index
    %c0_2 = arith.constant 0 : index
    %1 = vector.load %arg2[%c0_1, %c0_2] : memref<128x128xbf16, #tpu.memory_space<vmem>>, vector<128x128xbf16>
    %cst = arith.constant dense<0.000000e+00> : vector<64x128xf32>
    %2 = tpu.matmul %0, %1, %cst {dimension_numbers = #tpu.dot_dimension_numbers<[1], [0], [0], [1], [0, 0, 1, 1], [], []>} : vector<64x128xbf16>, vector<128x128xbf16>, vector<64x128xf32> -> vector<64x128xf32>
    %c0_3 = arith.constant 0 : index
    %c0_4 = arith.constant 0 : index
    %3 = vector.load %arg3[%c0_3, %c0_4] : memref<64x1xf32, #tpu.memory_space<vmem>>, vector<64x1xf32>
    %4 = vector.broadcast %3 : vector<64x1xf32> to vector<64x128xf32>
    %5 = arith.addf %2, %4 : vector<64x128xf32>
    %c0_5 = arith.constant 0 : index
    %c0_6 = arith.constant 0 : index
    %6 = vector.load %arg4[%c0_5, %c0_6] : memref<64x128xf32, #tpu.memory_space<vmem>>, vector<64x128xf32>
    tpu.vector_store %arg4[%c0_5, %c0_6], %5 {strides = array<i32>} : memref<64x128xf32, #tpu.memory_space<vmem>>, vector<64x128xf32>,
    return
  }
  func.func @transform_0(%arg0: i32) -> (i32, i32) {
    %c0_i32 = arith.constant 0 : i32
    %c0_i32_0 = arith.constant 0 : i32
    %c0_i32_1 = arith.constant 0 : i32
    return %c0_i32, %c0_i32_0 : i32, i32
  }
  func.func @transform_1(%arg0: i32) -> (i32, i32) {
    %c0_i32 = arith.constant 0 : i32
    %c0_i32_0 = arith.constant 0 : i32
    return %c0_i32, %arg0 : i32, i32
  }
  func.func @transform_2(%arg0: i32) -> (i32, i32) {
    %c0_i32 = arith.constant 0 : i32
    %c0_i32_0 = arith.constant 0 : i32
    %c0_i32_1 = arith.constant 0 : i32
    return %c0_i32, %c0_i32_0 : i32, i32
  }
  func.func @transform_3(%arg0: i32) -> (i32, i32) {
    %c0_i32 = arith.constant 0 : i32
    %c0_i32_0 = arith.constant 0 : i32
    return %c0_i32, %arg0 : i32, i32
  }
}

</mosaic_0001>

<bundles_post_ra>
// kernel: ipn_forward.10
= control target key start
LH: loop header
LB: loop body
LE: loop exit
PB: predicated region body
PF: predicated region fallthrough
CT: control target
= control target key end

     0   :  { %s2442_s12 = smov 0   ;;  %s2444_s13 = smov 0   ;;  %s3072_s0 = inlined_call_operand.vmem [shape: bf16[4,128], index: 0, kind: input, shape index: {}]   ;;  %s3073_s1 = inlined_call_operand.vmem [shape: bf16[128,40960], index: 1, kind: input, shape index: {}]   ;;  %s3074_s2 = inlined_call_operand.vmem [shape: f32[4,1], index: 2, kind: input, shape index: {}]   ;;  %s3075_s3 = inlined_call_operand.vmem [shape: f32[4,40960], index: 3, kind: output, shape index: {}]  }
   0x1   :  { %s2446_s14 = smov 0  }
   0x2 LB: > { %s1685_s15 = sadd.s32 4294967295, %s2419_s14   ;;  %s2459_s16 = sadd.s32 1, %s2419_s14   ;;  %s2419_s14 = sphi %s2446_s14, %s3078_s14   ;;  %s2415_s13 = sphi %s2444_s13, %s3077_s13   ;;  %s2411_s12 = sphi %s2442_s12, %s3076_s12  }
   0x3   : > { %s38_s17 = ssub.s32 %s2419_s14, %s2459_s16  ;;  %s41_s18 = sadd.s32 1, %s2415_s13 }
   0x4   : > { %p39_p0 = scmp.eq.s32.totalorder %s38_s17, 0  ;;  %p48_p1 = scmp.ne.s32.totalorder %s2415_s13, %s2411_s12 }
   0x5   : > { %p49_p2 = scmp.eq.s32.totalorder %s2419_s14, 0  ;;  %p1688_p4 = scmp.ge.s32.totalorder %s2419_s14, 20 }
   0x6   : > { %s2468_s19 = scalar_select %p39_p0, %s2415_s13, %s41_s18  }
   0x7   : > { %p50_p3 = por %p49_p2, %p48_p1  ;;  %127 = sbr.rel (%p1688_p4) target bundleno = 144 (0x90), region = 24 }
   0xc   : > { %130 = sbr.rel (!%p50_p3) target bundleno = 144 (0x90), region = 28  ;;  %s132_s20 = sand.u32 (%p50_p3), 1, %s2415_s13  }
   0xd   : > { %s2210_s21 = sshll.u32 (%p50_p3), %s2419_s14, 6  ;;  %s1689_s22 = sshll.u32 (%p50_p3), %s132_s20, 10 }
   0xe   : > { %s2476_s25 = scalar_lea.vmem (%p50_p3), %s3073_s1, %s2210_s21  ;;  %s2481_s26 = scalar_lea.vmem (%p50_p3), [#allocation2], %s1689_s22 }
   0xf   : > { %v150_v0 = vld [vmem:[%s2476_s25] sm:$0xff] (%p50_p3)  ;;  %v152_v1 = vld [vmem:[%s2476_s25 + $0x8] sm:$0xff] (%p50_p3)  ;;  %v154_v2 = vld [vmem:[%s2476_s25 + $0x10] sm:$0xff] (%p50_p3) }
  0x10   : > { %151 = vst [vmem:[%s2481_s26] sm:$0xff] (%p50_p3), %v150_v0  ;;  %v156_v3 = vld [vmem:[%s2476_s25 + $0x18] sm:$0xff] (%p50_p3)  ;;  %v158_v4 = vld [vmem:[%s2476_s25 + $0x20] sm:$0xff] (%p50_p3)  ;;  %v160_v5 = vld [vmem:[%s2476_s25 + $0x28] sm:$0xff] (%p50_p3) }
  0x11   : > { %153 = vst [vmem:[%s2481_s26 + $0x8] sm:$0xff] %v152_v1  ;;  %v162_v6 = vld [vmem:[%s2476_s25 + $0x30] sm:$0xff]  ;;  %v164_v7 = vld [vmem:[%s2476_s25 + $0x38] sm:$0xff]  ;;  %v166_v8 = vld [vmem:[%s2476_s25 + $0x500] sm:$0xff] }
  0x12   : > { %155 = vst [vmem:[%s2481_s26 + $0x10] sm:$0xff] %v154_v2  ;;  %v168_v9 = vld [vmem:[%s2476_s25 + $0x508] sm:$0xff]  ;;  %v170_v10 = vld [vmem:[%s2476_s25 + $0x510] sm:$0xff]  ;;  %v172_v11 = vld [vmem:[%s2476_s25 + $0x518] sm:$0xff] }
  0x13   : > { %157 = vst [vmem:[%s2481_s26 + $0x18] sm:$0xff] %v156_v3  ;;  %v174_v12 = vld [vmem:[%s2476_s25 + $0x520] sm:$0xff]  ;;  %v176_v13 = vld [vmem:[%s2476_s25 + $0x528] sm:$0xff]  ;;  %v178_v14 = vld [vmem:[%s2476_s25 + $0x530] sm:$0xff] }
  0x14   : > { %159 = vst [vmem:[%s2481_s26 + $0x20] sm:$0xff] %v158_v4  ;;  %v180_v15 = vld [vmem:[%s2476_s25 + $0x538] sm:$0xff]  ;;  %v182_v16 = vld [vmem:[%s2476_s25 + $0xa00] sm:$0xff]  ;;  %v184_v17 = vld [vmem:[%s2476_s25 + $0xa08] sm:$0xff] }
  0x15   : > { %161 = vst [vmem:[%s2481_s26 + $0x28] sm:$0xff] %v160_v5  ;;  %v186_v18 = vld [vmem:[%s2476_s25 + $0xa10] sm:$0xff]  ;;  %v188_v19 = vld [vmem:[%s2476_s25 + $0xa18] sm:$0xff]  ;;  %v190_v20 = vld [vmem:[%s2476_s25 + $0xa20] sm:$0xff] }
  0x16   : > { %163 = vst [vmem:[%s2481_s26 + $0x30] sm:$0xff] %v162_v6  ;;  %v192_v21 = vld [vmem:[%s2476_s25 + $0xa28] sm:$0xff]  ;;  %v194_v22 = vld [vmem:[%s2476_s25 + $0xa30] sm:$0xff]  ;;  %v196_v23 = vld [vmem:[%s2476_s25 + $0xa38] sm:$0xff] }
  0x17   : > { %165 = vst [vmem:[%s2481_s26 + $0x38] sm:$0xff] %v164_v7  ;;  %v198_v24 = vld [vmem:[%s2476_s25 + $0xf00] sm:$0xff]  ;;  %v200_v25 = vld [vmem:[%s2476_s25 + $0xf08] sm:$0xff]  ;;  %v202_v26 = vld [vmem:[%s2476_s25 + $0xf10] sm:$0xff] }
  0x18   : > { %167 = vst [vmem:[%s2481_s26 + $0x40] sm:$0xff] %v166_v8  ;;  %v204_v27 = vld [vmem:[%s2476_s25 + $0xf18] sm:$0xff]  ;;  %v206_v28 = vld [vmem:[%s2476_s25 + $0xf20] sm:$0xff]  ;;  %v208_v29 = vld [vmem:[%s2476_s25 + $0xf28] sm:$0xff] }
  0x19   : > { %169 = vst [vmem:[%s2481_s26 + $0x48] sm:$0xff] %v168_v9  ;;  %v210_v30 = vld [vmem:[%s2476_s25 + $0xf30] sm:$0xff]  ;;  %v212_v31 = vld [vmem:[%s2476_s25 + $0xf38] sm:$0xff]  ;;  %v214_v32 = vld [vmem:[%s2476_s25 + $0x1400] sm:$0xff] }
  0x1a   : > { %171 = vst [vmem:[%s2481_s26 + $0x50] sm:$0xff] %v170_v10  ;;  %v216_v33 = vld [vmem:[%s2476_s25 + $0x1408] sm:$0xff]  ;;  %v218_v34 = vld [vmem:[%s2476_s25 + $0x1410] sm:$0xff]  ;;  %v220_v35 = vld [vmem:[%s2476_s25 + $0x1418] sm:$0xff] }
  0x1b   : > { %173 = vst [vmem:[%s2481_s26 + $0x58] sm:$0xff] %v172_v11  ;;  %v222_v36 = vld [vmem:[%s2476_s25 + $0x1420] sm:$0xff]  ;;  %v224_v37 = vld [vmem:[%s2476_s25 + $0x1428] sm:$0xff]  ;;  %v226_v38 = vld [vmem:[%s2476_s25 + $0x1430] sm:$0xff] }
  0x1c   : > { %175 = vst [vmem:[%s2481_s26 + $0x60] sm:$0xff] %v174_v12  ;;  %v228_v39 = vld [vmem:[%s2476_s25 + $0x1438] sm:$0xff]  ;;  %v230_v40 = vld [vmem:[%s2476_s25 + $0x1900] sm:$0xff]  ;;  %v232_v41 = vld [vmem:[%s2476_s25 + $0x1908] sm:$0xff] }
  0x1d   : > { %177 = vst [vmem:[%s2481_s26 + $0x68] sm:$0xff] %v176_v13  ;;  %v234_v42 = vld [vmem:[%s2476_s25 + $0x1910] sm:$0xff]  ;;  %v236_v43 = vld [vmem:[%s2476_s25 + $0x1918] sm:$0xff]  ;;  %v238_v44 = vld [vmem:[%s2476_s25 + $0x1920] sm:$0xff] }
  0x1e   : > { %179 = vst [vmem:[%s2481_s26 + $0x70] sm:$0xff] %v178_v14  ;;  %v240_v45 = vld [vmem:[%s2476_s25 + $0x1928] sm:$0xff]  ;;  %v242_v46 = vld [vmem:[%s2476_s25 + $0x1930] sm:$0xff]  ;;  %v244_v47 = vld [vmem:[%s2476_s25 + $0x1938] sm:$0xff] }
  0x1f   : > { %181 = vst [vmem:[%s2481_s26 + $0x78] sm:$0xff] %v180_v15  ;;  %v246_v48 = vld [vmem:[%s2476_s25 + $0x1e00] sm:$0xff]  ;;  %v248_v49 = vld [vmem:[%s2476_s25 + $0x1e08] sm:$0xff]  ;;  %v250_v50 = vld [vmem:[%s2476_s25 + $0x1e10] sm:$0xff] }
  0x20   : > { %183 = vst [vmem:[%s2481_s26 + $0x80] sm:$0xff] %v182_v16  ;;  %v252_v51 = vld [vmem:[%s2476_s25 + $0x1e18] sm:$0xff]  ;;  %v254_v52 = vld [vmem:[%s2476_s25 + $0x1e20] sm:$0xff]  ;;  %v256_v53 = vld [vmem:[%s2476_s25 + $0x1e28] sm:$0xff] }
  0x21   : > { %185 = vst [vmem:[%s2481_s26 + $0x88] sm:$0xff] %v184_v17  ;;  %v258_v54 = vld [vmem:[%s2476_s25 + $0x1e30] sm:$0xff]  ;;  %v260_v55 = vld [vmem:[%s2476_s25 + $0x1e38] sm:$0xff]  ;;  %v262_v56 = vld [vmem:[%s2476_s25 + $0x2300] sm:$0xff] }
  0x22   : > { %187 = vst [vmem:[%s2481_s26 + $0x90] sm:$0xff] %v186_v18  ;;  %v264_v57 = vld [vmem:[%s2476_s25 + $0x2308] sm:$0xff]  ;;  %v266_v58 = vld [vmem:[%s2476_s25 + $0x2310] sm:$0xff]  ;;  %v268_v59 = vld [vmem:[%s2476_s25 + $0x2318] sm:$0xff] }
  0x23   : > { %189 = vst [vmem:[%s2481_s26 + $0x98] sm:$0xff] %v188_v19  ;;  %v270_v60 = vld [vmem:[%s2476_s25 + $0x2320] sm:$0xff]  ;;  %v272_v61 = vld [vmem:[%s2476_s25 + $0x2328] sm:$0xff]  ;;  %v274_v62 = vld [vmem:[%s2476_s25 + $0x2330] sm:$0xff] }
  0x24   : > { %191 = vst [vmem:[%s2481_s26 + $0xa0] sm:$0xff] %v190_v20  ;;  %v276_v63 = vld [vmem:[%s2476_s25 + $0x2338] sm:$0xff]  ;;  %v278_v0 = vld [vmem:[%s2476_s25 + $0x2800] sm:$0xff]  ;;  %v280_v1 = vld [vmem:[%s2476_s25 + $0x2808] sm:$0xff] }
  0x25   : > { %193 = vst [vmem:[%s2481_s26 + $0xa8] sm:$0xff] %v192_v21  ;;  %v282_v2 = vld [vmem:[%s2476_s25 + $0x2810] sm:$0xff]  ;;  %v284_v3 = vld [vmem:[%s2476_s25 + $0x2818] sm:$0xff]  ;;  %v286_v4 = vld [vmem:[%s2476_s25 + $0x2820] sm:$0xff] }
  0x26   : > { %195 = vst [vmem:[%s2481_s26 + $0xb0] sm:$0xff] %v194_v22  ;;  %v288_v5 = vld [vmem:[%s2476_s25 + $0x2828] sm:$0xff]  ;;  %v290_v6 = vld [vmem:[%s2476_s25 + $0x2830] sm:$0xff]  ;;  %v292_v7 = vld [vmem:[%s2476_s25 + $0x2838] sm:$0xff] }
  0x27   : > { %197 = vst [vmem:[%s2481_s26 + $0xb8] sm:$0xff] %v196_v23  ;;  %v294_v8 = vld [vmem:[%s2476_s25 + $0x2d00] sm:$0xff]  ;;  %v296_v9 = vld [vmem:[%s2476_s25 + $0x2d08] sm:$0xff]  ;;  %v298_v10 = vld [vmem:[%s2476_s25 + $0x2d10] sm:$0xff] }
  0x28   : > { %199 = vst [vmem:[%s2481_s26 + $0xc0] sm:$0xff] %v198_v24  ;;  %v300_v11 = vld [vmem:[%s2476_s25 + $0x2d18] sm:$0xff]  ;;  %v302_v12 = vld [vmem:[%s2476_s25 + $0x2d20] sm:$0xff]  ;;  %v304_v13 = vld [vmem:[%s2476_s25 + $0x2d28] sm:$0xff] }
  0x29   : > { %201 = vst [vmem:[%s2481_s26 + $0xc8] sm:$0xff] %v200_v25  ;;  %v306_v14 = vld [vmem:[%s2476_s25 + $0x2d30] sm:$0xff]  ;;  %v308_v15 = vld [vmem:[%s2476_s25 + $0x2d38] sm:$0xff]  ;;  %v310_v16 = vld [vmem:[%s2476_s25 + $0x3200] sm:$0xff] }
  0x2a   : > { %203 = vst [vmem:[%s2481_s26 + $0xd0] sm:$0xff] %v202_v26  ;;  %v312_v17 = vld [vmem:[%s2476_s25 + $0x3208] sm:$0xff]  ;;  %v314_v18 = vld [vmem:[%s2476_s25 + $0x3210] sm:$0xff]  ;;  %v316_v19 = vld [vmem:[%s2476_s25 + $0x3218] sm:$0xff] }
  0x2b   : > { %205 = vst [vmem:[%s2481_s26 + $0xd8] sm:$0xff] %v204_v27  ;;  %v318_v20 = vld [vmem:[%s2476_s25 + $0x3220] sm:$0xff]  ;;  %v320_v21 = vld [vmem:[%s2476_s25 + $0x3228] sm:$0xff]  ;;  %v322_v22 = vld [vmem:[%s2476_s25 + $0x3230] sm:$0xff] }
  0x2c   : > { %207 = vst [vmem:[%s2481_s26 + $0xe0] sm:$0xff] %v206_v28  ;;  %v324_v23 = vld [vmem:[%s2476_s25 + $0x3238] sm:$0xff]  ;;  %v326_v24 = vld [vmem:[%s2476_s25 + $0x3700] sm:$0xff]  ;;  %v328_v25 = vld [vmem:[%s2476_s25 + $0x3708] sm:$0xff] }
  0x2d   : > { %209 = vst [vmem:[%s2481_s26 + $0xe8] sm:$0xff] %v208_v29  ;;  %v330_v26 = vld [vmem:[%s2476_s25 + $0x3710] sm:$0xff]  ;;  %v332_v27 = vld [vmem:[%s2476_s25 + $0x3718] sm:$0xff]  ;;  %v334_v28 = vld [vmem:[%s2476_s25 + $0x3720] sm:$0xff] }
  0x2e   : > { %211 = vst [vmem:[%s2481_s26 + $0xf0] sm:$0xff] %v210_v30  ;;  %v336_v29 = vld [vmem:[%s2476_s25 + $0x3728] sm:$0xff]  ;;  %v338_v30 = vld [vmem:[%s2476_s25 + $0x3730] sm:$0xff] }
  0x2f   : > { %213 = vst [vmem:[%s2481_s26 + $0xf8] sm:$0xff] %v212_v31  ;;  %v340_v31 = vld [vmem:[%s2476_s25 + $0x3738] sm:$0xff] }
  0x30   : > { %215 = vst [vmem:[%s2481_s26 + $0x100] sm:$0xff] %v214_v32  ;;  %v342_v32 = vld [vmem:[%s2476_s25 + $0x3c00] sm:$0xff] }
  0x31   : > { %217 = vst [vmem:[%s2481_s26 + $0x108] sm:$0xff] %v216_v33  ;;  %v344_v33 = vld [vmem:[%s2476_s25 + $0x3c08] sm:$0xff] }
  0x32   : > { %219 = vst [vmem:[%s2481_s26 + $0x110] sm:$0xff] %v218_v34  ;;  %v346_v34 = vld [vmem:[%s2476_s25 + $0x3c10] sm:$0xff] }
  0x33   : > { %221 = vst [vmem:[%s2481_s26 + $0x118] sm:$0xff] %v220_v35  ;;  %v348_v35 = vld [vmem:[%s2476_s25 + $0x3c18] sm:$0xff] }
  0x34   : > { %223 = vst [vmem:[%s2481_s26 + $0x120] sm:$0xff] %v222_v36  ;;  %v350_v36 = vld [vmem:[%s2476_s25 + $0x3c20] sm:$0xff] }
  0x35   : > { %225 = vst [vmem:[%s2481_s26 + $0x128] sm:$0xff] %v224_v37  ;;  %v352_v37 = vld [vmem:[%s2476_s25 + $0x3c28] sm:$0xff] }
  0x36   : > { %227 = vst [vmem:[%s2481_s26 + $0x130] sm:$0xff] %v226_v38  ;;  %v354_v38 = vld [vmem:[%s2476_s25 + $0x3c30] sm:$0xff] }
  0x37   : > { %229 = vst [vmem:[%s2481_s26 + $0x138] sm:$0xff] %v228_v39  ;;  %v356_v39 = vld [vmem:[%s2476_s25 + $0x3c38] sm:$0xff] }
  0x38   : > { %231 = vst [vmem:[%s2481_s26 + $0x140] sm:$0xff] %v230_v40  ;;  %v358_v40 = vld [vmem:[%s2476_s25 + $0x4100] sm:$0xff] }
  0x39   : > { %233 = vst [vmem:[%s2481_s26 + $0x148] sm:$0xff] %v232_v41  ;;  %v360_v41 = vld [vmem:[%s2476_s25 + $0x4108] sm:$0xff] }
  0x3a   : > { %235 = vst [vmem:[%s2481_s26 + $0x150] sm:$0xff] %v234_v42  ;;  %v362_v42 = vld [vmem:[%s2476_s25 + $0x4110] sm:$0xff] }
  0x3b   : > { %237 = vst [vmem:[%s2481_s26 + $0x158] sm:$0xff] %v236_v43  ;;  %v364_v43 = vld [vmem:[%s2476_s25 + $0x4118] sm:$0xff] }
  0x3c   : > { %239 = vst [vmem:[%s2481_s26 + $0x160] sm:$0xff] %v238_v44  ;;  %v366_v44 = vld [vmem:[%s2476_s25 + $0x4120] sm:$0xff] }
  0x3d   : > { %241 = vst [vmem:[%s2481_s26 + $0x168] sm:$0xff] %v240_v45  ;;  %v368_v45 = vld [vmem:[%s2476_s25 + $0x4128] sm:$0xff] }
  0x3e   : > { %243 = vst [vmem:[%s2481_s26 + $0x170] sm:$0xff] %v242_v46  ;;  %v370_v46 = vld [vmem:[%s2476_s25 + $0x4130] sm:$0xff] }
  0x3f   : > { %245 = vst [vmem:[%s2481_s26 + $0x178] sm:$0xff] %v244_v47  ;;  %v372_v47 = vld [vmem:[%s2476_s25 + $0x4138] sm:$0xff] }
  0x40   : > { %247 = vst [vmem:[%s2481_s26 + $0x180] sm:$0xff] %v246_v48  ;;  %v374_v48 = vld [vmem:[%s2476_s25 + $0x4600] sm:$0xff] }
  0x41   : > { %249 = vst [vmem:[%s2481_s26 + $0x188] sm:$0xff] %v248_v49  ;;  %v376_v49 = vld [vmem:[%s2476_s25 + $0x4608] sm:$0xff] }
  0x42   : > { %251 = vst [vmem:[%s2481_s26 + $0x190] sm:$0xff] %v250_v50  ;;  %v378_v50 = vld [vmem:[%s2476_s25 + $0x4610] sm:$0xff] }
  0x43   : > { %253 = vst [vmem:[%s2481_s26 + $0x198] sm:$0xff] %v252_v51  ;;  %v380_v51 = vld [vmem:[%s2476_s25 + $0x4618] sm:$0xff] }
  0x44   : > { %255 = vst [vmem:[%s2481_s26 + $0x1a0] sm:$0xff] %v254_v52  ;;  %v382_v52 = vld [vmem:[%s2476_s25 + $0x4620] sm:$0xff] }
  0x45   : > { %257 = vst [vmem:[%s2481_s26 + $0x1a8] sm:$0xff] %v256_v53  ;;  %v384_v53 = vld [vmem:[%s2476_s25 + $0x4628] sm:$0xff] }
  0x46   : > { %259 = vst [vmem:[%s2481_s26 + $0x1b0] sm:$0xff] %v258_v54  ;;  %v386_v54 = vld [vmem:[%s2476_s25 + $0x4630] sm:$0xff] }
  0x47   : > { %261 = vst [vmem:[%s2481_s26 + $0x1b8] sm:$0xff] %v260_v55  ;;  %v388_v55 = vld [vmem:[%s2476_s25 + $0x4638] sm:$0xff] }
  0x48   : > { %263 = vst [vmem:[%s2481_s26 + $0x1c0] sm:$0xff] %v262_v56  ;;  %v390_v56 = vld [vmem:[%s2476_s25 + $0x4b00] sm:$0xff] }
  0x49   : > { %265 = vst [vmem:[%s2481_s26 + $0x1c8] sm:$0xff] %v264_v57  ;;  %v392_v57 = vld [vmem:[%s2476_s25 + $0x4b08] sm:$0xff] }
  0x4a   : > { %267 = vst [vmem:[%s2481_s26 + $0x1d0] sm:$0xff] %v266_v58  ;;  %v394_v58 = vld [vmem:[%s2476_s25 + $0x4b10] sm:$0xff] }
  0x4b   : > { %269 = vst [vmem:[%s2481_s26 + $0x1d8] sm:$0xff] %v268_v59  ;;  %v396_v59 = vld [vmem:[%s2476_s25 + $0x4b18] sm:$0xff] }
  0x4c   : > { %271 = vst [vmem:[%s2481_s26 + $0x1e0] sm:$0xff] %v270_v60  ;;  %v398_v60 = vld [vmem:[%s2476_s25 + $0x4b20] sm:$0xff] }
  0x4d   : > { %273 = vst [vmem:[%s2481_s26 + $0x1e8] sm:$0xff] %v272_v61  ;;  %v400_v61 = vld [vmem:[%s2476_s25 + $0x4b28] sm:$0xff] }
  0x4e   : > { %275 = vst [vmem:[%s2481_s26 + $0x1f0] sm:$0xff] %v274_v62  ;;  %v402_v62 = vld [vmem:[%s2476_s25 + $0x4b30] sm:$0xff] }
  0x4f   : > { %277 = vst [vmem:[%s2481_s26 + $0x1f8] sm:$0xff] %v276_v63  ;;  %v404_v63 = vld [vmem:[%s2476_s25 + $0x4b38] sm:$0xff] }
  0x50   : > { %279 = vst [vmem:[%s2481_s26 + $0x200] sm:$0xff] %v278_v0 }
  0x51   : > { %281 = vst [vmem:[%s2481_s26 + $0x208] sm:$0xff] %v280_v1 }
  0x52   : > { %283 = vst [vmem:[%s2481_s26 + $0x210] sm:$0xff] %v282_v2 }
  0x53   : > { %285 = vst [vmem:[%s2481_s26 + $0x218] sm:$0xff] %v284_v3 }
  0x54   : > { %287 = vst [vmem:[%s2481_s26 + $0x220] sm:$0xff] %v286_v4 }
  0x55   : > { %289 = vst [vmem:[%s2481_s26 + $0x228] sm:$0xff] %v288_v5 }
  0x56   : > { %291 = vst [vmem:[%s2481_s26 + $0x230] sm:$0xff] %v290_v6 }
  0x57   : > { %293 = vst [vmem:[%s2481_s26 + $0x238] sm:$0xff] %v292_v7 }
  0x58   : > { %295 = vst [vmem:[%s2481_s26 + $0x240] sm:$0xff] %v294_v8 }
  0x59   : > { %297 = vst [vmem:[%s2481_s26 + $0x248] sm:$0xff] %v296_v9 }
  0x5a   : > { %299 = vst [vmem:[%s2481_s26 + $0x250] sm:$0xff] %v298_v10 }
  0x5b   : > { %301 = vst [vmem:[%s2481_s26 + $0x258] sm:$0xff] %v300_v11 }
  0x5c   : > { %303 = vst [vmem:[%s2481_s26 + $0x260] sm:$0xff] %v302_v12 }
  0x5d   : > { %305 = vst [vmem:[%s2481_s26 + $0x268] sm:$0xff] %v304_v13 }
  0x5e   : > { %307 = vst [vmem:[%s2481_s26 + $0x270] sm:$0xff] %v306_v14 }
  0x5f   : > { %309 = vst [vmem:[%s2481_s26 + $0x278] sm:$0xff] %v308_v15 }
  0x60   : > { %311 = vst [vmem:[%s2481_s26 + $0x280] sm:$0xff] %v310_v16 }
  0x61   : > { %313 = vst [vmem:[%s2481_s26 + $0x288] sm:$0xff] %v312_v17 }
  0x62   : > { %315 = vst [vmem:[%s2481_s26 + $0x290] sm:$0xff] %v314_v18 }
  0x63   : > { %317 = vst [vmem:[%s2481_s26 + $0x298] sm:$0xff] %v316_v19 }
  0x64   : > { %319 = vst [vmem:[%s2481_s26 + $0x2a0] sm:$0xff] %v318_v20 }
  0x65   : > { %321 = vst [vmem:[%s2481_s26 + $0x2a8] sm:$0xff] %v320_v21 }
  0x66   : > { %323 = vst [vmem:[%s2481_s26 + $0x2b0] sm:$0xff] %v322_v22 }
  0x67   : > { %325 = vst [vmem:[%s2481_s26 + $0x2b8] sm:$0xff] %v324_v23 }
  0x68   : > { %327 = vst [vmem:[%s2481_s26 + $0x2c0] sm:$0xff] %v326_v24 }
  0x69   : > { %329 = vst [vmem:[%s2481_s26 + $0x2c8] sm:$0xff] %v328_v25 }
  0x6a   : > { %331 = vst [vmem:[%s2481_s26 + $0x2d0] sm:$0xff] %v330_v26 }
  0x6b   : > { %333 = vst [vmem:[%s2481_s26 + $0x2d8] sm:$0xff] %v332_v27 }
  0x6c   : > { %335 = vst [vmem:[%s2481_s26 + $0x2e0] sm:$0xff] %v334_v28 }
  0x6d   : > { %337 = vst [vmem:[%s2481_s26 + $0x2e8] sm:$0xff] %v336_v29 }
  0x6e   : > { %339 = vst [vmem:[%s2481_s26 + $0x2f0] sm:$0xff] %v338_v30 }
  0x6f   : > { %341 = vst [vmem:[%s2481_s26 + $0x2f8] sm:$0xff] %v340_v31 }
  0x70   : > { %343 = vst [vmem:[%s2481_s26 + $0x300] sm:$0xff] %v342_v32 }
  0x71   : > { %345 = vst [vmem:[%s2481_s26 + $0x308] sm:$0xff] %v344_v33 }
  0x72   : > { %347 = vst [vmem:[%s2481_s26 + $0x310] sm:$0xff] %v346_v34 }
  0x73   : > { %349 = vst [vmem:[%s2481_s26 + $0x318] sm:$0xff] %v348_v35 }
  0x74   : > { %351 = vst [vmem:[%s2481_s26 + $0x320] sm:$0xff] %v350_v36 }
  0x75   : > { %353 = vst [vmem:[%s2481_s26 + $0x328] sm:$0xff] %v352_v37 }
  0x76   : > { %355 = vst [vmem:[%s2481_s26 + $0x330] sm:$0xff] %v354_v38 }
  0x77   : > { %357 = vst [vmem:[%s2481_s26 + $0x338] sm:$0xff] %v356_v39 }
  0x78   : > { %359 = vst [vmem:[%s2481_s26 + $0x340] sm:$0xff] %v358_v40 }
  0x79   : > { %361 = vst [vmem:[%s2481_s26 + $0x348] sm:$0xff] %v360_v41 }
  0x7a   : > { %363 = vst [vmem:[%s2481_s26 + $0x350] sm:$0xff] %v362_v42 }
  0x7b   : > { %365 = vst [vmem:[%s2481_s26 + $0x358] sm:$0xff] %v364_v43 }
  0x7c   : > { %367 = vst [vmem:[%s2481_s26 + $0x360] sm:$0xff] %v366_v44 }
  0x7d   : > { %369 = vst [vmem:[%s2481_s26 + $0x368] sm:$0xff] %v368_v45 }
  0x7e   : > { %371 = vst [vmem:[%s2481_s26 + $0x370] sm:$0xff] %v370_v46 }
  0x7f   : > { %373 = vst [vmem:[%s2481_s26 + $0x378] sm:$0xff] %v372_v47 }
  0x80   : > { %375 = vst [vmem:[%s2481_s26 + $0x380] sm:$0xff] %v374_v48 }
  0x81   : > { %377 = vst [vmem:[%s2481_s26 + $0x388] sm:$0xff] %v376_v49 }
  0x82   : > { %379 = vst [vmem:[%s2481_s26 + $0x390] sm:$0xff] %v378_v50 }
  0x83   : > { %381 = vst [vmem:[%s2481_s26 + $0x398] sm:$0xff] %v380_v51 }
  0x84   : > { %383 = vst [vmem:[%s2481_s26 + $0x3a0] sm:$0xff] %v382_v52 }
  0x85   : > { %385 = vst [vmem:[%s2481_s26 + $0x3a8] sm:$0xff] %v384_v53 }
  0x86   : > { %387 = vst [vmem:[%s2481_s26 + $0x3b0] sm:$0xff] %v386_v54 }
  0x87   : > { %389 = vst [vmem:[%s2481_s26 + $0x3b8] sm:$0xff] %v388_v55 }
  0x88   : > { %391 = vst [vmem:[%s2481_s26 + $0x3c0] sm:$0xff] %v390_v56 }
  0x89   : > { %393 = vst [vmem:[%s2481_s26 + $0x3c8] sm:$0xff] %v392_v57 }
  0x8a   : > { %395 = vst [vmem:[%s2481_s26 + $0x3d0] sm:$0xff] %v394_v58 }
  0x8b   : > { %397 = vst [vmem:[%s2481_s26 + $0x3d8] sm:$0xff] %v396_v59 }
  0x8c   : > { %399 = vst [vmem:[%s2481_s26 + $0x3e0] sm:$0xff] %v398_v60 }
  0x8d   : > { %401 = vst [vmem:[%s2481_s26 + $0x3e8] sm:$0xff] %v400_v61 }
  0x8e   : > { %403 = vst [vmem:[%s2481_s26 + $0x3f0] sm:$0xff] %v402_v62 }
  0x8f   : > { %405 = vst [vmem:[%s2481_s26 + $0x3f8] sm:$0xff] %v404_v63 }
  0x90 PF: > { %p1692_p5 = scmp.ge.s32.totalorder %s2419_s14, 1  ;;  %p410_p6 = scmp.lt.s32.totalorder %s2419_s14, 21 }
  0x92   : > { %p411_p7 = pnand %p1692_p5, %p410_p6 }
  0x93   : > { %s417_s27 = sand.u32 (!%p411_p7), 1, %s2411_s12   ;;  %s1694_s7 = sshll.u32 (!%p411_p7), %s1685_s15, 4 }
  0x94   : > { %414 = sbr.rel (%p411_p7) target bundleno = 443 (0x1bb), region = 51  ;;  %s1693_s28 = sshll.u32 (!%p411_p7), %s417_s27, 10 }
  0x95   : > { %s2739_s29 = scalar_lea.vmem (!%p411_p7), [#allocation2], %s1693_s28  ;;  %p442_p8 = scmp.lt.s32.totalorder (!%p411_p7), %s1694_s7, 319 }
  0x99   : > { %v2146_v0 = vld [vmem:[%s2739_s29 + $0x380] sm:$0xf]  ;;  %v2323_v2 = vld [vmem:[%s2739_s29 + $0x384] sm:$0xf]  ;;  %v2154_v5 = vld [vmem:[%s2739_s29 + $0x388] sm:$0xf] }
  0x9a   : > { %v2331_v1 = vld [vmem:[%s2739_s29 + $0x3bc] sm:$0xf0]  ;;  %v2148_v4 = vld [vmem:[%s2739_s29 + $0x3c0] sm:$0xf0]  ;;  %v2332_v6 = vld [vmem:[%s2739_s29 + $0x3c4] sm:$0xf0] }
  0x9b   : > { %v2147_v3 = vor.u32 %v2331_v1, %v2146_v0  ;;  %v2151_v7 = vor.u32 %v2323_v2, %v2148_v4  ;;  %v2155_v8 = vor.u32 %v2332_v6, %v2154_v5  ;;  %v2324_v9 = vld [vmem:[%s2739_s29 + $0x38c] sm:$0xf]  ;;  %v2082_v11 = vld [vmem:[%s2739_s29 + $0x300] sm:$0xf]  ;;  %v2307_v14 = vld [vmem:[%s2739_s29 + $0x304] sm:$0xf] }
  0x9c   : > { %v2156_v10 = vld [vmem:[%s2739_s29 + $0x3c8] sm:$0xf0]  ;;  %v2315_v13 = vld [vmem:[%s2739_s29 + $0x33c] sm:$0xf0]  ;;  %v2084_v15 = vld [vmem:[%s2739_s29 + $0x340] sm:$0xf0] }
  0x9d   : > { %1222 = vmatpush.bf16.msra.mxu0 %v2147_v3  ;;  %v2159_v12 = vor.u32 %v2324_v9, %v2156_v10  ;;  %1235 = vmatpush.bf16.msra.mxu1 %v2151_v7  ;;  %v2083_v16 = vor.u32 %v2315_v13, %v2082_v11  ;;  %v2087_v17 = vor.u32 %v2307_v14, %v2084_v15  ;;  %v2090_v18 = vld [vmem:[%s2739_s29 + $0x308] sm:$0xf]  ;;  %v2308_v20 = vld [vmem:[%s2739_s29 + $0x30c] sm:$0xf]  ;;  %v2018_v23 = vld [vmem:[%s2739_s29 + $0x280] sm:$0xf] }
  0x9e   : > { %1248 = vmatpush.bf16.msra.mxu2 %v2155_v8  ;;  %v2316_v19 = vld [vmem:[%s2739_s29 + $0x344] sm:$0xf0]  ;;  %v2092_v22 = vld [vmem:[%s2739_s29 + $0x348] sm:$0xf0]  ;;  %v2299_v24 = vld [vmem:[%s2739_s29 + $0x2bc] sm:$0xf0] }
  0x9f   : > { %1261 = vmatpush.bf16.msra.mxu3 %v2159_v12  ;;  %v2091_v21 = vor.u32 %v2316_v19, %v2090_v18  ;;  %v2095_v25 = vor.u32 %v2308_v20, %v2092_v22  ;;  %v2291_v26 = vld [vmem:[%s2739_s29 + $0x284] sm:$0xf]  ;;  %v2026_v28 = vld [vmem:[%s2739_s29 + $0x288] sm:$0xf]  ;;  %v2019_v29 = vor.u32 %v2299_v24, %v2018_v23  ;;  %v2292_v31 = vld [vmem:[%s2739_s29 + $0x28c] sm:$0xf] }
  0xa0   : > { %v2020_v27 = vld [vmem:[%s2739_s29 + $0x2c0] sm:$0xf0]  ;;  %v2300_v30 = vld [vmem:[%s2739_s29 + $0x2c4] sm:$0xf0]  ;;  %v2028_v32 = vld [vmem:[%s2739_s29 + $0x2c8] sm:$0xf0] }
  0xa1   : > { %1223 = vmatpush.bf16.msra.mxu0 %v2083_v16  ;;  %1236 = vmatpush.bf16.msra.mxu1 %v2087_v17  ;;  %v2023_v33 = vor.u32 %v2291_v26, %v2020_v27  ;;  %v2027_v34 = vor.u32 %v2300_v30, %v2026_v28  ;;  %v1954_v35 = vld [vmem:[%s2739_s29 + $0x200] sm:$0xf]  ;;  %v2275_v37 = vld [vmem:[%s2739_s29 + $0x204] sm:$0xf]  ;;  %v2031_v38 = vor.u32 %v2292_v31, %v2028_v32  ;;  %v1962_v40 = vld [vmem:[%s2739_s29 + $0x208] sm:$0xf] }
  0xa2   : > { %1249 = vmatpush.bf16.msra.mxu2 %v2091_v21  ;;  %v2283_v36 = vld [vmem:[%s2739_s29 + $0x23c] sm:$0xf0]  ;;  %v1956_v39 = vld [vmem:[%s2739_s29 + $0x240] sm:$0xf0]  ;;  %v2284_v41 = vld [vmem:[%s2739_s29 + $0x244] sm:$0xf0] }
  0xa3   : > { %1262 = vmatpush.bf16.msra.mxu3 %v2095_v25  ;;  %v2276_v42 = vld [vmem:[%s2739_s29 + $0x20c] sm:$0xf]  ;;  %v1955_v44 = vor.u32 %v2283_v36, %v1954_v35  ;;  %v1959_v45 = vor.u32 %v2275_v37, %v1956_v39  ;;  %v1963_v46 = vor.u32 %v2284_v41, %v1962_v40  ;;  %v1890_v47 = vld [vmem:[%s2739_s29 + $0x180] sm:$0xf]  ;;  %v2259_v49 = vld [vmem:[%s2739_s29 + $0x184] sm:$0xf] }
  0xa4   : > { %v1964_v43 = vld [vmem:[%s2739_s29 + $0x248] sm:$0xf0]  ;;  %v2267_v48 = vld [vmem:[%s2739_s29 + $0x1bc] sm:$0xf0]  ;;  %v1892_v51 = vld [vmem:[%s2739_s29 + $0x1c0] sm:$0xf0] }
  0xa5   : > { %1224 = vmatpush.bf16.msra.mxu0 %v2019_v29  ;;  %1237 = vmatpush.bf16.msra.mxu1 %v2023_v33  ;;  %v1967_v50 = vor.u32 %v2276_v42, %v1964_v43  ;;  %v1898_v52 = vld [vmem:[%s2739_s29 + $0x188] sm:$0xf]  ;;  %v2260_v54 = vld [vmem:[%s2739_s29 + $0x18c] sm:$0xf]  ;;  %v1891_v56 = vor.u32 %v2267_v48, %v1890_v47  ;;  %v1895_v57 = vor.u32 %v2259_v49, %v1892_v51  ;;  %v1826_v59 = vld [vmem:[%s2739_s29 + $0x100] sm:$0xf] }
  0xa6   : > { %1250 = vmatpush.bf16.msra.mxu2 %v2027_v34  ;;  %v2268_v53 = vld [vmem:[%s2739_s29 + $0x1c4] sm:$0xf0]  ;;  %v1900_v55 = vld [vmem:[%s2739_s29 + $0x1c8] sm:$0xf0]  ;;  %v2251_v60 = vld [vmem:[%s2739_s29 + $0x13c] sm:$0xf0] }
  0xa7   : > { %1263 = vmatpush.bf16.msra.mxu3 %v2031_v38  ;;  %v1899_v58 = vor.u32 %v2268_v53, %v1898_v52  ;;  %v2243_v61 = vld [vmem:[%s2739_s29 + $0x104] sm:$0xf]  ;;  %v1903_v62 = vor.u32 %v2260_v54, %v1900_v55  ;;  %v1834_v0 = vld [vmem:[%s2739_s29 + $0x108] sm:$0xf]  ;;  %v2244_v2 = vld [vmem:[%s2739_s29 + $0x10c] sm:$0xf]  ;;  %v1827_v4 = vor.u32 %v2251_v60, %v1826_v59 }
  0xa8   : > { %v1828_v63 = vld [vmem:[%s2739_s29 + $0x140] sm:$0xf0]  ;;  %v2252_v1 = vld [vmem:[%s2739_s29 + $0x144] sm:$0xf0]  ;;  %v1836_v3 = vld [vmem:[%s2739_s29 + $0x148] sm:$0xf0] }
  0xa9   : > { %1225 = vmatpush.bf16.msra.mxu0 %v1955_v44  ;;  %1238 = vmatpush.bf16.msra.mxu1 %v1959_v45  ;;  %v1831_v5 = vor.u32 %v2243_v61, %v1828_v63  ;;  %v1835_v6 = vor.u32 %v2252_v1, %v1834_v0  ;;  %v1762_v7 = vld [vmem:[%s2739_s29 + $0x80] sm:$0xf]  ;;  %v2227_v9 = vld [vmem:[%s2739_s29 + $0x84] sm:$0xf]  ;;  %v1839_v10 = vor.u32 %v2244_v2, %v1836_v3  ;;  %v1770_v12 = vld [vmem:[%s2739_s29 + $0x88] sm:$0xf] }
  0xaa   : > { %1251 = vmatpush.bf16.msra.mxu2 %v1963_v46  ;;  %v2235_v8 = vld [vmem:[%s2739_s29 + $0xbc] sm:$0xf0]  ;;  %v1764_v11 = vld [vmem:[%s2739_s29 + $0xc0] sm:$0xf0]  ;;  %v2236_v13 = vld [vmem:[%s2739_s29 + $0xc4] sm:$0xf0] }
  0xab   : > { %1264 = vmatpush.bf16.msra.mxu3 %v1967_v50  ;;  %v2228_v14 = vld [vmem:[%s2739_s29 + $0x8c] sm:$0xf]  ;;  %v1763_v16 = vor.u32 %v2235_v8, %v1762_v7  ;;  %v1698_v17 = vld [vmem:[%s2739_s29] sm:$0xf]  ;;  %v1767_v19 = vor.u32 %v2227_v9, %v1764_v11  ;;  %v1771_v20 = vor.u32 %v2236_v13, %v1770_v12  ;;  %v2211_v21 = vld [vmem:[%s2739_s29 + $0x4] sm:$0xf] }
  0xac   : > { %v1772_v15 = vld [vmem:[%s2739_s29 + $0xc8] sm:$0xf0]  ;;  %v2219_v18 = vld [vmem:[%s2739_s29 + $0x3c] sm:$0xf0]  ;;  %v1700_v22 = vld [vmem:[%s2739_s29 + $0x40] sm:$0xf0] }
  0xad   : > { %1226 = vmatpush.bf16.msra.mxu0 %v1891_v56  ;;  %1239 = vmatpush.bf16.msra.mxu1 %v1895_v57  ;;  %v1706_v23 = vld [vmem:[%s2739_s29 + $0x8] sm:$0xf]  ;;  %v1775_v24 = vor.u32 %v2228_v14, %v1772_v15  ;;  %v2212_v26 = vld [vmem:[%s2739_s29 + $0xc] sm:$0xf]  ;;  %v2162_v28 = vld [vmem:[%s2739_s29 + $0x390] sm:$0xf]  ;;  %v1699_v31 = vor.u32 %v2219_v18, %v1698_v17  ;;  %v1703_v35 = vor.u32 %v2211_v21, %v1700_v22 }
  0xae   : > { %1252 = vmatpush.bf16.msra.mxu2 %v1899_v58  ;;  %v2220_v25 = vld [vmem:[%s2739_s29 + $0x44] sm:$0xf0]  ;;  %v1708_v27 = vld [vmem:[%s2739_s29 + $0x48] sm:$0xf0]  ;;  %v2333_v29 = vld [vmem:[%s2739_s29 + $0x3cc] sm:$0xf0] }
  0xaf   : > { %1265 = vmatpush.bf16.msra.mxu3 %v1903_v62  ;;  %v2325_v30 = vld [vmem:[%s2739_s29 + $0x394] sm:$0xf]  ;;  %v2170_v33 = vld [vmem:[%s2739_s29 + $0x398] sm:$0xf]  ;;  %v1707_v36 = vor.u32 %v2220_v25, %v1706_v23  ;;  %v2326_v37 = vld [vmem:[%s2739_s29 + $0x39c] sm:$0xf]  ;;  %v1711_v39 = vor.u32 %v2212_v26, %v1708_v27  ;;  %v2163_v40 = vor.u32 %v2333_v29, %v2162_v28 }
  0xb0   : > { %v2164_v32 = vld [vmem:[%s2739_s29 + $0x3d0] sm:$0xf0]  ;;  %v2334_v34 = vld [vmem:[%s2739_s29 + $0x3d4] sm:$0xf0]  ;;  %v2172_v38 = vld [vmem:[%s2739_s29 + $0x3d8] sm:$0xf0] }
  0xb1   : > { %1227 = vmatpush.bf16.msra.mxu0 %v1827_v4  ;;  %1240 = vmatpush.bf16.msra.mxu1 %v1831_v5  ;;  %v2167_v41 = vor.u32 %v2325_v30, %v2164_v32  ;;  %v2171_v42 = vor.u32 %v2334_v34, %v2170_v33  ;;  %v2098_v43 = vld [vmem:[%s2739_s29 + $0x310] sm:$0xf]  ;;  %v2309_v45 = vld [vmem:[%s2739_s29 + $0x314] sm:$0xf]  ;;  %v2175_v46 = vor.u32 %v2326_v37, %v2172_v38  ;;  %v2106_v48 = vld [vmem:[%s2739_s29 + $0x318] sm:$0xf] }
  0xb2   : > { %1253 = vmatpush.bf16.msra.mxu2 %v1835_v6  ;;  %v2317_v44 = vld [vmem:[%s2739_s29 + $0x34c] sm:$0xf0]  ;;  %v2100_v47 = vld [vmem:[%s2739_s29 + $0x350] sm:$0xf0]  ;;  %v2318_v49 = vld [vmem:[%s2739_s29 + $0x354] sm:$0xf0] }
  0xb3   : > { %1266 = vmatpush.bf16.msra.mxu3 %v1839_v10  ;;  %v2310_v50 = vld [vmem:[%s2739_s29 + $0x31c] sm:$0xf]  ;;  %v2099_v52 = vor.u32 %v2317_v44, %v2098_v43  ;;  %v2824_v53 = vld [vmem:[%s3072_s0] sm:$0x3]  ;;  %v2103_v54 = vor.u32 %v2309_v45, %v2100_v47  ;;  %v2107_v55 = vor.u32 %v2318_v49, %v2106_v48  ;;  %v2034_v56 = vld [vmem:[%s2739_s29 + $0x290] sm:$0xf] }
  0xb4   : > { %v2108_v51 = vld [vmem:[%s2739_s29 + $0x358] sm:$0xf0]  ;;  %v2301_v57 = vld [vmem:[%s2739_s29 + $0x2cc] sm:$0xf0]  ;;  %v2293_v58 = vld [vmem:[%s2739_s29 + $0x294] sm:$0xf] }
  0xb5   : > { %1228 = vmatpush.bf16.msra.mxu0 %v1763_v16  ;;  %1241 = vmatpush.bf16.msra.mxu1 %v1767_v19  ;;  %v2111_v59 = vor.u32 %v2310_v50, %v2108_v51  ;;  %v2036_v60 = vld [vmem:[%s2739_s29 + $0x2d0] sm:$0xf0]  ;;  %v2042_v61 = vld [vmem:[%s2739_s29 + $0x298] sm:$0xf]  ;;  %v2294_v63 = vld [vmem:[%s2739_s29 + $0x29c] sm:$0xf]  ;;  %v2035_v1 = vor.u32 %v2301_v57, %v2034_v56 }
  0xb6   : > { %1254 = vmatpush.bf16.msra.mxu2 %v1771_v20  ;;  %v2302_v62 = vld [vmem:[%s2739_s29 + $0x2d4] sm:$0xf0]  ;;  %v2044_v0 = vld [vmem:[%s2739_s29 + $0x2d8] sm:$0xf0]  ;;  %v2039_v2 = vor.u32 %v2293_v58, %v2036_v60  ;;  %v1970_v4 = vld [vmem:[%s2739_s29 + $0x210] sm:$0xf] }
  0xb7   : > { %1267 = vmatpush.bf16.msra.mxu3 %v1775_v24  ;;  %v2043_v3 = vor.u32 %v2302_v62, %v2042_v61  ;;  %v2285_v5 = vld [vmem:[%s2739_s29 + $0x24c] sm:$0xf0]  ;;  %v2277_v6 = vld [vmem:[%s2739_s29 + $0x214] sm:$0xf]  ;;  %v2047_v7 = vor.u32 %v2294_v63, %v2044_v0  ;;  %v1978_v9 = vld [vmem:[%s2739_s29 + $0x218] sm:$0xf] }
  0xb8   : > { %v1972_v8 = vld [vmem:[%s2739_s29 + $0x250] sm:$0xf0]  ;;  %v2286_v10 = vld [vmem:[%s2739_s29 + $0x254] sm:$0xf0]  ;;  %v2278_v11 = vld [vmem:[%s2739_s29 + $0x21c] sm:$0xf]  ;;  %v1971_v13 = vor.u32 %v2285_v5, %v1970_v4 }
  0xb9   : > { %1229 = vmatpush.bf16.msra.mxu0 %v1699_v31  ;;  %1242 = vmatpush.bf16.msra.mxu1 %v1703_v35  ;;  %v1980_v12 = vld [vmem:[%s2739_s29 + $0x258] sm:$0xf0]  ;;  %v1975_v14 = vor.u32 %v2277_v6, %v1972_v8  ;;  %v1979_v15 = vor.u32 %v2286_v10, %v1978_v9  ;;  %v1906_v16 = vld [vmem:[%s2739_s29 + $0x190] sm:$0xf]  ;;  %v2261_v18 = vld [vmem:[%s2739_s29 + $0x194] sm:$0xf] }
  0xba   : > { %1255 = vmatpush.bf16.msra.mxu2 %v1707_v36  ;;  %v2269_v17 = vld [vmem:[%s2739_s29 + $0x1cc] sm:$0xf0]  ;;  %v1983_v19 = vor.u32 %v2278_v11, %v1980_v12  ;;  %v1908_v20 = vld [vmem:[%s2739_s29 + $0x1d0] sm:$0xf0]  ;;  %v1914_v21 = vld [vmem:[%s2739_s29 + $0x198] sm:$0xf] }
  0xbb   : > { %1268 = vmatpush.bf16.msra.mxu3 %v1711_v39  ;;  %v2270_v22 = vld [vmem:[%s2739_s29 + $0x1d4] sm:$0xf0]  ;;  %v2262_v23 = vld [vmem:[%s2739_s29 + $0x19c] sm:$0xf]  ;;  %v1907_v25 = vor.u32 %v2269_v17, %v1906_v16  ;;  %v1842_v26 = vld [vmem:[%s2739_s29 + $0x110] sm:$0xf]  ;;  %v1911_v27 = vor.u32 %v2261_v18, %v1908_v20 }
  0xbc   : > { %1243 = vmatmul.bf16.vlgmr.msra.gmra.mxu1 %v2824_v53  ;;  %1230 = vmatmul.bf16.vlgmr.msra.gmra.mxu0 %v2824_v53  ;;  %v1916_v24 = vld [vmem:[%s2739_s29 + $0x1d8] sm:$0xf0]  ;;  %v1915_v28 = vor.u32 %v2270_v22, %v1914_v21  ;;  %v2253_v29 = vld [vmem:[%s2739_s29 + $0x14c] sm:$0xf0]  ;;  %v2245_v30 = vld [vmem:[%s2739_s29 + $0x114] sm:$0xf] }
  0xbd   : > { %1274 = vmatpush.bf16.msrb.mxu0 %v2163_v40  ;;  %1287 = vmatpush.bf16.msrb.mxu1 %v2167_v41  ;;  %v576_v31 = vld [vmem:[%s3074_s2] sm:$0xf]  ;;  %v1919_v32 = vor.u32 %v2262_v23, %v1916_v24  ;;  %v1844_v33 = vld [vmem:[%s2739_s29 + $0x150] sm:$0xf0]  ;;  %v1850_v34 = vld [vmem:[%s2739_s29 + $0x118] sm:$0xf]  ;;  %v1843_v39 = vor.u32 %v2253_v29, %v1842_v26 }
  0xbe   : > { %1300 = vmatpush.bf16.msrb.mxu2 %v2171_v42  ;;  %1269 = vmatmul.bf16.vlgmr.msra.gmra.mxu3 %v2824_v53  ;;  %v2254_v35 = vld [vmem:[%s2739_s29 + $0x154] sm:$0xf0]  ;;  %v2421_v36 = vmov 0   ;;  %v2246_v37 = vld [vmem:[%s2739_s29 + $0x11c] sm:$0xf]  ;;  %v1847_v40 = vor.u32 %v2245_v30, %v1844_v33  ;;  %s3080_s7 = smov (!%p442_p8, %s1694_s7), 319 }
  0xbf   : > { %1313 = vmatpush.bf16.msrb.mxu3 %v2175_v46  ;;  %1256 = vmatmul.bf16.vlgmr.msra.gmra.mxu2 %v2824_v53  ;;  %v1852_v38 = vld [vmem:[%s2739_s29 + $0x158] sm:$0xf0]  ;;  %v1851_v41 = vor.u32 %v2254_v35, %v1850_v34  ;;  %v1778_v42 = vld [vmem:[%s2739_s29 + $0x90] sm:$0xf]  ;;  %v2229_v44 = vld [vmem:[%s2739_s29 + $0x94] sm:$0xf] }
  0xc0   : > { %2364 = vset.pattern.permute.xlu0 %v2421_v36  ;;  %v2237_v43 = vld [vmem:[%s2739_s29 + $0xcc] sm:$0xf0]  ;;  %v1855_v45 = vor.u32 %v2246_v37, %v1852_v38  ;;  %v1780_v46 = vld [vmem:[%s2739_s29 + $0xd0] sm:$0xf0]  ;;  %v1786_v47 = vld [vmem:[%s2739_s29 + $0x98] sm:$0xf] }
  0xc1   : > { %1275 = vmatpush.bf16.msrb.mxu0 %v2099_v52  ;;  %1288 = vmatpush.bf16.msrb.mxu1 %v2103_v54  ;;  %v2238_v48 = vld [vmem:[%s2739_s29 + $0xd4] sm:$0xf0]  ;;  %v2230_v49 = vld [vmem:[%s2739_s29 + $0x9c] sm:$0xf]  ;;  %v1779_v51 = vor.u32 %v2237_v43, %v1778_v42  ;;  %v1714_v52 = vld [vmem:[%s2739_s29 + $0x10] sm:$0xf] }
  0xc2   : > { %1301 = vmatpush.bf16.msrb.mxu2 %v2107_v55  ;;  %579 = vperm.xlu0 %2364, %v576_v31   ;;  %v1788_v50 = vld [vmem:[%s2739_s29 + $0xd8] sm:$0xf0]  ;;  %v2221_v54 = vld [vmem:[%s2739_s29 + $0x4c] sm:$0xf0]  ;;  %v1783_v55 = vor.u32 %v2229_v44, %v1780_v46  ;;  %v1787_v56 = vor.u32 %v2238_v48, %v1786_v47  ;;  %v2213_v57 = vld [vmem:[%s2739_s29 + $0x14] sm:$0xf] }
  0xc3   : > { %1314 = vmatpush.bf16.msrb.mxu3 %v2111_v59  ;;  %v1716_v58 = vld [vmem:[%s2739_s29 + $0x50] sm:$0xf0]  ;;  %v1722_v59 = vld [vmem:[%s2739_s29 + $0x18] sm:$0xf]  ;;  %v1791_v60 = vor.u32 %v2230_v49, %v1788_v50  ;;  %v2214_v62 = vld [vmem:[%s2739_s29 + $0x1c] sm:$0xf] }
  0xc4   : > { %v2222_v61 = vld [vmem:[%s2739_s29 + $0x54] sm:$0xf0]  ;;  %v1724_v63 = vld [vmem:[%s2739_s29 + $0x58] sm:$0xf0]  ;;  %v2178_v0 = vld [vmem:[%s2739_s29 + $0x3a0] sm:$0xf] }
  0xc5   : > { %1276 = vmatpush.bf16.msrb.mxu0 %v2035_v1  ;;  %1289 = vmatpush.bf16.msrb.mxu1 %v2039_v2  ;;  %v2335_v1 = vld [vmem:[%s2739_s29 + $0x3dc] sm:$0xf0]  ;;  %v2327_v2 = vld [vmem:[%s2739_s29 + $0x3a4] sm:$0xf]  ;;  %v2186_v5 = vld [vmem:[%s2739_s29 + $0x3a8] sm:$0xf]  ;;  %v1723_v8 = vor.u32 %v2222_v61, %v1722_v59  ;;  %v1727_v11 = vor.u32 %v2214_v62, %v1724_v63 }
  0xc6   : > { %1302 = vmatpush.bf16.msrb.mxu2 %v2043_v3  ;;  %v1715_v3 = vor.u32 %v2221_v54, %v1714_v52  ;;  %v2180_v4 = vld [vmem:[%s2739_s29 + $0x3e0] sm:$0xf0]  ;;  %v2336_v6 = vld [vmem:[%s2739_s29 + $0x3e4] sm:$0xf0]  ;;  %v2328_v9 = vld [vmem:[%s2739_s29 + $0x3ac] sm:$0xf]  ;;  %v2179_v12 = vor.u32 %v2335_v1, %v2178_v0 }
  0xc7   : > { %1315 = vmatpush.bf16.msrb.mxu3 %v2047_v7  ;;  %v1719_v7 = vor.u32 %v2213_v57, %v1716_v58  ;;  %v2188_v10 = vld [vmem:[%s2739_s29 + $0x3e8] sm:$0xf0]  ;;  %v2319_v16 = vld [vmem:[%s2739_s29 + $0x35c] sm:$0xf0]  ;;  %v2311_v17 = vld [vmem:[%s2739_s29 + $0x324] sm:$0xf] }
  0xc8   : > { %v2191_v18 = vor.u32 %v2328_v9, %v2188_v10  ;;  %v2122_v20 = vld [vmem:[%s2739_s29 + $0x328] sm:$0xf]  ;;  %v2312_v22 = vld [vmem:[%s2739_s29 + $0x32c] sm:$0xf]  ;;  %v2295_v29 = vld [vmem:[%s2739_s29 + $0x2a4] sm:$0xf] }
  0xc9   : > { %1277 = vmatpush.bf16.msrb.mxu0 %v1971_v13  ;;  %1290 = vmatpush.bf16.msrb.mxu1 %v1975_v14  ;;  %v2183_v13 = vor.u32 %v2327_v2, %v2180_v4  ;;  %v2187_v14 = vor.u32 %v2336_v6, %v2186_v5  ;;  %v2320_v21 = vld [vmem:[%s2739_s29 + $0x364] sm:$0xf0]  ;;  %v2124_v23 = vld [vmem:[%s2739_s29 + $0x368] sm:$0xf0]  ;;  %v2052_v31 = vld [vmem:[%s2739_s29 + $0x2e0] sm:$0xf0] }
  0xca   : > { %1303 = vmatpush.bf16.msrb.mxu2 %v1979_v15  ;;  %v2114_v15 = vld [vmem:[%s2739_s29 + $0x320] sm:$0xf]  ;;  %v2123_v26 = vor.u32 %v2320_v21, %v2122_v20  ;;  %v2127_v30 = vor.u32 %v2312_v22, %v2124_v23  ;;  %v2304_v33 = vld [vmem:[%s2739_s29 + $0x2e4] sm:$0xf0]  ;;  %v2296_v34 = vld [vmem:[%s2739_s29 + $0x2ac] sm:$0xf]  ;;  %v2055_v37 = vor.u32 %v2295_v29, %v2052_v31 }
  0xcb   : > { %1316 = vmatpush.bf16.msrb.mxu3 %v1983_v19  ;;  %v2116_v19 = vld [vmem:[%s2739_s29 + $0x360] sm:$0xf0]  ;;  %v2115_v24 = vor.u32 %v2319_v16, %v2114_v15  ;;  %v2060_v35 = vld [vmem:[%s2739_s29 + $0x2e8] sm:$0xf0]  ;;  %v1994_v44 = vld [vmem:[%s2739_s29 + $0x228] sm:$0xf] }
  0xcc   : > { %v2063_v42 = vor.u32 %v2296_v34, %v2060_v35  ;;  %v1988_v43 = vld [vmem:[%s2739_s29 + $0x260] sm:$0xf0]  ;;  %v2280_v46 = vld [vmem:[%s2739_s29 + $0x22c] sm:$0xf]  ;;  %v2271_v52 = vld [vmem:[%s2739_s29 + $0x1dc] sm:$0xf0] }
  0xcd   : > { %1278 = vmatpush.bf16.msrb.mxu0 %v1907_v25  ;;  %1291 = vmatpush.bf16.msrb.mxu1 %v1911_v27  ;;  %v2119_v25 = vor.u32 %v2311_v17, %v2116_v19  ;;  %v2050_v27 = vld [vmem:[%s2739_s29 + $0x2a0] sm:$0xf]  ;;  %v1996_v47 = vld [vmem:[%s2739_s29 + $0x268] sm:$0xf0]  ;;  %v2263_v54 = vld [vmem:[%s2739_s29 + $0x1a4] sm:$0xf] }
  0xce   : > { %1304 = vmatpush.bf16.msrb.mxu2 %v1915_v28  ;;  %v2303_v28 = vld [vmem:[%s2739_s29 + $0x2dc] sm:$0xf0]  ;;  %v1930_v57 = vld [vmem:[%s2739_s29 + $0x1a8] sm:$0xf]  ;;  %v2264_v59 = vld [vmem:[%s2739_s29 + $0x1ac] sm:$0xf] }
  0xcf   : > { %1317 = vmatpush.bf16.msrb.mxu3 %v1919_v32  ;;  %v2058_v32 = vld [vmem:[%s2739_s29 + $0x2a8] sm:$0xf]  ;;  %v2051_v36 = vor.u32 %v2303_v28, %v2050_v27  ;;  %v1858_v0 = vld [vmem:[%s2739_s29 + $0x120] sm:$0xf]  ;;  %v2247_v2 = vld [vmem:[%s2739_s29 + $0x124] sm:$0xf] }
  0xd0   : > { %v2059_v38 = vor.u32 %v2304_v33, %v2058_v32  ;;  %v2272_v58 = vld [vmem:[%s2739_s29 + $0x1e4] sm:$0xf0]  ;;  %v2255_v1 = vld [vmem:[%s2739_s29 + $0x15c] sm:$0xf0]  ;;  %v1860_v4 = vld [vmem:[%s2739_s29 + $0x160] sm:$0xf0] }
  0xd1   : > { %1279 = vmatpush.bf16.msrb.mxu0 %v1843_v39  ;;  %1292 = vmatpush.bf16.msrb.mxu1 %v1847_v40  ;;  %v1986_v39 = vld [vmem:[%s2739_s29 + $0x220] sm:$0xf]  ;;  %v1931_v63 = vor.u32 %v2272_v58, %v1930_v57  ;;  %v1866_v5 = vld [vmem:[%s2739_s29 + $0x128] sm:$0xf]  ;;  %v1859_v9 = vor.u32 %v2255_v1, %v1858_v0  ;;  %v1863_v10 = vor.u32 %v2247_v2, %v1860_v4  ;;  %v1796_v16 = vld [vmem:[%s2739_s29 + $0xe0] sm:$0xf0] }
  0xd2   : > { %1305 = vmatpush.bf16.msrb.mxu2 %v1851_v41  ;;  %v2287_v40 = vld [vmem:[%s2739_s29 + $0x25c] sm:$0xf0]  ;;  %v2279_v41 = vld [vmem:[%s2739_s29 + $0x224] sm:$0xf]  ;;  %v2256_v6 = vld [vmem:[%s2739_s29 + $0x164] sm:$0xf0] }
  0xd3   : > { %1318 = vmatpush.bf16.msrb.mxu3 %v1855_v45  ;;  %v2288_v45 = vld [vmem:[%s2739_s29 + $0x264] sm:$0xf0]  ;;  %v1987_v48 = vor.u32 %v2287_v40, %v1986_v39  ;;  %v1991_v49 = vor.u32 %v2279_v41, %v1988_v43  ;;  %v2232_v19 = vld [vmem:[%s2739_s29 + $0xac] sm:$0xf]  ;;  %v1730_v22 = vld [vmem:[%s2739_s29 + $0x20] sm:$0xf] }
  0xd4   : > { %v1995_v50 = vor.u32 %v2288_v45, %v1994_v44  ;;  %v1802_v17 = vld [vmem:[%s2739_s29 + $0xa8] sm:$0xf]  ;;  %v1804_v20 = vld [vmem:[%s2739_s29 + $0xe8] sm:$0xf0]  ;;  %v2223_v23 = vld [vmem:[%s2739_s29 + $0x5c] sm:$0xf0] }
  0xd5   : > { %1280 = vmatpush.bf16.msrb.mxu0 %v1779_v51  ;;  %1293 = vmatpush.bf16.msrb.mxu1 %v1783_v55  ;;  %v1922_v51 = vld [vmem:[%s2739_s29 + $0x1a0] sm:$0xf]  ;;  %v1999_v55 = vor.u32 %v2280_v46, %v1996_v47  ;;  %v1732_v27 = vld [vmem:[%s2739_s29 + $0x60] sm:$0xf0]  ;;  %v1738_v28 = vld [vmem:[%s2739_s29 + $0x28] sm:$0xf]  ;;  %v1807_v29 = vor.u32 %v2232_v19, %v1804_v20 }
  0xd6   : > { %1306 = vmatpush.bf16.msrb.mxu2 %v1787_v56  ;;  %v1924_v56 = vld [vmem:[%s2739_s29 + $0x1e0] sm:$0xf0]  ;;  %v1923_v61 = vor.u32 %v2271_v52, %v1922_v51  ;;  %v2216_v31 = vld [vmem:[%s2739_s29 + $0x2c] sm:$0xf]  ;;  %v2194_v33 = vld [vmem:[%s2739_s29 + $0x3b0] sm:$0xf] }
  0xd7   : > { %1319 = vmatpush.bf16.msrb.mxu3 %v1791_v60  ;;  %v1932_v60 = vld [vmem:[%s2739_s29 + $0x1e8] sm:$0xf0]  ;;  %v1927_v62 = vor.u32 %v2263_v54, %v1924_v56  ;;  %v2337_v34 = vld [vmem:[%s2739_s29 + $0x3ec] sm:$0xf0]  ;;  %v2329_v35 = vld [vmem:[%s2739_s29 + $0x3b4] sm:$0xf] }
  0xd8   : > { %v1740_v32 = vld [vmem:[%s2739_s29 + $0x68] sm:$0xf0]  ;;  %v2338_v39 = vld [vmem:[%s2739_s29 + $0x3f4] sm:$0xf0]  ;;  %v2204_v43 = vld [vmem:[%s2739_s29 + $0x3f8] sm:$0xf0]  ;;  %v2195_v45 = vor.u32 %v2337_v34, %v2194_v33 }
  0xd9   : > { %1281 = vmatpush.bf16.msrb.mxu0 %v1715_v3  ;;  %1294 = vmatpush.bf16.msrb.mxu1 %v1719_v7  ;;  %v1935_v3 = vor.u32 %v2264_v59, %v1932_v60  ;;  %v2248_v7 = vld [vmem:[%s2739_s29 + $0x12c] sm:$0xf]  ;;  %v1743_v44 = vor.u32 %v2216_v31, %v1740_v32  ;;  %v2132_v52 = vld [vmem:[%s2739_s29 + $0x370] sm:$0xf0]  ;;  %v2138_v54 = vld [vmem:[%s2739_s29 + $0x338] sm:$0xf] }
  0xda   : > { %1307 = vmatpush.bf16.msrb.mxu2 %v1723_v8  ;;  %v1868_v8 = vld [vmem:[%s2739_s29 + $0x168] sm:$0xf0]  ;;  %v2314_v56 = vld [vmem:[%s2739_s29 + $0x33c] sm:$0xf]  ;;  %v2068_v1 = vld [vmem:[%s2739_s29 + $0x2f0] sm:$0xf0] }
  0xdb   : > { %1320 = vmatpush.bf16.msrb.mxu3 %v1727_v11  ;;  %v1867_v11 = vor.u32 %v2256_v6, %v1866_v5  ;;  %v1871_v15 = vor.u32 %v2248_v7, %v1868_v8  ;;  %v2140_v57 = vld [vmem:[%s2739_s29 + $0x378] sm:$0xf0]  ;;  %v2074_v2 = vld [vmem:[%s2739_s29 + $0x2b8] sm:$0xf]  ;;  %v1874_v33 = vld [vmem:[%s2739_s29 + $0x130] sm:$0xf] }
  0xdc   : > { %1295 = vmatmul.bf16.vlgmr.msrb.gmra.mxu1 %v2824_v53  ;;  %1282 = vmatmul.bf16.vlgmr.msrb.gmra.mxu0 %v2824_v53  ;;  %v2143_v0 = vor.u32 %v2314_v56, %v2140_v57  ;;  %v2298_v4 = vld [vmem:[%s2739_s29 + $0x2bc] sm:$0xf]  ;;  %v2257_v34 = vld [vmem:[%s2739_s29 + $0x16c] sm:$0xf0]  ;;  %s1695_s8 = sshll.u32 %s3080_s7, 2  ;;  %vm1598_vm0 = vcmask 1043456  }
  0xdd   : > { %1326 = vmatpush.bf16.msra.mxu0 %v2179_v12  ;;  %1339 = vmatpush.bf16.msra.mxu1 %v2183_v13  ;;  %v1794_v12 = vld [vmem:[%s2739_s29 + $0xa0] sm:$0xf]  ;;  %v2076_v5 = vld [vmem:[%s2739_s29 + $0x2f8] sm:$0xf0]  ;;  %s3032_s11 = scalar_lea.vmem %s3075_s3, %s1695_s8 }
  0xde   : > { %1352 = vmatpush.bf16.msra.mxu2 %v2187_v14  ;;  %1321 = vmatmul.bf16.vlgmr.msrb.gmra.mxu3 %v2824_v53  ;;  %v2239_v13 = vld [vmem:[%s2739_s29 + $0xdc] sm:$0xf0]  ;;  %v2231_v14 = vld [vmem:[%s2739_s29 + $0xa4] sm:$0xf] }
  0xdf   : > { %1365 = vmatpush.bf16.msra.mxu3 %v2191_v18  ;;  %1308 = vmatmul.bf16.vlgmr.msrb.gmra.mxu2 %v2824_v53  ;;  %v2240_v18 = vld [vmem:[%s2739_s29 + $0xe4] sm:$0xf0]  ;;  %v1795_v21 = vor.u32 %v2239_v13, %v1794_v12  ;;  %v2079_v12 = vor.u32 %v2298_v4, %v2076_v5  ;;  %v2004_v13 = vld [vmem:[%s2739_s29 + $0x270] sm:$0xf0] }
  0xe1   : > { %1327 = vmatpush.bf16.msra.mxu0 %v2115_v24  ;;  %1340 = vmatpush.bf16.msra.mxu1 %v2119_v25  ;;  %v1799_v24 = vor.u32 %v2231_v14, %v1796_v16  ;;  %v1803_v25 = vor.u32 %v2240_v18, %v1802_v17  ;;  %v2010_v14 = vld [vmem:[%s2739_s29 + $0x238] sm:$0xf]  ;;  %v2282_v16 = vld [vmem:[%s2739_s29 + $0x23c] sm:$0xf] }
  0xe2   : > { %1353 = vmatpush.bf16.msra.mxu2 %v2123_v26  ;;  %v2215_v26 = vld [vmem:[%s2739_s29 + $0x24] sm:$0xf]  ;;  %v2012_v17 = vld [vmem:[%s2739_s29 + $0x278] sm:$0xf0] }
  0xe3   : > { %1366 = vmatpush.bf16.msra.mxu3 %v2127_v30  ;;  %v2224_v30 = vld [vmem:[%s2739_s29 + $0x64] sm:$0xf0]  ;;  %v1735_v40 = vor.u32 %v2215_v26, %v1732_v27  ;;  %v1946_v26 = vld [vmem:[%s2739_s29 + $0x1b8] sm:$0xf] }
  0xe4   : > { %v1739_v41 = vor.u32 %v2224_v30, %v1738_v28  ;;  %v2274_v27 = vld [vmem:[%s2739_s29 + $0x1f4] sm:$0xf0]  ;;  %v2266_v28 = vld [vmem:[%s2739_s29 + $0x1bc] sm:$0xf] }
  0xe5   : > { %1328 = vmatpush.bf16.msra.mxu0 %v2051_v36  ;;  %1341 = vmatpush.bf16.msra.mxu1 %v2055_v37  ;;  %v1731_v36 = vor.u32 %v2223_v23, %v1730_v22  ;;  %v2196_v37 = vld [vmem:[%s2739_s29 + $0x3f0] sm:$0xf0]  ;;  %v2273_v22 = vld [vmem:[%s2739_s29 + $0x1ec] sm:$0xf0]  ;;  %v1947_v32 = vor.u32 %v2274_v27, %v1946_v26 }
  0xe6   : > { %1354 = vmatpush.bf16.msra.mxu2 %v2059_v38  ;;  %v2202_v38 = vld [vmem:[%s2739_s29 + $0x3b8] sm:$0xf]  ;;  %v2199_v46 = vor.u32 %v2329_v35, %v2196_v37  ;;  %v2265_v23 = vld [vmem:[%s2739_s29 + $0x1b4] sm:$0xf] }
  0xe7   : > { %1367 = vmatpush.bf16.msra.mxu3 %v2063_v42  ;;  %v2330_v42 = vld [vmem:[%s2739_s29 + $0x3bc] sm:$0xf]  ;;  %v2203_v47 = vor.u32 %v2338_v39, %v2202_v38  ;;  %v2249_v35 = vld [vmem:[%s2739_s29 + $0x134] sm:$0xf]  ;;  %v1882_v38 = vld [vmem:[%s2739_s29 + $0x138] sm:$0xf] }
  0xe8   : > { %v2207_v51 = vor.u32 %v2330_v42, %v2204_v43  ;;  %v1876_v37 = vld [vmem:[%s2739_s29 + $0x170] sm:$0xf0]  ;;  %v2258_v39 = vld [vmem:[%s2739_s29 + $0x174] sm:$0xf0]  ;;  %v1875_v42 = vor.u32 %v2257_v34, %v1874_v33 }
  0xe9   : > { %1329 = vmatpush.bf16.msra.mxu0 %v1987_v48  ;;  %1342 = vmatpush.bf16.msra.mxu1 %v1991_v49  ;;  %v2130_v48 = vld [vmem:[%s2739_s29 + $0x330] sm:$0xf]  ;;  %v1879_v43 = vor.u32 %v2249_v35, %v1876_v37 }
  0xea   : > { %1355 = vmatpush.bf16.msra.mxu2 %v1995_v50  ;;  %v2321_v49 = vld [vmem:[%s2739_s29 + $0x36c] sm:$0xf0]  ;;  %v2313_v50 = vld [vmem:[%s2739_s29 + $0x334] sm:$0xf] }
  0xeb   : > { %1368 = vmatpush.bf16.msra.mxu3 %v1999_v55  ;;  %v2322_v55 = vld [vmem:[%s2739_s29 + $0x374] sm:$0xf0]  ;;  %v2131_v58 = vor.u32 %v2321_v49, %v2130_v48  ;;  %v2135_v59 = vor.u32 %v2313_v50, %v2132_v52  ;;  %v1812_v49 = vld [vmem:[%s2739_s29 + $0xf0] sm:$0xf0]  ;;  %v2234_v52 = vld [vmem:[%s2739_s29 + $0xbc] sm:$0xf] }
  0xec   : > { %v2139_v60 = vor.u32 %v2322_v55, %v2138_v54  ;;  %v1818_v50 = vld [vmem:[%s2739_s29 + $0xb8] sm:$0xf]  ;;  %v1820_v54 = vld [vmem:[%s2739_s29 + $0xf8] sm:$0xf0] }
  0xed   : > { %1330 = vmatpush.bf16.msra.mxu0 %v1923_v61  ;;  %1343 = vmatpush.bf16.msra.mxu1 %v1927_v62  ;;  %v2066_v61 = vld [vmem:[%s2739_s29 + $0x2b0] sm:$0xf] }
  0xee   : > { %1356 = vmatpush.bf16.msra.mxu2 %v1931_v63  ;;  %v2305_v62 = vld [vmem:[%s2739_s29 + $0x2ec] sm:$0xf0]  ;;  %v2297_v63 = vld [vmem:[%s2739_s29 + $0x2b4] sm:$0xf] }
  0xef   : > { %1369 = vmatpush.bf16.msra.mxu3 %v1935_v3  ;;  %v2306_v3 = vld [vmem:[%s2739_s29 + $0x2f4] sm:$0xf0]  ;;  %v2067_v6 = vor.u32 %v2305_v62, %v2066_v61  ;;  %v2071_v7 = vor.u32 %v2297_v63, %v2068_v1  ;;  %v1823_v61 = vor.u32 %v2234_v52, %v1820_v54  ;;  %v1748_v62 = vld [vmem:[%s2739_s29 + $0x70] sm:$0xf0]  ;;  %v2218_v1 = vld [vmem:[%s2739_s29 + $0x3c] sm:$0xf] }
  0xf0   : > { %v2075_v8 = vor.u32 %v2306_v3, %v2074_v2  ;;  %v1754_v63 = vld [vmem:[%s2739_s29 + $0x38] sm:$0xf]  ;;  %v1756_v2 = vld [vmem:[%s2739_s29 + $0x78] sm:$0xf0] }
  0xf1   : > { %1331 = vmatpush.bf16.msra.mxu0 %v1859_v9  ;;  %1344 = vmatpush.bf16.msra.mxu1 %v1863_v10  ;;  %v2002_v9 = vld [vmem:[%s2739_s29 + $0x230] sm:$0xf] }
  0xf2   : > { %1357 = vmatpush.bf16.msra.mxu2 %v1867_v11  ;;  %v2289_v10 = vld [vmem:[%s2739_s29 + $0x26c] sm:$0xf0]  ;;  %v2281_v11 = vld [vmem:[%s2739_s29 + $0x234] sm:$0xf] }
  0xf3   : > { %1370 = vmatpush.bf16.msra.mxu3 %v1871_v15  ;;  %v2290_v15 = vld [vmem:[%s2739_s29 + $0x274] sm:$0xf0]  ;;  %v2003_v18 = vor.u32 %v2289_v10, %v2002_v9  ;;  %v2007_v19 = vor.u32 %v2281_v11, %v2004_v13 }
  0xf4   : > { %v2011_v20 = vor.u32 %v2290_v15, %v2010_v14 }
  0xf5   : > { %1332 = vmatpush.bf16.msra.mxu0 %v1795_v21  ;;  %1345 = vmatpush.bf16.msra.mxu1 %v1799_v24  ;;  %v1938_v21 = vld [vmem:[%s2739_s29 + $0x1b0] sm:$0xf]  ;;  %v2015_v24 = vor.u32 %v2282_v16, %v2012_v17 }
  0xf6   : > { %1358 = vmatpush.bf16.msra.mxu2 %v1803_v25  ;;  %v1940_v25 = vld [vmem:[%s2739_s29 + $0x1f0] sm:$0xf0]  ;;  %v1939_v30 = vor.u32 %v2273_v22, %v1938_v21 }
  0xf7   : > { %1371 = vmatpush.bf16.msra.mxu3 %v1807_v29  ;;  %v1948_v29 = vld [vmem:[%s2739_s29 + $0x1f8] sm:$0xf0]  ;;  %v1943_v31 = vor.u32 %v2265_v23, %v1940_v25 }
  0xf9   : > { %1333 = vmatpush.bf16.msra.mxu0 %v1731_v36  ;;  %1346 = vmatpush.bf16.msra.mxu1 %v1735_v40  ;;  %v1951_v36 = vor.u32 %v2266_v28, %v1948_v29  ;;  %v2250_v40 = vld [vmem:[%s2739_s29 + $0x13c] sm:$0xf] }
  0xfa   : > { %1359 = vmatpush.bf16.msra.mxu2 %v1739_v41  ;;  %v1884_v41 = vld [vmem:[%s2739_s29 + $0x178] sm:$0xf0] }
  0xfb   : > { %1372 = vmatpush.bf16.msra.mxu3 %v1743_v44  ;;  %v1883_v44 = vor.u32 %v2258_v39, %v1882_v38  ;;  %v1887_v48 = vor.u32 %v2250_v40, %v1884_v41 }
  0xfc   : > { %1347 = vmatmul.bf16.vlgmr.msra.gmra.mxu1 %v2824_v53  ;;  %1334 = vmatmul.bf16.vlgmr.msra.gmra.mxu0 %v2824_v53 }
  0xfd   : > { %1378 = vmatpush.bf16.msrb.mxu0 %v2195_v45  ;;  %1391 = vmatpush.bf16.msrb.mxu1 %v2199_v46  ;;  %v1810_v45 = vld [vmem:[%s2739_s29 + $0xb0] sm:$0xf] }
  0xfe   : > { %1404 = vmatpush.bf16.msrb.mxu2 %v2203_v47  ;;  %1373 = vmatmul.bf16.vlgmr.msra.gmra.mxu3 %v2824_v53  ;;  %v2241_v46 = vld [vmem:[%s2739_s29 + $0xec] sm:$0xf0]  ;;  %v2233_v47 = vld [vmem:[%s2739_s29 + $0xb4] sm:$0xf] }
  0xff   : > { %1417 = vmatpush.bf16.msrb.mxu3 %v2207_v51  ;;  %1360 = vmatmul.bf16.vlgmr.msra.gmra.mxu2 %v2824_v53  ;;  %v2242_v51 = vld [vmem:[%s2739_s29 + $0xf4] sm:$0xf0]  ;;  %v1811_v55 = vor.u32 %v2241_v46, %v1810_v45  ;;  %v1815_v56 = vor.u32 %v2233_v47, %v1812_v49 }
 0x100   : > { %v1819_v57 = vor.u32 %v2242_v51, %v1818_v50 }
 0x101   : > { %1379 = vmatpush.bf16.msrb.mxu0 %v2131_v58  ;;  %1392 = vmatpush.bf16.msrb.mxu1 %v2135_v59  ;;  %v1746_v58 = vld [vmem:[%s2739_s29 + $0x30] sm:$0xf] }
 0x102   : > { %1405 = vmatpush.bf16.msrb.mxu2 %v2139_v60  ;;  %v2225_v59 = vld [vmem:[%s2739_s29 + $0x6c] sm:$0xf0]  ;;  %v2217_v60 = vld [vmem:[%s2739_s29 + $0x34] sm:$0xf] }
 0x103   : > { %1418 = vmatpush.bf16.msrb.mxu3 %v2143_v0  ;;  %v2226_v0 = vld [vmem:[%s2739_s29 + $0x74] sm:$0xf0]  ;;  %v1747_v3 = vor.u32 %v2225_v59, %v1746_v58  ;;  %v1751_v4 = vor.u32 %v2217_v60, %v1748_v62 }
 0x104   : > { %v1755_v5 = vor.u32 %v2226_v0, %v1754_v63 }
 0x105   : > { %1380 = vmatpush.bf16.msrb.mxu0 %v2067_v6  ;;  %1393 = vmatpush.bf16.msrb.mxu1 %v2071_v7  ;;  %v1759_v6 = vor.u32 %v2218_v1, %v1756_v2 }
 0x106   : > { %1406 = vmatpush.bf16.msrb.mxu2 %v2075_v8 }
 0x107   : > { %1419 = vmatpush.bf16.msrb.mxu3 %v2079_v12 }
 0x109   : > { %1381 = vmatpush.bf16.msrb.mxu0 %v2003_v18  ;;  %1394 = vmatpush.bf16.msrb.mxu1 %v2007_v19 }
 0x10a   : > { %1407 = vmatpush.bf16.msrb.mxu2 %v2011_v20 }
 0x10b   : > { %1420 = vmatpush.bf16.msrb.mxu3 %v2015_v24 }
 0x10d   : > { %1382 = vmatpush.bf16.msrb.mxu0 %v1939_v30  ;;  %1395 = vmatpush.bf16.msrb.mxu1 %v1943_v31 }
 0x10e   : > { %1408 = vmatpush.bf16.msrb.mxu2 %v1947_v32 }
 0x10f   : > { %1421 = vmatpush.bf16.msrb.mxu3 %v1951_v36 }
 0x111   : > { %1383 = vmatpush.bf16.msrb.mxu0 %v1875_v42  ;;  %1396 = vmatpush.bf16.msrb.mxu1 %v1879_v43 }
 0x112   : > { %1409 = vmatpush.bf16.msrb.mxu2 %v1883_v44 }
 0x113   : > { %1422 = vmatpush.bf16.msrb.mxu3 %v1887_v48 }
 0x115   : > { %1384 = vmatpush.bf16.msrb.mxu0 %v1811_v55  ;;  %1397 = vmatpush.bf16.msrb.mxu1 %v1815_v56 }
 0x116   : > { %1410 = vmatpush.bf16.msrb.mxu2 %v1819_v57 }
 0x117   : > { %1423 = vmatpush.bf16.msrb.mxu3 %v1823_v61 }
 0x119   : > { %1385 = vmatpush.bf16.msrb.mxu0 %v1747_v3  ;;  %1398 = vmatpush.bf16.msrb.mxu1 %v1751_v4 }
 0x11a   : > { %1411 = vmatpush.bf16.msrb.mxu2 %v1755_v5 }
 0x11b   : > { %1424 = vmatpush.bf16.msrb.mxu3 %v1759_v6 }
 0x11c   : > { %1386 = vmatmul.bf16.vlgmr.msrb.gmra.mxu0 %v2824_v53  ;;  %1399 = vmatmul.bf16.vlgmr.msrb.gmra.mxu1 %v2824_v53 }
 0x11d   : > { %1412 = vmatmul.bf16.vlgmr.msrb.gmra.mxu2 %v2824_v53 }
 0x11e   : > { %1425 = vmatmul.bf16.vlgmr.msrb.gmra.mxu3 %v2824_v53 }
 0x134   : > { %v3021_v8 = vpop.permute.xlu0 %579 }
 0x139   : > { %v1244_v7 = vpop.f32.mrf.mxu1  ;;  %v1231_v10 = vpop.f32.mrf.mxu0 }
 0x13a   : > { %v1245_v9 = vadd.f32 %v1244_v7, %v3021_v8  ;;  %v1232_v12 = vadd.f32 %v1231_v10, %v3021_v8 }
 0x13c   : > { %v1464_v11 = vmul.f32 1.442695, %v1245_v9  ;;  %v1462_v15 = vmul.f32 1.442695, %v1232_v12  ;;  %v1431_v22 = vmax.f32 %v1245_v9, 0.0  ;;  %v1430_v26 = vmax.f32 %v1232_v12, 0.0 }
 0x13e   : > { %2365 = vpow2.f32 %v1464_v11  ;;  %v1447_v31 = vmul.f32 1.050701, %v1431_v22  ;;  %v1446_v37 = vmul.f32 1.050701, %v1430_v26 }
 0x13f   : > { %2367 = vpow2.f32 %v1462_v15 }
 0x141   : > { %v1270_v14 = vpop.f32.mrf.mxu3  ;;  %v1246_v53 = vpop.f32.mrf.mxu1 }
 0x142   : > { %v1257_v13 = vpop.f32.mrf.mxu2  ;;  %v1271_v16 = vadd.f32 %v1270_v14, %v3021_v8  ;;  %v1233_v20 = vpop.f32.mrf.mxu0 }
 0x143   : > { %v1258_v17 = vadd.f32 %v1257_v13, %v3021_v8 }
 0x144   : > { %v1468_v18 = vmul.f32 1.442695, %v1271_v16  ;;  %v2366_v21 = vpop.eup %2365  ;;  %v1433_v35 = vmax.f32 %v1271_v16, 0.0 }
 0x145   : > { %v1466_v19 = vmul.f32 1.442695, %v1258_v17  ;;  %v1495_v23 = vsub.f32 1.0, %v2366_v21  ;;  %v2368_v25 = vpop.eup %2367  ;;  %v1432_v40 = vmax.f32 %v1258_v17, 0.0 }
 0x146   : > { %2369 = vpow2.f32 %v1468_v18  ;;  %v1494_v29 = vsub.f32 1.0, %v2368_v25  ;;  %v1449_v46 = vmul.f32 1.050701, %v1433_v35 }
 0x147   : > { %2371 = vpow2.f32 %v1466_v19  ;;  %v1511_v28 = vmax.f32 %v1495_v23, 0.0  ;;  %v1448_v50 = vmul.f32 1.050701, %v1432_v40 }
 0x148   : > { %v1510_v33 = vmax.f32 %v1494_v29, 0.0 }
 0x149   : > { %v1272_v27 = vpop.f32.mrf.mxu3  ;;  %v1527_v32 = vsub.f32 0.0, %v1511_v28 }
 0x14a   : > { %v1259_v24 = vpop.f32.mrf.mxu2  ;;  %v1526_v39 = vsub.f32 0.0, %v1510_v33 }
 0x14b   : > { %v1543_v38 = vmul.f32 1.7580993, %v1527_v32 }
 0x14c   : > { %v2370_v30 = vpop.eup %2369  ;;  %v1542_v44 = vmul.f32 1.7580993, %v1526_v39 }
 0x14d   : > { %v2372_v34 = vpop.eup %2371  ;;  %v1497_v36 = vsub.f32 1.0, %v2370_v30  ;;  %v1559_v43 = vadd.f32 %v1543_v38, %v1447_v31 }
 0x14e   : > { %v1496_v41 = vsub.f32 1.0, %v2372_v34  ;;  %v1558_v49 = vadd.f32 %v1542_v44, %v1446_v37 }
 0x14f   : > { %v1513_v42 = vmax.f32 %v1497_v36, 0.0  ;;  %v1590_v48 = vrot.slane %v1559_v43, 4 }
 0x150   : > { %v1512_v45 = vmax.f32 %v1496_v41, 0.0 }
 0x151   : > { %v1529_v47 = vsub.f32 0.0, %v1513_v42  ;;  %v1599_v54 = vsel %vm1598_vm0, %v1558_v49, %v1590_v48 }
 0x152   : > { %v1528_v51 = vsub.f32 0.0, %v1512_v45  ;;  %1615 = vst [vmem:[%s3032_s11] sm:$0xff] %v1599_v54 }
 0x153   : > { %v1545_v52 = vmul.f32 1.7580993, %v1529_v47 }
 0x154   : > { %v1544_v55 = vmul.f32 1.7580993, %v1528_v51 }
 0x155   : > { %v1561_v56 = vadd.f32 %v1545_v52, %v1449_v46 }
 0x156   : > { %v1560_v57 = vadd.f32 %v1544_v55, %v1448_v50 }
 0x157   : > { %v1591_v58 = vrot.slane %v1561_v56, 4 }
 0x159   : > { %v1600_v59 = vsel %vm1598_vm0, %v1560_v57, %v1591_v58  ;;  %v1296_v60 = vpop.f32.mrf.mxu1  ;;  %v1283_v63 = vpop.f32.mrf.mxu0 }
 0x15a   : > { %1616 = vst [vmem:[%s3032_s11 + $0x8] sm:$0xff] %v1600_v59  ;;  %v1297_v61 = vadd.f32 %v1296_v60, %v3021_v8  ;;  %v1284_v0 = vadd.f32 %v1283_v63, %v3021_v8 }
 0x15c   : > { %v1472_v62 = vmul.f32 1.442695, %v1297_v61  ;;  %v1470_v3 = vmul.f32 1.442695, %v1284_v0  ;;  %v1435_v12 = vmax.f32 %v1297_v61, 0.0  ;;  %v1434_v53 = vmax.f32 %v1284_v0, 0.0 }
 0x15e   : > { %2373 = vpow2.f32 %v1472_v62  ;;  %v1451_v20 = vmul.f32 1.050701, %v1435_v12  ;;  %v1450_v29 = vmul.f32 1.050701, %v1434_v53 }
 0x15f   : > { %2375 = vpow2.f32 %v1470_v3 }
 0x161   : > { %v1322_v2 = vpop.f32.mrf.mxu3  ;;  %v1298_v7 = vpop.f32.mrf.mxu1 }
 0x162   : > { %v1309_v1 = vpop.f32.mrf.mxu2  ;;  %v1323_v5 = vadd.f32 %v1322_v2, %v3021_v8  ;;  %v1285_v11 = vpop.f32.mrf.mxu0 }
 0x163   : > { %v1310_v4 = vadd.f32 %v1309_v1, %v3021_v8 }
 0x164   : > { %v1476_v9 = vmul.f32 1.442695, %v1323_v5  ;;  %v2374_v10 = vpop.eup %2373  ;;  %v1437_v26 = vmax.f32 %v1323_v5, 0.0 }
 0x165   : > { %v1474_v6 = vmul.f32 1.442695, %v1310_v4  ;;  %v1499_v13 = vsub.f32 1.0, %v2374_v10  ;;  %v2376_v15 = vpop.eup %2375  ;;  %v1436_v28 = vmax.f32 %v1310_v4, 0.0 }
 0x166   : > { %v1498_v18 = vsub.f32 1.0, %v2376_v15  ;;  %v1453_v37 = vmul.f32 1.050701, %v1437_v26 }
 0x167   : > { %2377 = vpow2.f32 %v1474_v6  ;;  %v1515_v16 = vmax.f32 %v1499_v13, 0.0  ;;  %v1452_v39 = vmul.f32 1.050701, %v1436_v28 }
 0x168   : > { %2379 = vpow2.f32 %v1476_v9  ;;  %v1514_v23 = vmax.f32 %v1498_v18, 0.0 }
 0x169   : > { %v1324_v17 = vpop.f32.mrf.mxu3  ;;  %v1531_v21 = vsub.f32 0.0, %v1515_v16 }
 0x16a   : > { %v1311_v14 = vpop.f32.mrf.mxu2  ;;  %v1530_v30 = vsub.f32 0.0, %v1514_v23 }
 0x16b   : > { %v1547_v25 = vmul.f32 1.7580993, %v1531_v21 }
 0x16c   : > { %v1546_v34 = vmul.f32 1.7580993, %v1530_v30 }
 0x16d   : > { %v2378_v19 = vpop.eup %2377  ;;  %v1563_v32 = vadd.f32 %v1547_v25, %v1451_v20 }
 0x16e   : > { %v2380_v22 = vpop.eup %2379  ;;  %v1500_v24 = vsub.f32 1.0, %v2378_v19  ;;  %v1562_v40 = vadd.f32 %v1546_v34, %v1450_v29 }
 0x16f   : > { %v1501_v27 = vsub.f32 1.0, %v2380_v22  ;;  %v1592_v36 = vrot.slane %v1563_v32, 4 }
 0x170   : > { %v1516_v31 = vmax.f32 %v1500_v24, 0.0 }
 0x171   : > { %v1517_v33 = vmax.f32 %v1501_v27, 0.0  ;;  %v1601_v43 = vsel %vm1598_vm0, %v1562_v40, %v1592_v36 }
 0x172   : > { %v1532_v35 = vsub.f32 0.0, %v1516_v31  ;;  %1617 = vst [vmem:[%s3032_s11 + $0x10] sm:$0xff] %v1601_v43 }
 0x173   : > { %v1533_v38 = vsub.f32 0.0, %v1517_v33 }
 0x174   : > { %v1548_v41 = vmul.f32 1.7580993, %v1532_v35 }
 0x175   : > { %v1549_v42 = vmul.f32 1.7580993, %v1533_v38 }
 0x176   : > { %v1564_v45 = vadd.f32 %v1548_v41, %v1452_v39 }
 0x177   : > { %v1565_v44 = vadd.f32 %v1549_v42, %v1453_v37 }
 0x179   : > { %v1593_v46 = vrot.slane %v1565_v44, 4  ;;  %v1348_v48 = vpop.f32.mrf.mxu1  ;;  %v1335_v51 = vpop.f32.mrf.mxu0 }
 0x17a   : > { %v1349_v49 = vadd.f32 %v1348_v48, %v3021_v8  ;;  %v1336_v52 = vadd.f32 %v1335_v51, %v3021_v8 }
 0x17b   : > { %v1602_v47 = vsel %vm1598_vm0, %v1564_v45, %v1593_v46 }
 0x17c   : > { %1618 = vst [vmem:[%s3032_s11 + $0x18] sm:$0xff] %v1602_v47  ;;  %v1480_v50 = vmul.f32 1.442695, %v1349_v49  ;;  %v1478_v56 = vmul.f32 1.442695, %v1336_v52  ;;  %v1439_v0 = vmax.f32 %v1349_v49, 0.0 }
 0x17d   : > { %v1438_v6 = vmax.f32 %v1336_v52, 0.0 }
 0x17e   : > { %2381 = vpow2.f32 %v1480_v50  ;;  %v1455_v10 = vmul.f32 1.050701, %v1439_v0 }
 0x17f   : > { %2383 = vpow2.f32 %v1478_v56  ;;  %v1454_v18 = vmul.f32 1.050701, %v1438_v6 }
 0x181   : > { %v1374_v55 = vpop.f32.mrf.mxu3  ;;  %v1350_v60 = vpop.f32.mrf.mxu1 }
 0x182   : > { %v1361_v54 = vpop.f32.mrf.mxu2  ;;  %v1375_v58 = vadd.f32 %v1374_v55, %v3021_v8  ;;  %v1337_v63 = vpop.f32.mrf.mxu0 }
 0x183   : > { %v1362_v57 = vadd.f32 %v1361_v54, %v3021_v8 }
 0x184   : > { %v1484_v61 = vmul.f32 1.442695, %v1375_v58  ;;  %v2382_v62 = vpop.eup %2381  ;;  %v1441_v16 = vmax.f32 %v1375_v58, 0.0 }
 0x185   : > { %v1482_v59 = vmul.f32 1.442695, %v1362_v57  ;;  %v1503_v1 = vsub.f32 1.0, %v2382_v62  ;;  %v2384_v3 = vpop.eup %2383  ;;  %v1440_v53 = vmax.f32 %v1362_v57, 0.0 }
 0x186   : > { %v1502_v7 = vsub.f32 1.0, %v2384_v3  ;;  %v1457_v26 = vmul.f32 1.050701, %v1441_v16 }
 0x187   : > { %2385 = vpow2.f32 %v1482_v59  ;;  %v1519_v4 = vmax.f32 %v1503_v1, 0.0  ;;  %v1456_v28 = vmul.f32 1.050701, %v1440_v53 }
 0x188   : > { %2387 = vpow2.f32 %v1484_v61  ;;  %v1518_v13 = vmax.f32 %v1502_v7, 0.0 }
 0x189   : > { %v1376_v5 = vpop.f32.mrf.mxu3  ;;  %v1535_v11 = vsub.f32 0.0, %v1519_v4 }
 0x18a   : > { %v1363_v2 = vpop.f32.mrf.mxu2  ;;  %v1534_v19 = vsub.f32 0.0, %v1518_v13 }
 0x18b   : > { %v1551_v15 = vmul.f32 1.7580993, %v1535_v11 }
 0x18c   : > { %v1550_v23 = vmul.f32 1.7580993, %v1534_v19 }
 0x18d   : > { %v2386_v9 = vpop.eup %2385  ;;  %v1567_v21 = vadd.f32 %v1551_v15, %v1455_v10 }
 0x18e   : > { %v2388_v12 = vpop.eup %2387  ;;  %v1504_v14 = vsub.f32 1.0, %v2386_v9  ;;  %v1566_v29 = vadd.f32 %v1550_v23, %v1454_v18 }
 0x18f   : > { %v1505_v17 = vsub.f32 1.0, %v2388_v12  ;;  %v1594_v25 = vrot.slane %v1567_v21, 4 }
 0x190   : > { %v1520_v20 = vmax.f32 %v1504_v14, 0.0 }
 0x191   : > { %v1521_v22 = vmax.f32 %v1505_v17, 0.0  ;;  %v1603_v32 = vsel %vm1598_vm0, %v1566_v29, %v1594_v25 }
 0x192   : > { %v1536_v24 = vsub.f32 0.0, %v1520_v20  ;;  %1619 = vst [vmem:[%s3032_s11 + $0x20] sm:$0xff] %v1603_v32 }
 0x193   : > { %v1537_v27 = vsub.f32 0.0, %v1521_v22 }
 0x194   : > { %v1552_v30 = vmul.f32 1.7580993, %v1536_v24 }
 0x195   : > { %v1553_v31 = vmul.f32 1.7580993, %v1537_v27 }
 0x196   : > { %v1568_v34 = vadd.f32 %v1552_v30, %v1456_v28 }
 0x197   : > { %v1569_v33 = vadd.f32 %v1553_v31, %v1457_v26 }
 0x199   : > { %v1595_v35 = vrot.slane %v1569_v33, 4  ;;  %v1387_v36 = vpop.f32.mrf.mxu0  ;;  %v1400_v38 = vpop.f32.mrf.mxu1 }
 0x19a   : > { %v1388_v37 = vadd.f32 %v1387_v36, %v3021_v8  ;;  %v1401_v40 = vadd.f32 %v1400_v38, %v3021_v8 }
 0x19b   : > { %v1604_v39 = vsel %vm1598_vm0, %v1568_v34, %v1595_v35 }
 0x19c   : > { %1620 = vst [vmem:[%s3032_s11 + $0x28] sm:$0xff] %v1604_v39  ;;  %v1486_v41 = vmul.f32 1.442695, %v1388_v37  ;;  %v1488_v42 = vmul.f32 1.442695, %v1401_v40  ;;  %v1443_v57 = vmax.f32 %v1401_v40, 0.0 }
 0x19d   : > { %v1442_v62 = vmax.f32 %v1388_v37, 0.0 }
 0x19e   : > { %2389 = vpow2.f32 %v1486_v41  ;;  %v1459_v1 = vmul.f32 1.050701, %v1443_v57 }
 0x19f   : > { %2391 = vpow2.f32 %v1488_v42  ;;  %v1458_v6 = vmul.f32 1.050701, %v1442_v62 }
 0x1a0   : > { %v1413_v43 = vpop.f32.mrf.mxu2 }
 0x1a1   : > { %v1414_v44 = vadd.f32 %v1413_v43, %v3021_v8  ;;  %v1426_v45 = vpop.f32.mrf.mxu3  ;;  %v1389_v46 = vpop.f32.mrf.mxu0 }
 0x1a2   : > { %v1427_v47 = vadd.f32 %v1426_v45, %v3021_v8  ;;  %v1402_v48 = vpop.f32.mrf.mxu1 }
 0x1a3   : > { %v1490_v49 = vmul.f32 1.442695, %v1414_v44  ;;  %v1444_v15 = vmax.f32 %v1414_v44, 0.0 }
 0x1a4   : > { %v2390_v50 = vpop.eup %2389  ;;  %v1492_v51 = vmul.f32 1.442695, %v1427_v47  ;;  %v1445_v10 = vmax.f32 %v1427_v47, 0.0 }
 0x1a5   : > { %v2392_v52 = vpop.eup %2391  ;;  %v1506_v54 = vsub.f32 1.0, %v2390_v50  ;;  %2393 = vpow2.f32 %v1490_v49  ;;  %v1460_v20 = vmul.f32 1.050701, %v1444_v15 }
 0x1a6   : > { %v1507_v55 = vsub.f32 1.0, %v2392_v52  ;;  %2395 = vpow2.f32 %v1492_v51  ;;  %v1461_v53 = vmul.f32 1.050701, %v1445_v10 }
 0x1a7   : > { %v1522_v56 = vmax.f32 %v1506_v54, 0.0 }
 0x1a8   : > { %v1523_v58 = vmax.f32 %v1507_v55, 0.0  ;;  %v1415_v59 = vpop.f32.mrf.mxu2 }
 0x1a9   : > { %v1538_v60 = vsub.f32 0.0, %v1522_v56  ;;  %v1428_v61 = vpop.f32.mrf.mxu3 }
 0x1aa   : > { %v1539_v63 = vsub.f32 0.0, %v1523_v58 }
 0x1ab   : > { %v2394_v0 = vpop.eup %2393  ;;  %v1554_v2 = vmul.f32 1.7580993, %v1538_v60 }
 0x1ac   : > { %v2396_v8 = vpop.eup %2395  ;;  %v1555_v3 = vmul.f32 1.7580993, %v1539_v63  ;;  %v1508_v4 = vsub.f32 1.0, %v2394_v0 }
 0x1ad   : > { %v1509_v5 = vsub.f32 1.0, %v2396_v8  ;;  %v1570_v12 = vadd.f32 %v1554_v2, %v1458_v6 }
 0x1ae   : > { %v1571_v7 = vadd.f32 %v1555_v3, %v1459_v1  ;;  %v1524_v9 = vmax.f32 %v1508_v4, 0.0 }
 0x1af   : > { %v1525_v11 = vmax.f32 %v1509_v5, 0.0 }
 0x1b0   : > { %v1596_v13 = vrot.slane %v1571_v7, 4  ;;  %v1540_v14 = vsub.f32 0.0, %v1524_v9 }
 0x1b1   : > { %v1541_v16 = vsub.f32 0.0, %v1525_v11 }
 0x1b2   : > { %v1605_v17 = vsel %vm1598_vm0, %v1570_v12, %v1596_v13  ;;  %v1556_v18 = vmul.f32 1.7580993, %v1540_v14 }
 0x1b3   : > { %1621 = vst [vmem:[%s3032_s11 + $0x30] sm:$0xff] %v1605_v17  ;;  %v1557_v19 = vmul.f32 1.7580993, %v1541_v16 }
 0x1b4   : > { %v1572_v22 = vadd.f32 %v1556_v18, %v1460_v20 }
 0x1b5   : > { %v1573_v21 = vadd.f32 %v1557_v19, %v1461_v53 }
 0x1b7   : > { %v1597_v23 = vrot.slane %v1573_v21, 4 }
 0x1b9   : > { %v1606_v24 = vsel %vm1598_vm0, %v1572_v22, %v1597_v23 }
 0x1ba   : > { %1622 = vst [vmem:[%s3032_s11 + $0x38] sm:$0xff] %v1606_v24 }
 0x1bb PF: > { %p10_p9 = scmp.ge.s32.totalorder %s2459_s16, 22   ;;  %s3076_s12 = smov %s2415_s13 }
 0x1bc   : > { %s3077_s13 = smov %s2468_s19  ;;  %s3078_s14 = smov %s2459_s16 }
 0x1bd   :  { %12 = sbr.rel (!%p10_p9) target bundleno = 2 (0x2), region = 90 }

// kernel: ipn_forward.11
= control target key start
LH: loop header
LB: loop body
LE: loop exit
PB: predicated region body
PF: predicated region fallthrough
CT: control target
= control target key end

     0   :  { %s2442_s12 = smov 0   ;;  %s2444_s13 = smov 0   ;;  %s3072_s0 = inlined_call_operand.vmem [shape: bf16[4,128], index: 0, kind: input, shape index: {}]   ;;  %s3073_s1 = inlined_call_operand.vmem [shape: bf16[128,8192], index: 1, kind: input, shape index: {}]   ;;  %s3074_s2 = inlined_call_operand.vmem [shape: f32[4,1], index: 2, kind: input, shape index: {}]   ;;  %s3075_s3 = inlined_call_operand.vmem [shape: f32[4,8192], index: 3, kind: output, shape index: {}]  }
   0x1   :  { %s2446_s14 = smov 0  }
   0x2 LB: > { %s1685_s15 = sadd.s32 4294967295, %s2419_s14   ;;  %s2459_s16 = sadd.s32 1, %s2419_s14   ;;  %s2419_s14 = sphi %s2446_s14, %s3078_s14   ;;  %s2415_s13 = sphi %s2444_s13, %s3077_s13   ;;  %s2411_s12 = sphi %s2442_s12, %s3076_s12  }
   0x3   : > { %s38_s17 = ssub.s32 %s2419_s14, %s2459_s16  ;;  %s41_s18 = sadd.s32 1, %s2415_s13 }
   0x4   : > { %p39_p0 = scmp.eq.s32.totalorder %s38_s17, 0  ;;  %p48_p1 = scmp.ne.s32.totalorder %s2415_s13, %s2411_s12 }
   0x5   : > { %p49_p2 = scmp.eq.s32.totalorder %s2419_s14, 0  ;;  %p1688_p4 = scmp.ge.s32.totalorder %s2419_s14, 4 }
   0x6   : > { %s2468_s19 = scalar_select %p39_p0, %s2415_s13, %s41_s18  }
   0x7   : > { %p50_p3 = por %p49_p2, %p48_p1  ;;  %127 = sbr.rel (%p1688_p4) target bundleno = 144 (0x90), region = 24 }
   0xc   : > { %130 = sbr.rel (!%p50_p3) target bundleno = 144 (0x90), region = 28  ;;  %s132_s20 = sand.u32 (%p50_p3), 1, %s2415_s13  }
   0xd   : > { %s2210_s21 = sshll.u32 (%p50_p3), %s2419_s14, 6  ;;  %s1689_s22 = sshll.u32 (%p50_p3), %s132_s20, 10 }
   0xe   : > { %s2476_s25 = scalar_lea.vmem (%p50_p3), %s3073_s1, %s2210_s21  ;;  %s2481_s26 = scalar_lea.vmem (%p50_p3), [#allocation2], %s1689_s22 }
   0xf   : > { %v150_v0 = vld [vmem:[%s2476_s25] sm:$0xff] (%p50_p3)  ;;  %v152_v1 = vld [vmem:[%s2476_s25 + $0x8] sm:$0xff] (%p50_p3)  ;;  %v154_v2 = vld [vmem:[%s2476_s25 + $0x10] sm:$0xff] (%p50_p3) }
  0x10   : > { %151 = vst [vmem:[%s2481_s26] sm:$0xff] (%p50_p3), %v150_v0  ;;  %v156_v3 = vld [vmem:[%s2476_s25 + $0x18] sm:$0xff] (%p50_p3)  ;;  %v158_v4 = vld [vmem:[%s2476_s25 + $0x20] sm:$0xff] (%p50_p3)  ;;  %v160_v5 = vld [vmem:[%s2476_s25 + $0x28] sm:$0xff] (%p50_p3) }
  0x11   : > { %153 = vst [vmem:[%s2481_s26 + $0x8] sm:$0xff] %v152_v1  ;;  %v162_v6 = vld [vmem:[%s2476_s25 + $0x30] sm:$0xff]  ;;  %v164_v7 = vld [vmem:[%s2476_s25 + $0x38] sm:$0xff]  ;;  %v166_v8 = vld [vmem:[%s2476_s25 + $0x100] sm:$0xff] }
  0x12   : > { %155 = vst [vmem:[%s2481_s26 + $0x10] sm:$0xff] %v154_v2  ;;  %v168_v9 = vld [vmem:[%s2476_s25 + $0x108] sm:$0xff]  ;;  %v170_v10 = vld [vmem:[%s2476_s25 + $0x110] sm:$0xff]  ;;  %v172_v11 = vld [vmem:[%s2476_s25 + $0x118] sm:$0xff] }
  0x13   : > { %157 = vst [vmem:[%s2481_s26 + $0x18] sm:$0xff] %v156_v3  ;;  %v174_v12 = vld [vmem:[%s2476_s25 + $0x120] sm:$0xff]  ;;  %v176_v13 = vld [vmem:[%s2476_s25 + $0x128] sm:$0xff]  ;;  %v178_v14 = vld [vmem:[%s2476_s25 + $0x130] sm:$0xff] }
  0x14   : > { %159 = vst [vmem:[%s2481_s26 + $0x20] sm:$0xff] %v158_v4  ;;  %v180_v15 = vld [vmem:[%s2476_s25 + $0x138] sm:$0xff]  ;;  %v182_v16 = vld [vmem:[%s2476_s25 + $0x200] sm:$0xff]  ;;  %v184_v17 = vld [vmem:[%s2476_s25 + $0x208] sm:$0xff] }
  0x15   : > { %161 = vst [vmem:[%s2481_s26 + $0x28] sm:$0xff] %v160_v5  ;;  %v186_v18 = vld [vmem:[%s2476_s25 + $0x210] sm:$0xff]  ;;  %v188_v19 = vld [vmem:[%s2476_s25 + $0x218] sm:$0xff]  ;;  %v190_v20 = vld [vmem:[%s2476_s25 + $0x220] sm:$0xff] }
  0x16   : > { %163 = vst [vmem:[%s2481_s26 + $0x30] sm:$0xff] %v162_v6  ;;  %v192_v21 = vld [vmem:[%s2476_s25 + $0x228] sm:$0xff]  ;;  %v194_v22 = vld [vmem:[%s2476_s25 + $0x230] sm:$0xff]  ;;  %v196_v23 = vld [vmem:[%s2476_s25 + $0x238] sm:$0xff] }
  0x17   : > { %165 = vst [vmem:[%s2481_s26 + $0x38] sm:$0xff] %v164_v7  ;;  %v198_v24 = vld [vmem:[%s2476_s25 + $0x300] sm:$0xff]  ;;  %v200_v25 = vld [vmem:[%s2476_s25 + $0x308] sm:$0xff]  ;;  %v202_v26 = vld [vmem:[%s2476_s25 + $0x310] sm:$0xff] }
  0x18   : > { %167 = vst [vmem:[%s2481_s26 + $0x40] sm:$0xff] %v166_v8  ;;  %v204_v27 = vld [vmem:[%s2476_s25 + $0x318] sm:$0xff]  ;;  %v206_v28 = vld [vmem:[%s2476_s25 + $0x320] sm:$0xff]  ;;  %v208_v29 = vld [vmem:[%s2476_s25 + $0x328] sm:$0xff] }
  0x19   : > { %169 = vst [vmem:[%s2481_s26 + $0x48] sm:$0xff] %v168_v9  ;;  %v210_v30 = vld [vmem:[%s2476_s25 + $0x330] sm:$0xff]  ;;  %v212_v31 = vld [vmem:[%s2476_s25 + $0x338] sm:$0xff]  ;;  %v214_v32 = vld [vmem:[%s2476_s25 + $0x400] sm:$0xff] }
  0x1a   : > { %171 = vst [vmem:[%s2481_s26 + $0x50] sm:$0xff] %v170_v10  ;;  %v216_v33 = vld [vmem:[%s2476_s25 + $0x408] sm:$0xff]  ;;  %v218_v34 = vld [vmem:[%s2476_s25 + $0x410] sm:$0xff]  ;;  %v220_v35 = vld [vmem:[%s2476_s25 + $0x418] sm:$0xff] }
  0x1b   : > { %173 = vst [vmem:[%s2481_s26 + $0x58] sm:$0xff] %v172_v11  ;;  %v222_v36 = vld [vmem:[%s2476_s25 + $0x420] sm:$0xff]  ;;  %v224_v37 = vld [vmem:[%s2476_s25 + $0x428] sm:$0xff]  ;;  %v226_v38 = vld [vmem:[%s2476_s25 + $0x430] sm:$0xff] }
  0x1c   : > { %175 = vst [vmem:[%s2481_s26 + $0x60] sm:$0xff] %v174_v12  ;;  %v228_v39 = vld [vmem:[%s2476_s25 + $0x438] sm:$0xff]  ;;  %v230_v40 = vld [vmem:[%s2476_s25 + $0x500] sm:$0xff]  ;;  %v232_v41 = vld [vmem:[%s2476_s25 + $0x508] sm:$0xff] }
  0x1d   : > { %177 = vst [vmem:[%s2481_s26 + $0x68] sm:$0xff] %v176_v13  ;;  %v234_v42 = vld [vmem:[%s2476_s25 + $0x510] sm:$0xff]  ;;  %v236_v43 = vld [vmem:[%s2476_s25 + $0x518] sm:$0xff]  ;;  %v238_v44 = vld [vmem:[%s2476_s25 + $0x520] sm:$0xff] }
  0x1e   : > { %179 = vst [vmem:[%s2481_s26 + $0x70] sm:$0xff] %v178_v14  ;;  %v240_v45 = vld [vmem:[%s2476_s25 + $0x528] sm:$0xff]  ;;  %v242_v46 = vld [vmem:[%s2476_s25 + $0x530] sm:$0xff]  ;;  %v244_v47 = vld [vmem:[%s2476_s25 + $0x538] sm:$0xff] }
  0x1f   : > { %181 = vst [vmem:[%s2481_s26 + $0x78] sm:$0xff] %v180_v15  ;;  %v246_v48 = vld [vmem:[%s2476_s25 + $0x600] sm:$0xff]  ;;  %v248_v49 = vld [vmem:[%s2476_s25 + $0x608] sm:$0xff]  ;;  %v250_v50 = vld [vmem:[%s2476_s25 + $0x610] sm:$0xff] }
  0x20   : > { %183 = vst [vmem:[%s2481_s26 + $0x80] sm:$0xff] %v182_v16  ;;  %v252_v51 = vld [vmem:[%s2476_s25 + $0x618] sm:$0xff]  ;;  %v254_v52 = vld [vmem:[%s2476_s25 + $0x620] sm:$0xff]  ;;  %v256_v53 = vld [vmem:[%s2476_s25 + $0x628] sm:$0xff] }
  0x21   : > { %185 = vst [vmem:[%s2481_s26 + $0x88] sm:$0xff] %v184_v17  ;;  %v258_v54 = vld [vmem:[%s2476_s25 + $0x630] sm:$0xff]  ;;  %v260_v55 = vld [vmem:[%s2476_s25 + $0x638] sm:$0xff]  ;;  %v262_v56 = vld [vmem:[%s2476_s25 + $0x700] sm:$0xff] }
  0x22   : > { %187 = vst [vmem:[%s2481_s26 + $0x90] sm:$0xff] %v186_v18  ;;  %v264_v57 = vld [vmem:[%s2476_s25 + $0x708] sm:$0xff]  ;;  %v266_v58 = vld [vmem:[%s2476_s25 + $0x710] sm:$0xff]  ;;  %v268_v59 = vld [vmem:[%s2476_s25 + $0x718] sm:$0xff] }
  0x23   : > { %189 = vst [vmem:[%s2481_s26 + $0x98] sm:$0xff] %v188_v19  ;;  %v270_v60 = vld [vmem:[%s2476_s25 + $0x720] sm:$0xff]  ;;  %v272_v61 = vld [vmem:[%s2476_s25 + $0x728] sm:$0xff]  ;;  %v274_v62 = vld [vmem:[%s2476_s25 + $0x730] sm:$0xff] }
  0x24   : > { %191 = vst [vmem:[%s2481_s26 + $0xa0] sm:$0xff] %v190_v20  ;;  %v276_v63 = vld [vmem:[%s2476_s25 + $0x738] sm:$0xff]  ;;  %v278_v0 = vld [vmem:[%s2476_s25 + $0x800] sm:$0xff]  ;;  %v280_v1 = vld [vmem:[%s2476_s25 + $0x808] sm:$0xff] }
  0x25   : > { %193 = vst [vmem:[%s2481_s26 + $0xa8] sm:$0xff] %v192_v21  ;;  %v282_v2 = vld [vmem:[%s2476_s25 + $0x810] sm:$0xff]  ;;  %v284_v3 = vld [vmem:[%s2476_s25 + $0x818] sm:$0xff]  ;;  %v286_v4 = vld [vmem:[%s2476_s25 + $0x820] sm:$0xff] }
  0x26   : > { %195 = vst [vmem:[%s2481_s26 + $0xb0] sm:$0xff] %v194_v22  ;;  %v288_v5 = vld [vmem:[%s2476_s25 + $0x828] sm:$0xff]  ;;  %v290_v6 = vld [vmem:[%s2476_s25 + $0x830] sm:$0xff]  ;;  %v292_v7 = vld [vmem:[%s2476_s25 + $0x838] sm:$0xff] }
  0x27   : > { %197 = vst [vmem:[%s2481_s26 + $0xb8] sm:$0xff] %v196_v23  ;;  %v294_v8 = vld [vmem:[%s2476_s25 + $0x900] sm:$0xff]  ;;  %v296_v9 = vld [vmem:[%s2476_s25 + $0x908] sm:$0xff]  ;;  %v298_v10 = vld [vmem:[%s2476_s25 + $0x910] sm:$0xff] }
  0x28   : > { %199 = vst [vmem:[%s2481_s26 + $0xc0] sm:$0xff] %v198_v24  ;;  %v300_v11 = vld [vmem:[%s2476_s25 + $0x918] sm:$0xff]  ;;  %v302_v12 = vld [vmem:[%s2476_s25 + $0x920] sm:$0xff]  ;;  %v304_v13 = vld [vmem:[%s2476_s25 + $0x928] sm:$0xff] }
  0x29   : > { %201 = vst [vmem:[%s2481_s26 + $0xc8] sm:$0xff] %v200_v25  ;;  %v306_v14 = vld [vmem:[%s2476_s25 + $0x930] sm:$0xff]  ;;  %v308_v15 = vld [vmem:[%s2476_s25 + $0x938] sm:$0xff]  ;;  %v310_v16 = vld [vmem:[%s2476_s25 + $0xa00] sm:$0xff] }
  0x2a   : > { %203 = vst [vmem:[%s2481_s26 + $0xd0] sm:$0xff] %v202_v26  ;;  %v312_v17 = vld [vmem:[%s2476_s25 + $0xa08] sm:$0xff]  ;;  %v314_v18 = vld [vmem:[%s2476_s25 + $0xa10] sm:$0xff]  ;;  %v316_v19 = vld [vmem:[%s2476_s25 + $0xa18] sm:$0xff] }
  0x2b   : > { %205 = vst [vmem:[%s2481_s26 + $0xd8] sm:$0xff] %v204_v27  ;;  %v318_v20 = vld [vmem:[%s2476_s25 + $0xa20] sm:$0xff]  ;;  %v320_v21 = vld [vmem:[%s2476_s25 + $0xa28] sm:$0xff]  ;;  %v322_v22 = vld [vmem:[%s2476_s25 + $0xa30] sm:$0xff] }
  0x2c   : > { %207 = vst [vmem:[%s2481_s26 + $0xe0] sm:$0xff] %v206_v28  ;;  %v324_v23 = vld [vmem:[%s2476_s25 + $0xa38] sm:$0xff]  ;;  %v326_v24 = vld [vmem:[%s2476_s25 + $0xb00] sm:$0xff]  ;;  %v328_v25 = vld [vmem:[%s2476_s25 + $0xb08] sm:$0xff] }
  0x2d   : > { %209 = vst [vmem:[%s2481_s26 + $0xe8] sm:$0xff] %v208_v29  ;;  %v330_v26 = vld [vmem:[%s2476_s25 + $0xb10] sm:$0xff]  ;;  %v332_v27 = vld [vmem:[%s2476_s25 + $0xb18] sm:$0xff]  ;;  %v334_v28 = vld [vmem:[%s2476_s25 + $0xb20] sm:$0xff] }
  0x2e   : > { %211 = vst [vmem:[%s2481_s26 + $0xf0] sm:$0xff] %v210_v30  ;;  %v336_v29 = vld [vmem:[%s2476_s25 + $0xb28] sm:$0xff]  ;;  %v338_v30 = vld [vmem:[%s2476_s25 + $0xb30] sm:$0xff] }
  0x2f   : > { %213 = vst [vmem:[%s2481_s26 + $0xf8] sm:$0xff] %v212_v31  ;;  %v340_v31 = vld [vmem:[%s2476_s25 + $0xb38] sm:$0xff] }
  0x30   : > { %215 = vst [vmem:[%s2481_s26 + $0x100] sm:$0xff] %v214_v32  ;;  %v342_v32 = vld [vmem:[%s2476_s25 + $0xc00] sm:$0xff] }
  0x31   : > { %217 = vst [vmem:[%s2481_s26 + $0x108] sm:$0xff] %v216_v33  ;;  %v344_v33 = vld [vmem:[%s2476_s25 + $0xc08] sm:$0xff] }
  0x32   : > { %219 = vst [vmem:[%s2481_s26 + $0x110] sm:$0xff] %v218_v34  ;;  %v346_v34 = vld [vmem:[%s2476_s25 + $0xc10] sm:$0xff] }
  0x33   : > { %221 = vst [vmem:[%s2481_s26 + $0x118] sm:$0xff] %v220_v35  ;;  %v348_v35 = vld [vmem:[%s2476_s25 + $0xc18] sm:$0xff] }
  0x34   : > { %223 = vst [vmem:[%s2481_s26 + $0x120] sm:$0xff] %v222_v36  ;;  %v350_v36 = vld [vmem:[%s2476_s25 + $0xc20] sm:$0xff] }
  0x35   : > { %225 = vst [vmem:[%s2481_s26 + $0x128] sm:$0xff] %v224_v37  ;;  %v352_v37 = vld [vmem:[%s2476_s25 + $0xc28] sm:$0xff] }
  0x36   : > { %227 = vst [vmem:[%s2481_s26 + $0x130] sm:$0xff] %v226_v38  ;;  %v354_v38 = vld [vmem:[%s2476_s25 + $0xc30] sm:$0xff] }
  0x37   : > { %229 = vst [vmem:[%s2481_s26 + $0x138] sm:$0xff] %v228_v39  ;;  %v356_v39 = vld [vmem:[%s2476_s25 + $0xc38] sm:$0xff] }
  0x38   : > { %231 = vst [vmem:[%s2481_s26 + $0x140] sm:$0xff] %v230_v40  ;;  %v358_v40 = vld [vmem:[%s2476_s25 + $0xd00] sm:$0xff] }
  0x39   : > { %233 = vst [vmem:[%s2481_s26 + $0x148] sm:$0xff] %v232_v41  ;;  %v360_v41 = vld [vmem:[%s2476_s25 + $0xd08] sm:$0xff] }
  0x3a   : > { %235 = vst [vmem:[%s2481_s26 + $0x150] sm:$0xff] %v234_v42  ;;  %v362_v42 = vld [vmem:[%s2476_s25 + $0xd10] sm:$0xff] }
  0x3b   : > { %237 = vst [vmem:[%s2481_s26 + $0x158] sm:$0xff] %v236_v43  ;;  %v364_v43 = vld [vmem:[%s2476_s25 + $0xd18] sm:$0xff] }
  0x3c   : > { %239 = vst [vmem:[%s2481_s26 + $0x160] sm:$0xff] %v238_v44  ;;  %v366_v44 = vld [vmem:[%s2476_s25 + $0xd20] sm:$0xff] }
  0x3d   : > { %241 = vst [vmem:[%s2481_s26 + $0x168] sm:$0xff] %v240_v45  ;;  %v368_v45 = vld [vmem:[%s2476_s25 + $0xd28] sm:$0xff] }
  0x3e   : > { %243 = vst [vmem:[%s2481_s26 + $0x170] sm:$0xff] %v242_v46  ;;  %v370_v46 = vld [vmem:[%s2476_s25 + $0xd30] sm:$0xff] }
  0x3f   : > { %245 = vst [vmem:[%s2481_s26 + $0x178] sm:$0xff] %v244_v47  ;;  %v372_v47 = vld [vmem:[%s2476_s25 + $0xd38] sm:$0xff] }
  0x40   : > { %247 = vst [vmem:[%s2481_s26 + $0x180] sm:$0xff] %v246_v48  ;;  %v374_v48 = vld [vmem:[%s2476_s25 + $0xe00] sm:$0xff] }
  0x41   : > { %249 = vst [vmem:[%s2481_s26 + $0x188] sm:$0xff] %v248_v49  ;;  %v376_v49 = vld [vmem:[%s2476_s25 + $0xe08] sm:$0xff] }
  0x42   : > { %251 = vst [vmem:[%s2481_s26 + $0x190] sm:$0xff] %v250_v50  ;;  %v378_v50 = vld [vmem:[%s2476_s25 + $0xe10] sm:$0xff] }
  0x43   : > { %253 = vst [vmem:[%s2481_s26 + $0x198] sm:$0xff] %v252_v51  ;;  %v380_v51 = vld [vmem:[%s2476_s25 + $0xe18] sm:$0xff] }
  0x44   : > { %255 = vst [vmem:[%s2481_s26 + $0x1a0] sm:$0xff] %v254_v52  ;;  %v382_v52 = vld [vmem:[%s2476_s25 + $0xe20] sm:$0xff] }
  0x45   : > { %257 = vst [vmem:[%s2481_s26 + $0x1a8] sm:$0xff] %v256_v53  ;;  %v384_v53 = vld [vmem:[%s2476_s25 + $0xe28] sm:$0xff] }
  0x46   : > { %259 = vst [vmem:[%s2481_s26 + $0x1b0] sm:$0xff] %v258_v54  ;;  %v386_v54 = vld [vmem:[%s2476_s25 + $0xe30] sm:$0xff] }
  0x47   : > { %261 = vst [vmem:[%s2481_s26 + $0x1b8] sm:$0xff] %v260_v55  ;;  %v388_v55 = vld [vmem:[%s2476_s25 + $0xe38] sm:$0xff] }
  0x48   : > { %263 = vst [vmem:[%s2481_s26 + $0x1c0] sm:$0xff] %v262_v56  ;;  %v390_v56 = vld [vmem:[%s2476_s25 + $0xf00] sm:$0xff] }
  0x49   : > { %265 = vst [vmem:[%s2481_s26 + $0x1c8] sm:$0xff] %v264_v57  ;;  %v392_v57 = vld [vmem:[%s2476_s25 + $0xf08] sm:$0xff] }
  0x4a   : > { %267 = vst [vmem:[%s2481_s26 + $0x1d0] sm:$0xff] %v266_v58  ;;  %v394_v58 = vld [vmem:[%s2476_s25 + $0xf10] sm:$0xff] }
  0x4b   : > { %269 = vst [vmem:[%s2481_s26 + $0x1d8] sm:$0xff] %v268_v59  ;;  %v396_v59 = vld [vmem:[%s2476_s25 + $0xf18] sm:$0xff] }
  0x4c   : > { %271 = vst [vmem:[%s2481_s26 + $0x1e0] sm:$0xff] %v270_v60  ;;  %v398_v60 = vld [vmem:[%s2476_s25 + $0xf20] sm:$0xff] }
  0x4d   : > { %273 = vst [vmem:[%s2481_s26 + $0x1e8] sm:$0xff] %v272_v61  ;;  %v400_v61 = vld [vmem:[%s2476_s25 + $0xf28] sm:$0xff] }
  0x4e   : > { %275 = vst [vmem:[%s2481_s26 + $0x1f0] sm:$0xff] %v274_v62  ;;  %v402_v62 = vld [vmem:[%s2476_s25 + $0xf30] sm:$0xff] }
  0x4f   : > { %277 = vst [vmem:[%s2481_s26 + $0x1f8] sm:$0xff] %v276_v63  ;;  %v404_v63 = vld [vmem:[%s2476_s25 + $0xf38] sm:$0xff] }
  0x50   : > { %279 = vst [vmem:[%s2481_s26 + $0x200] sm:$0xff] %v278_v0 }
  0x51   : > { %281 = vst [vmem:[%s2481_s26 + $0x208] sm:$0xff] %v280_v1 }
  0x52   : > { %283 = vst [vmem:[%s2481_s26 + $0x210] sm:$0xff] %v282_v2 }
  0x53   : > { %285 = vst [vmem:[%s2481_s26 + $0x218] sm:$0xff] %v284_v3 }
  0x54   : > { %287 = vst [vmem:[%s2481_s26 + $0x220] sm:$0xff] %v286_v4 }
  0x55   : > { %289 = vst [vmem:[%s2481_s26 + $0x228] sm:$0xff] %v288_v5 }
  0x56   : > { %291 = vst [vmem:[%s2481_s26 + $0x230] sm:$0xff] %v290_v6 }
  0x57   : > { %293 = vst [vmem:[%s2481_s26 + $0x238] sm:$0xff] %v292_v7 }
  0x58   : > { %295 = vst [vmem:[%s2481_s26 + $0x240] sm:$0xff] %v294_v8 }
  0x59   : > { %297 = vst [vmem:[%s2481_s26 + $0x248] sm:$0xff] %v296_v9 }
  0x5a   : > { %299 = vst [vmem:[%s2481_s26 + $0x250] sm:$0xff] %v298_v10 }
  0x5b   : > { %301 = vst [vmem:[%s2481_s26 + $0x258] sm:$0xff] %v300_v11 }
  0x5c   : > { %303 = vst [vmem:[%s2481_s26 + $0x260] sm:$0xff] %v302_v12 }
  0x5d   : > { %305 = vst [vmem:[%s2481_s26 + $0x268] sm:$0xff] %v304_v13 }
  0x5e   : > { %307 = vst [vmem:[%s2481_s26 + $0x270] sm:$0xff] %v306_v14 }
  0x5f   : > { %309 = vst [vmem:[%s2481_s26 + $0x278] sm:$0xff] %v308_v15 }
  0x60   : > { %311 = vst [vmem:[%s2481_s26 + $0x280] sm:$0xff] %v310_v16 }
  0x61   : > { %313 = vst [vmem:[%s2481_s26 + $0x288] sm:$0xff] %v312_v17 }
  0x62   : > { %315 = vst [vmem:[%s2481_s26 + $0x290] sm:$0xff] %v314_v18 }
  0x63   : > { %317 = vst [vmem:[%s2481_s26 + $0x298] sm:$0xff] %v316_v19 }
  0x64   : > { %319 = vst [vmem:[%s2481_s26 + $0x2a0] sm:$0xff] %v318_v20 }
  0x65   : > { %321 = vst [vmem:[%s2481_s26 + $0x2a8] sm:$0xff] %v320_v21 }
  0x66   : > { %323 = vst [vmem:[%s2481_s26 + $0x2b0] sm:$0xff] %v322_v22 }
  0x67   : > { %325 = vst [vmem:[%s2481_s26 + $0x2b8] sm:$0xff] %v324_v23 }
  0x68   : > { %327 = vst [vmem:[%s2481_s26 + $0x2c0] sm:$0xff] %v326_v24 }
  0x69   : > { %329 = vst [vmem:[%s2481_s26 + $0x2c8] sm:$0xff] %v328_v25 }
  0x6a   : > { %331 = vst [vmem:[%s2481_s26 + $0x2d0] sm:$0xff] %v330_v26 }
  0x6b   : > { %333 = vst [vmem:[%s2481_s26 + $0x2d8] sm:$0xff] %v332_v27 }
  0x6c   : > { %335 = vst [vmem:[%s2481_s26 + $0x2e0] sm:$0xff] %v334_v28 }
  0x6d   : > { %337 = vst [vmem:[%s2481_s26 + $0x2e8] sm:$0xff] %v336_v29 }
  0x6e   : > { %339 = vst [vmem:[%s2481_s26 + $0x2f0] sm:$0xff] %v338_v30 }
  0x6f   : > { %341 = vst [vmem:[%s2481_s26 + $0x2f8] sm:$0xff] %v340_v31 }
  0x70   : > { %343 = vst [vmem:[%s2481_s26 + $0x300] sm:$0xff] %v342_v32 }
  0x71   : > { %345 = vst [vmem:[%s2481_s26 + $0x308] sm:$0xff] %v344_v33 }
  0x72   : > { %347 = vst [vmem:[%s2481_s26 + $0x310] sm:$0xff] %v346_v34 }
  0x73   : > { %349 = vst [vmem:[%s2481_s26 + $0x318] sm:$0xff] %v348_v35 }
  0x74   : > { %351 = vst [vmem:[%s2481_s26 + $0x320] sm:$0xff] %v350_v36 }
  0x75   : > { %353 = vst [vmem:[%s2481_s26 + $0x328] sm:$0xff] %v352_v37 }
  0x76   : > { %355 = vst [vmem:[%s2481_s26 + $0x330] sm:$0xff] %v354_v38 }
  0x77   : > { %357 = vst [vmem:[%s2481_s26 + $0x338] sm:$0xff] %v356_v39 }
  0x78   : > { %359 = vst [vmem:[%s2481_s26 + $0x340] sm:$0xff] %v358_v40 }
  0x79   : > { %361 = vst [vmem:[%s2481_s26 + $0x348] sm:$0xff] %v360_v41 }
  0x7a   : > { %363 = vst [vmem:[%s2481_s26 + $0x350] sm:$0xff] %v362_v42 }
  0x7b   : > { %365 = vst [vmem:[%s2481_s26 + $0x358] sm:$0xff] %v364_v43 }
  0x7c   : > { %367 = vst [vmem:[%s2481_s26 + $0x360] sm:$0xff] %v366_v44 }
  0x7d   : > { %369 = vst [vmem:[%s2481_s26 + $0x368] sm:$0xff] %v368_v45 }
  0x7e   : > { %371 = vst [vmem:[%s2481_s26 + $0x370] sm:$0xff] %v370_v46 }
  0x7f   : > { %373 = vst [vmem:[%s2481_s26 + $0x378] sm:$0xff] %v372_v47 }
  0x80   : > { %375 = vst [vmem:[%s2481_s26 + $0x380] sm:$0xff] %v374_v48 }
  0x81   : > { %377 = vst [vmem:[%s2481_s26 + $0x388] sm:$0xff] %v376_v49 }
  0x82   : > { %379 = vst [vmem:[%s2481_s26 + $0x390] sm:$0xff] %v378_v50 }
  0x83   : > { %381 = vst [vmem:[%s2481_s26 + $0x398] sm:$0xff] %v380_v51 }
  0x84   : > { %383 = vst [vmem:[%s2481_s26 + $0x3a0] sm:$0xff] %v382_v52 }
  0x85   : > { %385 = vst [vmem:[%s2481_s26 + $0x3a8] sm:$0xff] %v384_v53 }
  0x86   : > { %387 = vst [vmem:[%s2481_s26 + $0x3b0] sm:$0xff] %v386_v54 }
  0x87   : > { %389 = vst [vmem:[%s2481_s26 + $0x3b8] sm:$0xff] %v388_v55 }
  0x88   : > { %391 = vst [vmem:[%s2481_s26 + $0x3c0] sm:$0xff] %v390_v56 }
  0x89   : > { %393 = vst [vmem:[%s2481_s26 + $0x3c8] sm:$0xff] %v392_v57 }
  0x8a   : > { %395 = vst [vmem:[%s2481_s26 + $0x3d0] sm:$0xff] %v394_v58 }
  0x8b   : > { %397 = vst [vmem:[%s2481_s26 + $0x3d8] sm:$0xff] %v396_v59 }
  0x8c   : > { %399 = vst [vmem:[%s2481_s26 + $0x3e0] sm:$0xff] %v398_v60 }
  0x8d   : > { %401 = vst [vmem:[%s2481_s26 + $0x3e8] sm:$0xff] %v400_v61 }
  0x8e   : > { %403 = vst [vmem:[%s2481_s26 + $0x3f0] sm:$0xff] %v402_v62 }
  0x8f   : > { %405 = vst [vmem:[%s2481_s26 + $0x3f8] sm:$0xff] %v404_v63 }
  0x90 PF: > { %p1692_p5 = scmp.ge.s32.totalorder %s2419_s14, 1  ;;  %p410_p6 = scmp.lt.s32.totalorder %s2419_s14, 5 }
  0x92   : > { %p411_p7 = pnand %p1692_p5, %p410_p6 }
  0x93   : > { %s417_s27 = sand.u32 (!%p411_p7), 1, %s2411_s12   ;;  %s1694_s7 = sshll.u32 (!%p411_p7), %s1685_s15, 4 }
  0x94   : > { %414 = sbr.rel (%p411_p7) target bundleno = 443 (0x1bb), region = 51  ;;  %s1693_s28 = sshll.u32 (!%p411_p7), %s417_s27, 10 }
  0x95   : > { %s2739_s29 = scalar_lea.vmem (!%p411_p7), [#allocation2], %s1693_s28  ;;  %p442_p8 = scmp.lt.s32.totalorder (!%p411_p7), %s1694_s7, 63 }
  0x99   : > { %v2146_v0 = vld [vmem:[%s2739_s29 + $0x380] sm:$0xf]  ;;  %v2323_v2 = vld [vmem:[%s2739_s29 + $0x384] sm:$0xf]  ;;  %v2154_v5 = vld [vmem:[%s2739_s29 + $0x388] sm:$0xf] }
  0x9a   : > { %v2331_v1 = vld [vmem:[%s2739_s29 + $0x3bc] sm:$0xf0]  ;;  %v2148_v4 = vld [vmem:[%s2739_s29 + $0x3c0] sm:$0xf0]  ;;  %v2332_v6 = vld [vmem:[%s2739_s29 + $0x3c4] sm:$0xf0] }
  0x9b   : > { %v2147_v3 = vor.u32 %v2331_v1, %v2146_v0  ;;  %v2151_v7 = vor.u32 %v2323_v2, %v2148_v4  ;;  %v2155_v8 = vor.u32 %v2332_v6, %v2154_v5  ;;  %v2324_v9 = vld [vmem:[%s2739_s29 + $0x38c] sm:$0xf]  ;;  %v2082_v11 = vld [vmem:[%s2739_s29 + $0x300] sm:$0xf]  ;;  %v2307_v14 = vld [vmem:[%s2739_s29 + $0x304] sm:$0xf] }
  0x9c   : > { %v2156_v10 = vld [vmem:[%s2739_s29 + $0x3c8] sm:$0xf0]  ;;  %v2315_v13 = vld [vmem:[%s2739_s29 + $0x33c] sm:$0xf0]  ;;  %v2084_v15 = vld [vmem:[%s2739_s29 + $0x340] sm:$0xf0] }
  0x9d   : > { %1222 = vmatpush.bf16.msra.mxu0 %v2147_v3  ;;  %v2159_v12 = vor.u32 %v2324_v9, %v2156_v10  ;;  %1235 = vmatpush.bf16.msra.mxu1 %v2151_v7  ;;  %v2083_v16 = vor.u32 %v2315_v13, %v2082_v11  ;;  %v2087_v17 = vor.u32 %v2307_v14, %v2084_v15  ;;  %v2090_v18 = vld [vmem:[%s2739_s29 + $0x308] sm:$0xf]  ;;  %v2308_v20 = vld [vmem:[%s2739_s29 + $0x30c] sm:$0xf]  ;;  %v2018_v23 = vld [vmem:[%s2739_s29 + $0x280] sm:$0xf] }
  0x9e   : > { %1248 = vmatpush.bf16.msra.mxu2 %v2155_v8  ;;  %v2316_v19 = vld [vmem:[%s2739_s29 + $0x344] sm:$0xf0]  ;;  %v2092_v22 = vld [vmem:[%s2739_s29 + $0x348] sm:$0xf0]  ;;  %v2299_v24 = vld [vmem:[%s2739_s29 + $0x2bc] sm:$0xf0] }
  0x9f   : > { %1261 = vmatpush.bf16.msra.mxu3 %v2159_v12  ;;  %v2091_v21 = vor.u32 %v2316_v19, %v2090_v18  ;;  %v2095_v25 = vor.u32 %v2308_v20, %v2092_v22  ;;  %v2291_v26 = vld [vmem:[%s2739_s29 + $0x284] sm:$0xf]  ;;  %v2026_v28 = vld [vmem:[%s2739_s29 + $0x288] sm:$0xf]  ;;  %v2019_v29 = vor.u32 %v2299_v24, %v2018_v23  ;;  %v2292_v31 = vld [vmem:[%s2739_s29 + $0x28c] sm:$0xf] }
  0xa0   : > { %v2020_v27 = vld [vmem:[%s2739_s29 + $0x2c0] sm:$0xf0]  ;;  %v2300_v30 = vld [vmem:[%s2739_s29 + $0x2c4] sm:$0xf0]  ;;  %v2028_v32 = vld [vmem:[%s2739_s29 + $0x2c8] sm:$0xf0] }
  0xa1   : > { %1223 = vmatpush.bf16.msra.mxu0 %v2083_v16  ;;  %1236 = vmatpush.bf16.msra.mxu1 %v2087_v17  ;;  %v2023_v33 = vor.u32 %v2291_v26, %v2020_v27  ;;  %v2027_v34 = vor.u32 %v2300_v30, %v2026_v28  ;;  %v1954_v35 = vld [vmem:[%s2739_s29 + $0x200] sm:$0xf]  ;;  %v2275_v37 = vld [vmem:[%s2739_s29 + $0x204] sm:$0xf]  ;;  %v2031_v38 = vor.u32 %v2292_v31, %v2028_v32  ;;  %v1962_v40 = vld [vmem:[%s2739_s29 + $0x208] sm:$0xf] }
  0xa2   : > { %1249 = vmatpush.bf16.msra.mxu2 %v2091_v21  ;;  %v2283_v36 = vld [vmem:[%s2739_s29 + $0x23c] sm:$0xf0]  ;;  %v1956_v39 = vld [vmem:[%s2739_s29 + $0x240] sm:$0xf0]  ;;  %v2284_v41 = vld [vmem:[%s2739_s29 + $0x244] sm:$0xf0] }
  0xa3   : > { %1262 = vmatpush.bf16.msra.mxu3 %v2095_v25  ;;  %v2276_v42 = vld [vmem:[%s2739_s29 + $0x20c] sm:$0xf]  ;;  %v1955_v44 = vor.u32 %v2283_v36, %v1954_v35  ;;  %v1959_v45 = vor.u32 %v2275_v37, %v1956_v39  ;;  %v1963_v46 = vor.u32 %v2284_v41, %v1962_v40  ;;  %v1890_v47 = vld [vmem:[%s2739_s29 + $0x180] sm:$0xf]  ;;  %v2259_v49 = vld [vmem:[%s2739_s29 + $0x184] sm:$0xf] }
  0xa4   : > { %v1964_v43 = vld [vmem:[%s2739_s29 + $0x248] sm:$0xf0]  ;;  %v2267_v48 = vld [vmem:[%s2739_s29 + $0x1bc] sm:$0xf0]  ;;  %v1892_v51 = vld [vmem:[%s2739_s29 + $0x1c0] sm:$0xf0] }
  0xa5   : > { %1224 = vmatpush.bf16.msra.mxu0 %v2019_v29  ;;  %1237 = vmatpush.bf16.msra.mxu1 %v2023_v33  ;;  %v1967_v50 = vor.u32 %v2276_v42, %v1964_v43  ;;  %v1898_v52 = vld [vmem:[%s2739_s29 + $0x188] sm:$0xf]  ;;  %v2260_v54 = vld [vmem:[%s2739_s29 + $0x18c] sm:$0xf]  ;;  %v1891_v56 = vor.u32 %v2267_v48, %v1890_v47  ;;  %v1895_v57 = vor.u32 %v2259_v49, %v1892_v51  ;;  %v1826_v59 = vld [vmem:[%s2739_s29 + $0x100] sm:$0xf] }
  0xa6   : > { %1250 = vmatpush.bf16.msra.mxu2 %v2027_v34  ;;  %v2268_v53 = vld [vmem:[%s2739_s29 + $0x1c4] sm:$0xf0]  ;;  %v1900_v55 = vld [vmem:[%s2739_s29 + $0x1c8] sm:$0xf0]  ;;  %v2251_v60 = vld [vmem:[%s2739_s29 + $0x13c] sm:$0xf0] }
  0xa7   : > { %1263 = vmatpush.bf16.msra.mxu3 %v2031_v38  ;;  %v1899_v58 = vor.u32 %v2268_v53, %v1898_v52  ;;  %v2243_v61 = vld [vmem:[%s2739_s29 + $0x104] sm:$0xf]  ;;  %v1903_v62 = vor.u32 %v2260_v54, %v1900_v55  ;;  %v1834_v0 = vld [vmem:[%s2739_s29 + $0x108] sm:$0xf]  ;;  %v2244_v2 = vld [vmem:[%s2739_s29 + $0x10c] sm:$0xf]  ;;  %v1827_v4 = vor.u32 %v2251_v60, %v1826_v59 }
  0xa8   : > { %v1828_v63 = vld [vmem:[%s2739_s29 + $0x140] sm:$0xf0]  ;;  %v2252_v1 = vld [vmem:[%s2739_s29 + $0x144] sm:$0xf0]  ;;  %v1836_v3 = vld [vmem:[%s2739_s29 + $0x148] sm:$0xf0] }
  0xa9   : > { %1225 = vmatpush.bf16.msra.mxu0 %v1955_v44  ;;  %1238 = vmatpush.bf16.msra.mxu1 %v1959_v45  ;;  %v1831_v5 = vor.u32 %v2243_v61, %v1828_v63  ;;  %v1835_v6 = vor.u32 %v2252_v1, %v1834_v0  ;;  %v1762_v7 = vld [vmem:[%s2739_s29 + $0x80] sm:$0xf]  ;;  %v2227_v9 = vld [vmem:[%s2739_s29 + $0x84] sm:$0xf]  ;;  %v1839_v10 = vor.u32 %v2244_v2, %v1836_v3  ;;  %v1770_v12 = vld [vmem:[%s2739_s29 + $0x88] sm:$0xf] }
  0xaa   : > { %1251 = vmatpush.bf16.msra.mxu2 %v1963_v46  ;;  %v2235_v8 = vld [vmem:[%s2739_s29 + $0xbc] sm:$0xf0]  ;;  %v1764_v11 = vld [vmem:[%s2739_s29 + $0xc0] sm:$0xf0]  ;;  %v2236_v13 = vld [vmem:[%s2739_s29 + $0xc4] sm:$0xf0] }
  0xab   : > { %1264 = vmatpush.bf16.msra.mxu3 %v1967_v50  ;;  %v2228_v14 = vld [vmem:[%s2739_s29 + $0x8c] sm:$0xf]  ;;  %v1763_v16 = vor.u32 %v2235_v8, %v1762_v7  ;;  %v1698_v17 = vld [vmem:[%s2739_s29] sm:$0xf]  ;;  %v1767_v19 = vor.u32 %v2227_v9, %v1764_v11  ;;  %v1771_v20 = vor.u32 %v2236_v13, %v1770_v12  ;;  %v2211_v21 = vld [vmem:[%s2739_s29 + $0x4] sm:$0xf] }
  0xac   : > { %v1772_v15 = vld [vmem:[%s2739_s29 + $0xc8] sm:$0xf0]  ;;  %v2219_v18 = vld [vmem:[%s2739_s29 + $0x3c] sm:$0xf0]  ;;  %v1700_v22 = vld [vmem:[%s2739_s29 + $0x40] sm:$0xf0] }
  0xad   : > { %1226 = vmatpush.bf16.msra.mxu0 %v1891_v56  ;;  %1239 = vmatpush.bf16.msra.mxu1 %v1895_v57  ;;  %v1706_v23 = vld [vmem:[%s2739_s29 + $0x8] sm:$0xf]  ;;  %v1775_v24 = vor.u32 %v2228_v14, %v1772_v15  ;;  %v2212_v26 = vld [vmem:[%s2739_s29 + $0xc] sm:$0xf]  ;;  %v2162_v28 = vld [vmem:[%s2739_s29 + $0x390] sm:$0xf]  ;;  %v1699_v31 = vor.u32 %v2219_v18, %v1698_v17  ;;  %v1703_v35 = vor.u32 %v2211_v21, %v1700_v22 }
  0xae   : > { %1252 = vmatpush.bf16.msra.mxu2 %v1899_v58  ;;  %v2220_v25 = vld [vmem:[%s2739_s29 + $0x44] sm:$0xf0]  ;;  %v1708_v27 = vld [vmem:[%s2739_s29 + $0x48] sm:$0xf0]  ;;  %v2333_v29 = vld [vmem:[%s2739_s29 + $0x3cc] sm:$0xf0] }
  0xaf   : > { %1265 = vmatpush.bf16.msra.mxu3 %v1903_v62  ;;  %v2325_v30 = vld [vmem:[%s2739_s29 + $0x394] sm:$0xf]  ;;  %v2170_v33 = vld [vmem:[%s2739_s29 + $0x398] sm:$0xf]  ;;  %v1707_v36 = vor.u32 %v2220_v25, %v1706_v23  ;;  %v2326_v37 = vld [vmem:[%s2739_s29 + $0x39c] sm:$0xf]  ;;  %v1711_v39 = vor.u32 %v2212_v26, %v1708_v27  ;;  %v2163_v40 = vor.u32 %v2333_v29, %v2162_v28 }
  0xb0   : > { %v2164_v32 = vld [vmem:[%s2739_s29 + $0x3d0] sm:$0xf0]  ;;  %v2334_v34 = vld [vmem:[%s2739_s29 + $0x3d4] sm:$0xf0]  ;;  %v2172_v38 = vld [vmem:[%s2739_s29 + $0x3d8] sm:$0xf0] }
  0xb1   : > { %1227 = vmatpush.bf16.msra.mxu0 %v1827_v4  ;;  %1240 = vmatpush.bf16.msra.mxu1 %v1831_v5  ;;  %v2167_v41 = vor.u32 %v2325_v30, %v2164_v32  ;;  %v2171_v42 = vor.u32 %v2334_v34, %v2170_v33  ;;  %v2098_v43 = vld [vmem:[%s2739_s29 + $0x310] sm:$0xf]  ;;  %v2309_v45 = vld [vmem:[%s2739_s29 + $0x314] sm:$0xf]  ;;  %v2175_v46 = vor.u32 %v2326_v37, %v2172_v38  ;;  %v2106_v48 = vld [vmem:[%s2739_s29 + $0x318] sm:$0xf] }
  0xb2   : > { %1253 = vmatpush.bf16.msra.mxu2 %v1835_v6  ;;  %v2317_v44 = vld [vmem:[%s2739_s29 + $0x34c] sm:$0xf0]  ;;  %v2100_v47 = vld [vmem:[%s2739_s29 + $0x350] sm:$0xf0]  ;;  %v2318_v49 = vld [vmem:[%s2739_s29 + $0x354] sm:$0xf0] }
  0xb3   : > { %1266 = vmatpush.bf16.msra.mxu3 %v1839_v10  ;;  %v2310_v50 = vld [vmem:[%s2739_s29 + $0x31c] sm:$0xf]  ;;  %v2099_v52 = vor.u32 %v2317_v44, %v2098_v43  ;;  %v2824_v53 = vld [vmem:[%s3072_s0] sm:$0x3]  ;;  %v2103_v54 = vor.u32 %v2309_v45, %v2100_v47  ;;  %v2107_v55 = vor.u32 %v2318_v49, %v2106_v48  ;;  %v2034_v56 = vld [vmem:[%s2739_s29 + $0x290] sm:$0xf] }
  0xb4   : > { %v2108_v51 = vld [vmem:[%s2739_s29 + $0x358] sm:$0xf0]  ;;  %v2301_v57 = vld [vmem:[%s2739_s29 + $0x2cc] sm:$0xf0]  ;;  %v2293_v58 = vld [vmem:[%s2739_s29 + $0x294] sm:$0xf] }
  0xb5   : > { %1228 = vmatpush.bf16.msra.mxu0 %v1763_v16  ;;  %1241 = vmatpush.bf16.msra.mxu1 %v1767_v19  ;;  %v2111_v59 = vor.u32 %v2310_v50, %v2108_v51  ;;  %v2036_v60 = vld [vmem:[%s2739_s29 + $0x2d0] sm:$0xf0]  ;;  %v2042_v61 = vld [vmem:[%s2739_s29 + $0x298] sm:$0xf]  ;;  %v2294_v63 = vld [vmem:[%s2739_s29 + $0x29c] sm:$0xf]  ;;  %v2035_v1 = vor.u32 %v2301_v57, %v2034_v56 }
  0xb6   : > { %1254 = vmatpush.bf16.msra.mxu2 %v1771_v20  ;;  %v2302_v62 = vld [vmem:[%s2739_s29 + $0x2d4] sm:$0xf0]  ;;  %v2044_v0 = vld [vmem:[%s2739_s29 + $0x2d8] sm:$0xf0]  ;;  %v2039_v2 = vor.u32 %v2293_v58, %v2036_v60  ;;  %v1970_v4 = vld [vmem:[%s2739_s29 + $0x210] sm:$0xf] }
  0xb7   : > { %1267 = vmatpush.bf16.msra.mxu3 %v1775_v24  ;;  %v2043_v3 = vor.u32 %v2302_v62, %v2042_v61  ;;  %v2285_v5 = vld [vmem:[%s2739_s29 + $0x24c] sm:$0xf0]  ;;  %v2277_v6 = vld [vmem:[%s2739_s29 + $0x214] sm:$0xf]  ;;  %v2047_v7 = vor.u32 %v2294_v63, %v2044_v0  ;;  %v1978_v9 = vld [vmem:[%s2739_s29 + $0x218] sm:$0xf] }
  0xb8   : > { %v1972_v8 = vld [vmem:[%s2739_s29 + $0x250] sm:$0xf0]  ;;  %v2286_v10 = vld [vmem:[%s2739_s29 + $0x254] sm:$0xf0]  ;;  %v2278_v11 = vld [vmem:[%s2739_s29 + $0x21c] sm:$0xf]  ;;  %v1971_v13 = vor.u32 %v2285_v5, %v1970_v4 }
  0xb9   : > { %1229 = vmatpush.bf16.msra.mxu0 %v1699_v31  ;;  %1242 = vmatpush.bf16.msra.mxu1 %v1703_v35  ;;  %v1980_v12 = vld [vmem:[%s2739_s29 + $0x258] sm:$0xf0]  ;;  %v1975_v14 = vor.u32 %v2277_v6, %v1972_v8  ;;  %v1979_v15 = vor.u32 %v2286_v10, %v1978_v9  ;;  %v1906_v16 = vld [vmem:[%s2739_s29 + $0x190] sm:$0xf]  ;;  %v2261_v18 = vld [vmem:[%s2739_s29 + $0x194] sm:$0xf] }
  0xba   : > { %1255 = vmatpush.bf16.msra.mxu2 %v1707_v36  ;;  %v2269_v17 = vld [vmem:[%s2739_s29 + $0x1cc] sm:$0xf0]  ;;  %v1983_v19 = vor.u32 %v2278_v11, %v1980_v12  ;;  %v1908_v20 = vld [vmem:[%s2739_s29 + $0x1d0] sm:$0xf0]  ;;  %v1914_v21 = vld [vmem:[%s2739_s29 + $0x198] sm:$0xf] }
  0xbb   : > { %1268 = vmatpush.bf16.msra.mxu3 %v1711_v39  ;;  %v2270_v22 = vld [vmem:[%s2739_s29 + $0x1d4] sm:$0xf0]  ;;  %v2262_v23 = vld [vmem:[%s2739_s29 + $0x19c] sm:$0xf]  ;;  %v1907_v25 = vor.u32 %v2269_v17, %v1906_v16  ;;  %v1842_v26 = vld [vmem:[%s2739_s29 + $0x110] sm:$0xf]  ;;  %v1911_v27 = vor.u32 %v2261_v18, %v1908_v20 }
  0xbc   : > { %1243 = vmatmul.bf16.vlgmr.msra.gmra.mxu1 %v2824_v53  ;;  %1230 = vmatmul.bf16.vlgmr.msra.gmra.mxu0 %v2824_v53  ;;  %v1916_v24 = vld [vmem:[%s2739_s29 + $0x1d8] sm:$0xf0]  ;;  %v1915_v28 = vor.u32 %v2270_v22, %v1914_v21  ;;  %v2253_v29 = vld [vmem:[%s2739_s29 + $0x14c] sm:$0xf0]  ;;  %v2245_v30 = vld [vmem:[%s2739_s29 + $0x114] sm:$0xf] }
  0xbd   : > { %1274 = vmatpush.bf16.msrb.mxu0 %v2163_v40  ;;  %1287 = vmatpush.bf16.msrb.mxu1 %v2167_v41  ;;  %v576_v31 = vld [vmem:[%s3074_s2] sm:$0xf]  ;;  %v1919_v32 = vor.u32 %v2262_v23, %v1916_v24  ;;  %v1844_v33 = vld [vmem:[%s2739_s29 + $0x150] sm:$0xf0]  ;;  %v1850_v34 = vld [vmem:[%s2739_s29 + $0x118] sm:$0xf]  ;;  %v1843_v39 = vor.u32 %v2253_v29, %v1842_v26 }
  0xbe   : > { %1300 = vmatpush.bf16.msrb.mxu2 %v2171_v42  ;;  %1269 = vmatmul.bf16.vlgmr.msra.gmra.mxu3 %v2824_v53  ;;  %v2254_v35 = vld [vmem:[%s2739_s29 + $0x154] sm:$0xf0]  ;;  %v2421_v36 = vmov 0   ;;  %v2246_v37 = vld [vmem:[%s2739_s29 + $0x11c] sm:$0xf]  ;;  %v1847_v40 = vor.u32 %v2245_v30, %v1844_v33  ;;  %s3080_s7 = smov (!%p442_p8, %s1694_s7), 63 }
  0xbf   : > { %1313 = vmatpush.bf16.msrb.mxu3 %v2175_v46  ;;  %1256 = vmatmul.bf16.vlgmr.msra.gmra.mxu2 %v2824_v53  ;;  %v1852_v38 = vld [vmem:[%s2739_s29 + $0x158] sm:$0xf0]  ;;  %v1851_v41 = vor.u32 %v2254_v35, %v1850_v34  ;;  %v1778_v42 = vld [vmem:[%s2739_s29 + $0x90] sm:$0xf]  ;;  %v2229_v44 = vld [vmem:[%s2739_s29 + $0x94] sm:$0xf] }
  0xc0   : > { %2364 = vset.pattern.permute.xlu0 %v2421_v36  ;;  %v2237_v43 = vld [vmem:[%s2739_s29 + $0xcc] sm:$0xf0]  ;;  %v1855_v45 = vor.u32 %v2246_v37, %v1852_v38  ;;  %v1780_v46 = vld [vmem:[%s2739_s29 + $0xd0] sm:$0xf0]  ;;  %v1786_v47 = vld [vmem:[%s2739_s29 + $0x98] sm:$0xf] }
  0xc1   : > { %1275 = vmatpush.bf16.msrb.mxu0 %v2099_v52  ;;  %1288 = vmatpush.bf16.msrb.mxu1 %v2103_v54  ;;  %v2238_v48 = vld [vmem:[%s2739_s29 + $0xd4] sm:$0xf0]  ;;  %v2230_v49 = vld [vmem:[%s2739_s29 + $0x9c] sm:$0xf]  ;;  %v1779_v51 = vor.u32 %v2237_v43, %v1778_v42  ;;  %v1714_v52 = vld [vmem:[%s2739_s29 + $0x10] sm:$0xf] }
  0xc2   : > { %1301 = vmatpush.bf16.msrb.mxu2 %v2107_v55  ;;  %579 = vperm.xlu0 %2364, %v576_v31   ;;  %v1788_v50 = vld [vmem:[%s2739_s29 + $0xd8] sm:$0xf0]  ;;  %v2221_v54 = vld [vmem:[%s2739_s29 + $0x4c] sm:$0xf0]  ;;  %v1783_v55 = vor.u32 %v2229_v44, %v1780_v46  ;;  %v1787_v56 = vor.u32 %v2238_v48, %v1786_v47  ;;  %v2213_v57 = vld [vmem:[%s2739_s29 + $0x14] sm:$0xf] }
  0xc3   : > { %1314 = vmatpush.bf16.msrb.mxu3 %v2111_v59  ;;  %v1716_v58 = vld [vmem:[%s2739_s29 + $0x50] sm:$0xf0]  ;;  %v1722_v59 = vld [vmem:[%s2739_s29 + $0x18] sm:$0xf]  ;;  %v1791_v60 = vor.u32 %v2230_v49, %v1788_v50  ;;  %v2214_v62 = vld [vmem:[%s2739_s29 + $0x1c] sm:$0xf] }
  0xc4   : > { %v2222_v61 = vld [vmem:[%s2739_s29 + $0x54] sm:$0xf0]  ;;  %v1724_v63 = vld [vmem:[%s2739_s29 + $0x58] sm:$0xf0]  ;;  %v2178_v0 = vld [vmem:[%s2739_s29 + $0x3a0] sm:$0xf] }
  0xc5   : > { %1276 = vmatpush.bf16.msrb.mxu0 %v2035_v1  ;;  %1289 = vmatpush.bf16.msrb.mxu1 %v2039_v2  ;;  %v2335_v1 = vld [vmem:[%s2739_s29 + $0x3dc] sm:$0xf0]  ;;  %v2327_v2 = vld [vmem:[%s2739_s29 + $0x3a4] sm:$0xf]  ;;  %v2186_v5 = vld [vmem:[%s2739_s29 + $0x3a8] sm:$0xf]  ;;  %v1723_v8 = vor.u32 %v2222_v61, %v1722_v59  ;;  %v1727_v11 = vor.u32 %v2214_v62, %v1724_v63 }
  0xc6   : > { %1302 = vmatpush.bf16.msrb.mxu2 %v2043_v3  ;;  %v1715_v3 = vor.u32 %v2221_v54, %v1714_v52  ;;  %v2180_v4 = vld [vmem:[%s2739_s29 + $0x3e0] sm:$0xf0]  ;;  %v2336_v6 = vld [vmem:[%s2739_s29 + $0x3e4] sm:$0xf0]  ;;  %v2328_v9 = vld [vmem:[%s2739_s29 + $0x3ac] sm:$0xf]  ;;  %v2179_v12 = vor.u32 %v2335_v1, %v2178_v0 }
  0xc7   : > { %1315 = vmatpush.bf16.msrb.mxu3 %v2047_v7  ;;  %v1719_v7 = vor.u32 %v2213_v57, %v1716_v58  ;;  %v2188_v10 = vld [vmem:[%s2739_s29 + $0x3e8] sm:$0xf0]  ;;  %v2319_v16 = vld [vmem:[%s2739_s29 + $0x35c] sm:$0xf0]  ;;  %v2311_v17 = vld [vmem:[%s2739_s29 + $0x324] sm:$0xf] }
  0xc8   : > { %v2191_v18 = vor.u32 %v2328_v9, %v2188_v10  ;;  %v2122_v20 = vld [vmem:[%s2739_s29 + $0x328] sm:$0xf]  ;;  %v2312_v22 = vld [vmem:[%s2739_s29 + $0x32c] sm:$0xf]  ;;  %v2295_v29 = vld [vmem:[%s2739_s29 + $0x2a4] sm:$0xf] }
  0xc9   : > { %1277 = vmatpush.bf16.msrb.mxu0 %v1971_v13  ;;  %1290 = vmatpush.bf16.msrb.mxu1 %v1975_v14  ;;  %v2183_v13 = vor.u32 %v2327_v2, %v2180_v4  ;;  %v2187_v14 = vor.u32 %v2336_v6, %v2186_v5  ;;  %v2320_v21 = vld [vmem:[%s2739_s29 + $0x364] sm:$0xf0]  ;;  %v2124_v23 = vld [vmem:[%s2739_s29 + $0x368] sm:$0xf0]  ;;  %v2052_v31 = vld [vmem:[%s2739_s29 + $0x2e0] sm:$0xf0] }
  0xca   : > { %1303 = vmatpush.bf16.msrb.mxu2 %v1979_v15  ;;  %v2114_v15 = vld [vmem:[%s2739_s29 + $0x320] sm:$0xf]  ;;  %v2123_v26 = vor.u32 %v2320_v21, %v2122_v20  ;;  %v2127_v30 = vor.u32 %v2312_v22, %v2124_v23  ;;  %v2304_v33 = vld [vmem:[%s2739_s29 + $0x2e4] sm:$0xf0]  ;;  %v2296_v34 = vld [vmem:[%s2739_s29 + $0x2ac] sm:$0xf]  ;;  %v2055_v37 = vor.u32 %v2295_v29, %v2052_v31 }
  0xcb   : > { %1316 = vmatpush.bf16.msrb.mxu3 %v1983_v19  ;;  %v2116_v19 = vld [vmem:[%s2739_s29 + $0x360] sm:$0xf0]  ;;  %v2115_v24 = vor.u32 %v2319_v16, %v2114_v15  ;;  %v2060_v35 = vld [vmem:[%s2739_s29 + $0x2e8] sm:$0xf0]  ;;  %v1994_v44 = vld [vmem:[%s2739_s29 + $0x228] sm:$0xf] }
  0xcc   : > { %v2063_v42 = vor.u32 %v2296_v34, %v2060_v35  ;;  %v1988_v43 = vld [vmem:[%s2739_s29 + $0x260] sm:$0xf0]  ;;  %v2280_v46 = vld [vmem:[%s2739_s29 + $0x22c] sm:$0xf]  ;;  %v2271_v52 = vld [vmem:[%s2739_s29 + $0x1dc] sm:$0xf0] }
  0xcd   : > { %1278 = vmatpush.bf16.msrb.mxu0 %v1907_v25  ;;  %1291 = vmatpush.bf16.msrb.mxu1 %v1911_v27  ;;  %v2119_v25 = vor.u32 %v2311_v17, %v2116_v19  ;;  %v2050_v27 = vld [vmem:[%s2739_s29 + $0x2a0] sm:$0xf]  ;;  %v1996_v47 = vld [vmem:[%s2739_s29 + $0x268] sm:$0xf0]  ;;  %v2263_v54 = vld [vmem:[%s2739_s29 + $0x1a4] sm:$0xf] }
  0xce   : > { %1304 = vmatpush.bf16.msrb.mxu2 %v1915_v28  ;;  %v2303_v28 = vld [vmem:[%s2739_s29 + $0x2dc] sm:$0xf0]  ;;  %v1930_v57 = vld [vmem:[%s2739_s29 + $0x1a8] sm:$0xf]  ;;  %v2264_v59 = vld [vmem:[%s2739_s29 + $0x1ac] sm:$0xf] }
  0xcf   : > { %1317 = vmatpush.bf16.msrb.mxu3 %v1919_v32  ;;  %v2058_v32 = vld [vmem:[%s2739_s29 + $0x2a8] sm:$0xf]  ;;  %v2051_v36 = vor.u32 %v2303_v28, %v2050_v27  ;;  %v1858_v0 = vld [vmem:[%s2739_s29 + $0x120] sm:$0xf]  ;;  %v2247_v2 = vld [vmem:[%s2739_s29 + $0x124] sm:$0xf] }
  0xd0   : > { %v2059_v38 = vor.u32 %v2304_v33, %v2058_v32  ;;  %v2272_v58 = vld [vmem:[%s2739_s29 + $0x1e4] sm:$0xf0]  ;;  %v2255_v1 = vld [vmem:[%s2739_s29 + $0x15c] sm:$0xf0]  ;;  %v1860_v4 = vld [vmem:[%s2739_s29 + $0x160] sm:$0xf0] }
  0xd1   : > { %1279 = vmatpush.bf16.msrb.mxu0 %v1843_v39  ;;  %1292 = vmatpush.bf16.msrb.mxu1 %v1847_v40  ;;  %v1986_v39 = vld [vmem:[%s2739_s29 + $0x220] sm:$0xf]  ;;  %v1931_v63 = vor.u32 %v2272_v58, %v1930_v57  ;;  %v1866_v5 = vld [vmem:[%s2739_s29 + $0x128] sm:$0xf]  ;;  %v1859_v9 = vor.u32 %v2255_v1, %v1858_v0  ;;  %v1863_v10 = vor.u32 %v2247_v2, %v1860_v4  ;;  %v1796_v16 = vld [vmem:[%s2739_s29 + $0xe0] sm:$0xf0] }
  0xd2   : > { %1305 = vmatpush.bf16.msrb.mxu2 %v1851_v41  ;;  %v2287_v40 = vld [vmem:[%s2739_s29 + $0x25c] sm:$0xf0]  ;;  %v2279_v41 = vld [vmem:[%s2739_s29 + $0x224] sm:$0xf]  ;;  %v2256_v6 = vld [vmem:[%s2739_s29 + $0x164] sm:$0xf0] }
  0xd3   : > { %1318 = vmatpush.bf16.msrb.mxu3 %v1855_v45  ;;  %v2288_v45 = vld [vmem:[%s2739_s29 + $0x264] sm:$0xf0]  ;;  %v1987_v48 = vor.u32 %v2287_v40, %v1986_v39  ;;  %v1991_v49 = vor.u32 %v2279_v41, %v1988_v43  ;;  %v2232_v19 = vld [vmem:[%s2739_s29 + $0xac] sm:$0xf]  ;;  %v1730_v22 = vld [vmem:[%s2739_s29 + $0x20] sm:$0xf] }
  0xd4   : > { %v1995_v50 = vor.u32 %v2288_v45, %v1994_v44  ;;  %v1802_v17 = vld [vmem:[%s2739_s29 + $0xa8] sm:$0xf]  ;;  %v1804_v20 = vld [vmem:[%s2739_s29 + $0xe8] sm:$0xf0]  ;;  %v2223_v23 = vld [vmem:[%s2739_s29 + $0x5c] sm:$0xf0] }
  0xd5   : > { %1280 = vmatpush.bf16.msrb.mxu0 %v1779_v51  ;;  %1293 = vmatpush.bf16.msrb.mxu1 %v1783_v55  ;;  %v1922_v51 = vld [vmem:[%s2739_s29 + $0x1a0] sm:$0xf]  ;;  %v1999_v55 = vor.u32 %v2280_v46, %v1996_v47  ;;  %v1732_v27 = vld [vmem:[%s2739_s29 + $0x60] sm:$0xf0]  ;;  %v1738_v28 = vld [vmem:[%s2739_s29 + $0x28] sm:$0xf]  ;;  %v1807_v29 = vor.u32 %v2232_v19, %v1804_v20 }
  0xd6   : > { %1306 = vmatpush.bf16.msrb.mxu2 %v1787_v56  ;;  %v1924_v56 = vld [vmem:[%s2739_s29 + $0x1e0] sm:$0xf0]  ;;  %v1923_v61 = vor.u32 %v2271_v52, %v1922_v51  ;;  %v2216_v31 = vld [vmem:[%s2739_s29 + $0x2c] sm:$0xf]  ;;  %v2194_v33 = vld [vmem:[%s2739_s29 + $0x3b0] sm:$0xf] }
  0xd7   : > { %1319 = vmatpush.bf16.msrb.mxu3 %v1791_v60  ;;  %v1932_v60 = vld [vmem:[%s2739_s29 + $0x1e8] sm:$0xf0]  ;;  %v1927_v62 = vor.u32 %v2263_v54, %v1924_v56  ;;  %v2337_v34 = vld [vmem:[%s2739_s29 + $0x3ec] sm:$0xf0]  ;;  %v2329_v35 = vld [vmem:[%s2739_s29 + $0x3b4] sm:$0xf] }
  0xd8   : > { %v1740_v32 = vld [vmem:[%s2739_s29 + $0x68] sm:$0xf0]  ;;  %v2338_v39 = vld [vmem:[%s2739_s29 + $0x3f4] sm:$0xf0]  ;;  %v2204_v43 = vld [vmem:[%s2739_s29 + $0x3f8] sm:$0xf0]  ;;  %v2195_v45 = vor.u32 %v2337_v34, %v2194_v33 }
  0xd9   : > { %1281 = vmatpush.bf16.msrb.mxu0 %v1715_v3  ;;  %1294 = vmatpush.bf16.msrb.mxu1 %v1719_v7  ;;  %v1935_v3 = vor.u32 %v2264_v59, %v1932_v60  ;;  %v2248_v7 = vld [vmem:[%s2739_s29 + $0x12c] sm:$0xf]  ;;  %v1743_v44 = vor.u32 %v2216_v31, %v1740_v32  ;;  %v2132_v52 = vld [vmem:[%s2739_s29 + $0x370] sm:$0xf0]  ;;  %v2138_v54 = vld [vmem:[%s2739_s29 + $0x338] sm:$0xf] }
  0xda   : > { %1307 = vmatpush.bf16.msrb.mxu2 %v1723_v8  ;;  %v1868_v8 = vld [vmem:[%s2739_s29 + $0x168] sm:$0xf0]  ;;  %v2314_v56 = vld [vmem:[%s2739_s29 + $0x33c] sm:$0xf]  ;;  %v2068_v1 = vld [vmem:[%s2739_s29 + $0x2f0] sm:$0xf0] }
  0xdb   : > { %1320 = vmatpush.bf16.msrb.mxu3 %v1727_v11  ;;  %v1867_v11 = vor.u32 %v2256_v6, %v1866_v5  ;;  %v1871_v15 = vor.u32 %v2248_v7, %v1868_v8  ;;  %v2140_v57 = vld [vmem:[%s2739_s29 + $0x378] sm:$0xf0]  ;;  %v2074_v2 = vld [vmem:[%s2739_s29 + $0x2b8] sm:$0xf]  ;;  %v1874_v33 = vld [vmem:[%s2739_s29 + $0x130] sm:$0xf] }
  0xdc   : > { %1295 = vmatmul.bf16.vlgmr.msrb.gmra.mxu1 %v2824_v53  ;;  %1282 = vmatmul.bf16.vlgmr.msrb.gmra.mxu0 %v2824_v53  ;;  %v2143_v0 = vor.u32 %v2314_v56, %v2140_v57  ;;  %v2298_v4 = vld [vmem:[%s2739_s29 + $0x2bc] sm:$0xf]  ;;  %v2257_v34 = vld [vmem:[%s2739_s29 + $0x16c] sm:$0xf0]  ;;  %s1695_s8 = sshll.u32 %s3080_s7, 2  ;;  %vm1598_vm0 = vcmask 1043456  }
  0xdd   : > { %1326 = vmatpush.bf16.msra.mxu0 %v2179_v12  ;;  %1339 = vmatpush.bf16.msra.mxu1 %v2183_v13  ;;  %v1794_v12 = vld [vmem:[%s2739_s29 + $0xa0] sm:$0xf]  ;;  %v2076_v5 = vld [vmem:[%s2739_s29 + $0x2f8] sm:$0xf0]  ;;  %s3032_s11 = scalar_lea.vmem %s3075_s3, %s1695_s8 }
  0xde   : > { %1352 = vmatpush.bf16.msra.mxu2 %v2187_v14  ;;  %1321 = vmatmul.bf16.vlgmr.msrb.gmra.mxu3 %v2824_v53  ;;  %v2239_v13 = vld [vmem:[%s2739_s29 + $0xdc] sm:$0xf0]  ;;  %v2231_v14 = vld [vmem:[%s2739_s29 + $0xa4] sm:$0xf] }
  0xdf   : > { %1365 = vmatpush.bf16.msra.mxu3 %v2191_v18  ;;  %1308 = vmatmul.bf16.vlgmr.msrb.gmra.mxu2 %v2824_v53  ;;  %v2240_v18 = vld [vmem:[%s2739_s29 + $0xe4] sm:$0xf0]  ;;  %v1795_v21 = vor.u32 %v2239_v13, %v1794_v12  ;;  %v2079_v12 = vor.u32 %v2298_v4, %v2076_v5  ;;  %v2004_v13 = vld [vmem:[%s2739_s29 + $0x270] sm:$0xf0] }
  0xe1   : > { %1327 = vmatpush.bf16.msra.mxu0 %v2115_v24  ;;  %1340 = vmatpush.bf16.msra.mxu1 %v2119_v25  ;;  %v1799_v24 = vor.u32 %v2231_v14, %v1796_v16  ;;  %v1803_v25 = vor.u32 %v2240_v18, %v1802_v17  ;;  %v2010_v14 = vld [vmem:[%s2739_s29 + $0x238] sm:$0xf]  ;;  %v2282_v16 = vld [vmem:[%s2739_s29 + $0x23c] sm:$0xf] }
  0xe2   : > { %1353 = vmatpush.bf16.msra.mxu2 %v2123_v26  ;;  %v2215_v26 = vld [vmem:[%s2739_s29 + $0x24] sm:$0xf]  ;;  %v2012_v17 = vld [vmem:[%s2739_s29 + $0x278] sm:$0xf0] }
  0xe3   : > { %1366 = vmatpush.bf16.msra.mxu3 %v2127_v30  ;;  %v2224_v30 = vld [vmem:[%s2739_s29 + $0x64] sm:$0xf0]  ;;  %v1735_v40 = vor.u32 %v2215_v26, %v1732_v27  ;;  %v1946_v26 = vld [vmem:[%s2739_s29 + $0x1b8] sm:$0xf] }
  0xe4   : > { %v1739_v41 = vor.u32 %v2224_v30, %v1738_v28  ;;  %v2274_v27 = vld [vmem:[%s2739_s29 + $0x1f4] sm:$0xf0]  ;;  %v2266_v28 = vld [vmem:[%s2739_s29 + $0x1bc] sm:$0xf] }
  0xe5   : > { %1328 = vmatpush.bf16.msra.mxu0 %v2051_v36  ;;  %1341 = vmatpush.bf16.msra.mxu1 %v2055_v37  ;;  %v1731_v36 = vor.u32 %v2223_v23, %v1730_v22  ;;  %v2196_v37 = vld [vmem:[%s2739_s29 + $0x3f0] sm:$0xf0]  ;;  %v2273_v22 = vld [vmem:[%s2739_s29 + $0x1ec] sm:$0xf0]  ;;  %v1947_v32 = vor.u32 %v2274_v27, %v1946_v26 }
  0xe6   : > { %1354 = vmatpush.bf16.msra.mxu2 %v2059_v38  ;;  %v2202_v38 = vld [vmem:[%s2739_s29 + $0x3b8] sm:$0xf]  ;;  %v2199_v46 = vor.u32 %v2329_v35, %v2196_v37  ;;  %v2265_v23 = vld [vmem:[%s2739_s29 + $0x1b4] sm:$0xf] }
  0xe7   : > { %1367 = vmatpush.bf16.msra.mxu3 %v2063_v42  ;;  %v2330_v42 = vld [vmem:[%s2739_s29 + $0x3bc] sm:$0xf]  ;;  %v2203_v47 = vor.u32 %v2338_v39, %v2202_v38  ;;  %v2249_v35 = vld [vmem:[%s2739_s29 + $0x134] sm:$0xf]  ;;  %v1882_v38 = vld [vmem:[%s2739_s29 + $0x138] sm:$0xf] }
  0xe8   : > { %v2207_v51 = vor.u32 %v2330_v42, %v2204_v43  ;;  %v1876_v37 = vld [vmem:[%s2739_s29 + $0x170] sm:$0xf0]  ;;  %v2258_v39 = vld [vmem:[%s2739_s29 + $0x174] sm:$0xf0]  ;;  %v1875_v42 = vor.u32 %v2257_v34, %v1874_v33 }
  0xe9   : > { %1329 = vmatpush.bf16.msra.mxu0 %v1987_v48  ;;  %1342 = vmatpush.bf16.msra.mxu1 %v1991_v49  ;;  %v2130_v48 = vld [vmem:[%s2739_s29 + $0x330] sm:$0xf]  ;;  %v1879_v43 = vor.u32 %v2249_v35, %v1876_v37 }
  0xea   : > { %1355 = vmatpush.bf16.msra.mxu2 %v1995_v50  ;;  %v2321_v49 = vld [vmem:[%s2739_s29 + $0x36c] sm:$0xf0]  ;;  %v2313_v50 = vld [vmem:[%s2739_s29 + $0x334] sm:$0xf] }
  0xeb   : > { %1368 = vmatpush.bf16.msra.mxu3 %v1999_v55  ;;  %v2322_v55 = vld [vmem:[%s2739_s29 + $0x374] sm:$0xf0]  ;;  %v2131_v58 = vor.u32 %v2321_v49, %v2130_v48  ;;  %v2135_v59 = vor.u32 %v2313_v50, %v2132_v52  ;;  %v1812_v49 = vld [vmem:[%s2739_s29 + $0xf0] sm:$0xf0]  ;;  %v2234_v52 = vld [vmem:[%s2739_s29 + $0xbc] sm:$0xf] }
  0xec   : > { %v2139_v60 = vor.u32 %v2322_v55, %v2138_v54  ;;  %v1818_v50 = vld [vmem:[%s2739_s29 + $0xb8] sm:$0xf]  ;;  %v1820_v54 = vld [vmem:[%s2739_s29 + $0xf8] sm:$0xf0] }
  0xed   : > { %1330 = vmatpush.bf16.msra.mxu0 %v1923_v61  ;;  %1343 = vmatpush.bf16.msra.mxu1 %v1927_v62  ;;  %v2066_v61 = vld [vmem:[%s2739_s29 + $0x2b0] sm:$0xf] }
  0xee   : > { %1356 = vmatpush.bf16.msra.mxu2 %v1931_v63  ;;  %v2305_v62 = vld [vmem:[%s2739_s29 + $0x2ec] sm:$0xf0]  ;;  %v2297_v63 = vld [vmem:[%s2739_s29 + $0x2b4] sm:$0xf] }
  0xef   : > { %1369 = vmatpush.bf16.msra.mxu3 %v1935_v3  ;;  %v2306_v3 = vld [vmem:[%s2739_s29 + $0x2f4] sm:$0xf0]  ;;  %v2067_v6 = vor.u32 %v2305_v62, %v2066_v61  ;;  %v2071_v7 = vor.u32 %v2297_v63, %v2068_v1  ;;  %v1823_v61 = vor.u32 %v2234_v52, %v1820_v54  ;;  %v1748_v62 = vld [vmem:[%s2739_s29 + $0x70] sm:$0xf0]  ;;  %v2218_v1 = vld [vmem:[%s2739_s29 + $0x3c] sm:$0xf] }
  0xf0   : > { %v2075_v8 = vor.u32 %v2306_v3, %v2074_v2  ;;  %v1754_v63 = vld [vmem:[%s2739_s29 + $0x38] sm:$0xf]  ;;  %v1756_v2 = vld [vmem:[%s2739_s29 + $0x78] sm:$0xf0] }
  0xf1   : > { %1331 = vmatpush.bf16.msra.mxu0 %v1859_v9  ;;  %1344 = vmatpush.bf16.msra.mxu1 %v1863_v10  ;;  %v2002_v9 = vld [vmem:[%s2739_s29 + $0x230] sm:$0xf] }
  0xf2   : > { %1357 = vmatpush.bf16.msra.mxu2 %v1867_v11  ;;  %v2289_v10 = vld [vmem:[%s2739_s29 + $0x26c] sm:$0xf0]  ;;  %v2281_v11 = vld [vmem:[%s2739_s29 + $0x234] sm:$0xf] }
  0xf3   : > { %1370 = vmatpush.bf16.msra.mxu3 %v1871_v15  ;;  %v2290_v15 = vld [vmem:[%s2739_s29 + $0x274] sm:$0xf0]  ;;  %v2003_v18 = vor.u32 %v2289_v10, %v2002_v9  ;;  %v2007_v19 = vor.u32 %v2281_v11, %v2004_v13 }
  0xf4   : > { %v2011_v20 = vor.u32 %v2290_v15, %v2010_v14 }
  0xf5   : > { %1332 = vmatpush.bf16.msra.mxu0 %v1795_v21  ;;  %1345 = vmatpush.bf16.msra.mxu1 %v1799_v24  ;;  %v1938_v21 = vld [vmem:[%s2739_s29 + $0x1b0] sm:$0xf]  ;;  %v2015_v24 = vor.u32 %v2282_v16, %v2012_v17 }
  0xf6   : > { %1358 = vmatpush.bf16.msra.mxu2 %v1803_v25  ;;  %v1940_v25 = vld [vmem:[%s2739_s29 + $0x1f0] sm:$0xf0]  ;;  %v1939_v30 = vor.u32 %v2273_v22, %v1938_v21 }
  0xf7   : > { %1371 = vmatpush.bf16.msra.mxu3 %v1807_v29  ;;  %v1948_v29 = vld [vmem:[%s2739_s29 + $0x1f8] sm:$0xf0]  ;;  %v1943_v31 = vor.u32 %v2265_v23, %v1940_v25 }
  0xf9   : > { %1333 = vmatpush.bf16.msra.mxu0 %v1731_v36  ;;  %1346 = vmatpush.bf16.msra.mxu1 %v1735_v40  ;;  %v1951_v36 = vor.u32 %v2266_v28, %v1948_v29  ;;  %v2250_v40 = vld [vmem:[%s2739_s29 + $0x13c] sm:$0xf] }
  0xfa   : > { %1359 = vmatpush.bf16.msra.mxu2 %v1739_v41  ;;  %v1884_v41 = vld [vmem:[%s2739_s29 + $0x178] sm:$0xf0] }
  0xfb   : > { %1372 = vmatpush.bf16.msra.mxu3 %v1743_v44  ;;  %v1883_v44 = vor.u32 %v2258_v39, %v1882_v38  ;;  %v1887_v48 = vor.u32 %v2250_v40, %v1884_v41 }
  0xfc   : > { %1347 = vmatmul.bf16.vlgmr.msra.gmra.mxu1 %v2824_v53  ;;  %1334 = vmatmul.bf16.vlgmr.msra.gmra.mxu0 %v2824_v53 }
  0xfd   : > { %1378 = vmatpush.bf16.msrb.mxu0 %v2195_v45  ;;  %1391 = vmatpush.bf16.msrb.mxu1 %v2199_v46  ;;  %v1810_v45 = vld [vmem:[%s2739_s29 + $0xb0] sm:$0xf] }
  0xfe   : > { %1404 = vmatpush.bf16.msrb.mxu2 %v2203_v47  ;;  %1373 = vmatmul.bf16.vlgmr.msra.gmra.mxu3 %v2824_v53  ;;  %v2241_v46 = vld [vmem:[%s2739_s29 + $0xec] sm:$0xf0]  ;;  %v2233_v47 = vld [vmem:[%s2739_s29 + $0xb4] sm:$0xf] }
  0xff   : > { %1417 = vmatpush.bf16.msrb.mxu3 %v2207_v51  ;;  %1360 = vmatmul.bf16.vlgmr.msra.gmra.mxu2 %v2824_v53  ;;  %v2242_v51 = vld [vmem:[%s2739_s29 + $0xf4] sm:$0xf0]  ;;  %v1811_v55 = vor.u32 %v2241_v46, %v1810_v45  ;;  %v1815_v56 = vor.u32 %v2233_v47, %v1812_v49 }
 0x100   : > { %v1819_v57 = vor.u32 %v2242_v51, %v1818_v50 }
 0x101   : > { %1379 = vmatpush.bf16.msrb.mxu0 %v2131_v58  ;;  %1392 = vmatpush.bf16.msrb.mxu1 %v2135_v59  ;;  %v1746_v58 = vld [vmem:[%s2739_s29 + $0x30] sm:$0xf] }
 0x102   : > { %1405 = vmatpush.bf16.msrb.mxu2 %v2139_v60  ;;  %v2225_v59 = vld [vmem:[%s2739_s29 + $0x6c] sm:$0xf0]  ;;  %v2217_v60 = vld [vmem:[%s2739_s29 + $0x34] sm:$0xf] }
 0x103   : > { %1418 = vmatpush.bf16.msrb.mxu3 %v2143_v0  ;;  %v2226_v0 = vld [vmem:[%s2739_s29 + $0x74] sm:$0xf0]  ;;  %v1747_v3 = vor.u32 %v2225_v59, %v1746_v58  ;;  %v1751_v4 = vor.u32 %v2217_v60, %v1748_v62 }
 0x104   : > { %v1755_v5 = vor.u32 %v2226_v0, %v1754_v63 }
 0x105   : > { %1380 = vmatpush.bf16.msrb.mxu0 %v2067_v6  ;;  %1393 = vmatpush.bf16.msrb.mxu1 %v2071_v7  ;;  %v1759_v6 = vor.u32 %v2218_v1, %v1756_v2 }
 0x106   : > { %1406 = vmatpush.bf16.msrb.mxu2 %v2075_v8 }
 0x107   : > { %1419 = vmatpush.bf16.msrb.mxu3 %v2079_v12 }
 0x109   : > { %1381 = vmatpush.bf16.msrb.mxu0 %v2003_v18  ;;  %1394 = vmatpush.bf16.msrb.mxu1 %v2007_v19 }
 0x10a   : > { %1407 = vmatpush.bf16.msrb.mxu2 %v2011_v20 }
 0x10b   : > { %1420 = vmatpush.bf16.msrb.mxu3 %v2015_v24 }
 0x10d   : > { %1382 = vmatpush.bf16.msrb.mxu0 %v1939_v30  ;;  %1395 = vmatpush.bf16.msrb.mxu1 %v1943_v31 }
 0x10e   : > { %1408 = vmatpush.bf16.msrb.mxu2 %v1947_v32 }
 0x10f   : > { %1421 = vmatpush.bf16.msrb.mxu3 %v1951_v36 }
 0x111   : > { %1383 = vmatpush.bf16.msrb.mxu0 %v1875_v42  ;;  %1396 = vmatpush.bf16.msrb.mxu1 %v1879_v43 }
 0x112   : > { %1409 = vmatpush.bf16.msrb.mxu2 %v1883_v44 }
 0x113   : > { %1422 = vmatpush.bf16.msrb.mxu3 %v1887_v48 }
 0x115   : > { %1384 = vmatpush.bf16.msrb.mxu0 %v1811_v55  ;;  %1397 = vmatpush.bf16.msrb.mxu1 %v1815_v56 }
 0x116   : > { %1410 = vmatpush.bf16.msrb.mxu2 %v1819_v57 }
 0x117   : > { %1423 = vmatpush.bf16.msrb.mxu3 %v1823_v61 }
 0x119   : > { %1385 = vmatpush.bf16.msrb.mxu0 %v1747_v3  ;;  %1398 = vmatpush.bf16.msrb.mxu1 %v1751_v4 }
 0x11a   : > { %1411 = vmatpush.bf16.msrb.mxu2 %v1755_v5 }
 0x11b   : > { %1424 = vmatpush.bf16.msrb.mxu3 %v1759_v6 }
 0x11c   : > { %1386 = vmatmul.bf16.vlgmr.msrb.gmra.mxu0 %v2824_v53  ;;  %1399 = vmatmul.bf16.vlgmr.msrb.gmra.mxu1 %v2824_v53 }
 0x11d   : > { %1412 = vmatmul.bf16.vlgmr.msrb.gmra.mxu2 %v2824_v53 }
 0x11e   : > { %1425 = vmatmul.bf16.vlgmr.msrb.gmra.mxu3 %v2824_v53 }
 0x134   : > { %v3021_v8 = vpop.permute.xlu0 %579 }
 0x139   : > { %v1244_v7 = vpop.f32.mrf.mxu1  ;;  %v1231_v10 = vpop.f32.mrf.mxu0 }
 0x13a   : > { %v1245_v9 = vadd.f32 %v1244_v7, %v3021_v8  ;;  %v1232_v12 = vadd.f32 %v1231_v10, %v3021_v8 }
 0x13c   : > { %v1464_v11 = vmul.f32 1.442695, %v1245_v9  ;;  %v1462_v15 = vmul.f32 1.442695, %v1232_v12  ;;  %v1431_v22 = vmax.f32 %v1245_v9, 0.0  ;;  %v1430_v26 = vmax.f32 %v1232_v12, 0.0 }
 0x13e   : > { %2365 = vpow2.f32 %v1464_v11  ;;  %v1447_v31 = vmul.f32 1.050701, %v1431_v22  ;;  %v1446_v37 = vmul.f32 1.050701, %v1430_v26 }
 0x13f   : > { %2367 = vpow2.f32 %v1462_v15 }
 0x141   : > { %v1270_v14 = vpop.f32.mrf.mxu3  ;;  %v1246_v53 = vpop.f32.mrf.mxu1 }
 0x142   : > { %v1257_v13 = vpop.f32.mrf.mxu2  ;;  %v1271_v16 = vadd.f32 %v1270_v14, %v3021_v8  ;;  %v1233_v20 = vpop.f32.mrf.mxu0 }
 0x143   : > { %v1258_v17 = vadd.f32 %v1257_v13, %v3021_v8 }
 0x144   : > { %v1468_v18 = vmul.f32 1.442695, %v1271_v16  ;;  %v2366_v21 = vpop.eup %2365  ;;  %v1433_v35 = vmax.f32 %v1271_v16, 0.0 }
 0x145   : > { %v1466_v19 = vmul.f32 1.442695, %v1258_v17  ;;  %v1495_v23 = vsub.f32 1.0, %v2366_v21  ;;  %v2368_v25 = vpop.eup %2367  ;;  %v1432_v40 = vmax.f32 %v1258_v17, 0.0 }
 0x146   : > { %2369 = vpow2.f32 %v1468_v18  ;;  %v1494_v29 = vsub.f32 1.0, %v2368_v25  ;;  %v1449_v46 = vmul.f32 1.050701, %v1433_v35 }
 0x147   : > { %2371 = vpow2.f32 %v1466_v19  ;;  %v1511_v28 = vmax.f32 %v1495_v23, 0.0  ;;  %v1448_v50 = vmul.f32 1.050701, %v1432_v40 }
 0x148   : > { %v1510_v33 = vmax.f32 %v1494_v29, 0.0 }
 0x149   : > { %v1272_v27 = vpop.f32.mrf.mxu3  ;;  %v1527_v32 = vsub.f32 0.0, %v1511_v28 }
 0x14a   : > { %v1259_v24 = vpop.f32.mrf.mxu2  ;;  %v1526_v39 = vsub.f32 0.0, %v1510_v33 }
 0x14b   : > { %v1543_v38 = vmul.f32 1.7580993, %v1527_v32 }
 0x14c   : > { %v2370_v30 = vpop.eup %2369  ;;  %v1542_v44 = vmul.f32 1.7580993, %v1526_v39 }
 0x14d   : > { %v2372_v34 = vpop.eup %2371  ;;  %v1497_v36 = vsub.f32 1.0, %v2370_v30  ;;  %v1559_v43 = vadd.f32 %v1543_v38, %v1447_v31 }
 0x14e   : > { %v1496_v41 = vsub.f32 1.0, %v2372_v34  ;;  %v1558_v49 = vadd.f32 %v1542_v44, %v1446_v37 }
 0x14f   : > { %v1513_v42 = vmax.f32 %v1497_v36, 0.0  ;;  %v1590_v48 = vrot.slane %v1559_v43, 4 }
 0x150   : > { %v1512_v45 = vmax.f32 %v1496_v41, 0.0 }
 0x151   : > { %v1529_v47 = vsub.f32 0.0, %v1513_v42  ;;  %v1599_v54 = vsel %vm1598_vm0, %v1558_v49, %v1590_v48 }
 0x152   : > { %v1528_v51 = vsub.f32 0.0, %v1512_v45  ;;  %1615 = vst [vmem:[%s3032_s11] sm:$0xff] %v1599_v54 }
 0x153   : > { %v1545_v52 = vmul.f32 1.7580993, %v1529_v47 }
 0x154   : > { %v1544_v55 = vmul.f32 1.7580993, %v1528_v51 }
 0x155   : > { %v1561_v56 = vadd.f32 %v1545_v52, %v1449_v46 }
 0x156   : > { %v1560_v57 = vadd.f32 %v1544_v55, %v1448_v50 }
 0x157   : > { %v1591_v58 = vrot.slane %v1561_v56, 4 }
 0x159   : > { %v1600_v59 = vsel %vm1598_vm0, %v1560_v57, %v1591_v58  ;;  %v1296_v60 = vpop.f32.mrf.mxu1  ;;  %v1283_v63 = vpop.f32.mrf.mxu0 }
 0x15a   : > { %1616 = vst [vmem:[%s3032_s11 + $0x8] sm:$0xff] %v1600_v59  ;;  %v1297_v61 = vadd.f32 %v1296_v60, %v3021_v8  ;;  %v1284_v0 = vadd.f32 %v1283_v63, %v3021_v8 }
 0x15c   : > { %v1472_v62 = vmul.f32 1.442695, %v1297_v61  ;;  %v1470_v3 = vmul.f32 1.442695, %v1284_v0  ;;  %v1435_v12 = vmax.f32 %v1297_v61, 0.0  ;;  %v1434_v53 = vmax.f32 %v1284_v0, 0.0 }
 0x15e   : > { %2373 = vpow2.f32 %v1472_v62  ;;  %v1451_v20 = vmul.f32 1.050701, %v1435_v12  ;;  %v1450_v29 = vmul.f32 1.050701, %v1434_v53 }
 0x15f   : > { %2375 = vpow2.f32 %v1470_v3 }
 0x161   : > { %v1322_v2 = vpop.f32.mrf.mxu3  ;;  %v1298_v7 = vpop.f32.mrf.mxu1 }
 0x162   : > { %v1309_v1 = vpop.f32.mrf.mxu2  ;;  %v1323_v5 = vadd.f32 %v1322_v2, %v3021_v8  ;;  %v1285_v11 = vpop.f32.mrf.mxu0 }
 0x163   : > { %v1310_v4 = vadd.f32 %v1309_v1, %v3021_v8 }
 0x164   : > { %v1476_v9 = vmul.f32 1.442695, %v1323_v5  ;;  %v2374_v10 = vpop.eup %2373  ;;  %v1437_v26 = vmax.f32 %v1323_v5, 0.0 }
 0x165   : > { %v1474_v6 = vmul.f32 1.442695, %v1310_v4  ;;  %v1499_v13 = vsub.f32 1.0, %v2374_v10  ;;  %v2376_v15 = vpop.eup %2375  ;;  %v1436_v28 = vmax.f32 %v1310_v4, 0.0 }
 0x166   : > { %v1498_v18 = vsub.f32 1.0, %v2376_v15  ;;  %v1453_v37 = vmul.f32 1.050701, %v1437_v26 }
 0x167   : > { %2377 = vpow2.f32 %v1474_v6  ;;  %v1515_v16 = vmax.f32 %v1499_v13, 0.0  ;;  %v1452_v39 = vmul.f32 1.050701, %v1436_v28 }
 0x168   : > { %2379 = vpow2.f32 %v1476_v9  ;;  %v1514_v23 = vmax.f32 %v1498_v18, 0.0 }
 0x169   : > { %v1324_v17 = vpop.f32.mrf.mxu3  ;;  %v1531_v21 = vsub.f32 0.0, %v1515_v16 }
 0x16a   : > { %v1311_v14 = vpop.f32.mrf.mxu2  ;;  %v1530_v30 = vsub.f32 0.0, %v1514_v23 }
 0x16b   : > { %v1547_v25 = vmul.f32 1.7580993, %v1531_v21 }
 0x16c   : > { %v1546_v34 = vmul.f32 1.7580993, %v1530_v30 }
 0x16d   : > { %v2378_v19 = vpop.eup %2377  ;;  %v1563_v32 = vadd.f32 %v1547_v25, %v1451_v20 }
 0x16e   : > { %v2380_v22 = vpop.eup %2379  ;;  %v1500_v24 = vsub.f32 1.0, %v2378_v19  ;;  %v1562_v40 = vadd.f32 %v1546_v34, %v1450_v29 }
 0x16f   : > { %v1501_v27 = vsub.f32 1.0, %v2380_v22  ;;  %v1592_v36 = vrot.slane %v1563_v32, 4 }
 0x170   : > { %v1516_v31 = vmax.f32 %v1500_v24, 0.0 }
 0x171   : > { %v1517_v33 = vmax.f32 %v1501_v27, 0.0  ;;  %v1601_v43 = vsel %vm1598_vm0, %v1562_v40, %v1592_v36 }
 0x172   : > { %v1532_v35 = vsub.f32 0.0, %v1516_v31  ;;  %1617 = vst [vmem:[%s3032_s11 + $0x10] sm:$0xff] %v1601_v43 }
 0x173   : > { %v1533_v38 = vsub.f32 0.0, %v1517_v33 }
 0x174   : > { %v1548_v41 = vmul.f32 1.7580993, %v1532_v35 }
 0x175   : > { %v1549_v42 = vmul.f32 1.7580993, %v1533_v38 }
 0x176   : > { %v1564_v45 = vadd.f32 %v1548_v41, %v1452_v39 }
 0x177   : > { %v1565_v44 = vadd.f32 %v1549_v42, %v1453_v37 }
 0x179   : > { %v1593_v46 = vrot.slane %v1565_v44, 4  ;;  %v1348_v48 = vpop.f32.mrf.mxu1  ;;  %v1335_v51 = vpop.f32.mrf.mxu0 }
 0x17a   : > { %v1349_v49 = vadd.f32 %v1348_v48, %v3021_v8  ;;  %v1336_v52 = vadd.f32 %v1335_v51, %v3021_v8 }
 0x17b   : > { %v1602_v47 = vsel %vm1598_vm0, %v1564_v45, %v1593_v46 }
 0x17c   : > { %1618 = vst [vmem:[%s3032_s11 + $0x18] sm:$0xff] %v1602_v47  ;;  %v1480_v50 = vmul.f32 1.442695, %v1349_v49  ;;  %v1478_v56 = vmul.f32 1.442695, %v1336_v52  ;;  %v1439_v0 = vmax.f32 %v1349_v49, 0.0 }
 0x17d   : > { %v1438_v6 = vmax.f32 %v1336_v52, 0.0 }
 0x17e   : > { %2381 = vpow2.f32 %v1480_v50  ;;  %v1455_v10 = vmul.f32 1.050701, %v1439_v0 }
 0x17f   : > { %2383 = vpow2.f32 %v1478_v56  ;;  %v1454_v18 = vmul.f32 1.050701, %v1438_v6 }
 0x181   : > { %v1374_v55 = vpop.f32.mrf.mxu3  ;;  %v1350_v60 = vpop.f32.mrf.mxu1 }
 0x182   : > { %v1361_v54 = vpop.f32.mrf.mxu2  ;;  %v1375_v58 = vadd.f32 %v1374_v55, %v3021_v8  ;;  %v1337_v63 = vpop.f32.mrf.mxu0 }
 0x183   : > { %v1362_v57 = vadd.f32 %v1361_v54, %v3021_v8 }
 0x184   : > { %v1484_v61 = vmul.f32 1.442695, %v1375_v58  ;;  %v2382_v62 = vpop.eup %2381  ;;  %v1441_v16 = vmax.f32 %v1375_v58, 0.0 }
 0x185   : > { %v1482_v59 = vmul.f32 1.442695, %v1362_v57  ;;  %v1503_v1 = vsub.f32 1.0, %v2382_v62  ;;  %v2384_v3 = vpop.eup %2383  ;;  %v1440_v53 = vmax.f32 %v1362_v57, 0.0 }
 0x186   : > { %v1502_v7 = vsub.f32 1.0, %v2384_v3  ;;  %v1457_v26 = vmul.f32 1.050701, %v1441_v16 }
 0x187   : > { %2385 = vpow2.f32 %v1482_v59  ;;  %v1519_v4 = vmax.f32 %v1503_v1, 0.0  ;;  %v1456_v28 = vmul.f32 1.050701, %v1440_v53 }
 0x188   : > { %2387 = vpow2.f32 %v1484_v61  ;;  %v1518_v13 = vmax.f32 %v1502_v7, 0.0 }
 0x189   : > { %v1376_v5 = vpop.f32.mrf.mxu3  ;;  %v1535_v11 = vsub.f32 0.0, %v1519_v4 }
 0x18a   : > { %v1363_v2 = vpop.f32.mrf.mxu2  ;;  %v1534_v19 = vsub.f32 0.0, %v1518_v13 }
 0x18b   : > { %v1551_v15 = vmul.f32 1.7580993, %v1535_v11 }
 0x18c   : > { %v1550_v23 = vmul.f32 1.7580993, %v1534_v19 }
 0x18d   : > { %v2386_v9 = vpop.eup %2385  ;;  %v1567_v21 = vadd.f32 %v1551_v15, %v1455_v10 }
 0x18e   : > { %v2388_v12 = vpop.eup %2387  ;;  %v1504_v14 = vsub.f32 1.0, %v2386_v9  ;;  %v1566_v29 = vadd.f32 %v1550_v23, %v1454_v18 }
 0x18f   : > { %v1505_v17 = vsub.f32 1.0, %v2388_v12  ;;  %v1594_v25 = vrot.slane %v1567_v21, 4 }
 0x190   : > { %v1520_v20 = vmax.f32 %v1504_v14, 0.0 }
 0x191   : > { %v1521_v22 = vmax.f32 %v1505_v17, 0.0  ;;  %v1603_v32 = vsel %vm1598_vm0, %v1566_v29, %v1594_v25 }
 0x192   : > { %v1536_v24 = vsub.f32 0.0, %v1520_v20  ;;  %1619 = vst [vmem:[%s3032_s11 + $0x20] sm:$0xff] %v1603_v32 }
 0x193   : > { %v1537_v27 = vsub.f32 0.0, %v1521_v22 }
 0x194   : > { %v1552_v30 = vmul.f32 1.7580993, %v1536_v24 }
 0x195   : > { %v1553_v31 = vmul.f32 1.7580993, %v1537_v27 }
 0x196   : > { %v1568_v34 = vadd.f32 %v1552_v30, %v1456_v28 }
 0x197   : > { %v1569_v33 = vadd.f32 %v1553_v31, %v1457_v26 }
 0x199   : > { %v1595_v35 = vrot.slane %v1569_v33, 4  ;;  %v1387_v36 = vpop.f32.mrf.mxu0  ;;  %v1400_v38 = vpop.f32.mrf.mxu1 }
 0x19a   : > { %v1388_v37 = vadd.f32 %v1387_v36, %v3021_v8  ;;  %v1401_v40 = vadd.f32 %v1400_v38, %v3021_v8 }
 0x19b   : > { %v1604_v39 = vsel %vm1598_vm0, %v1568_v34, %v1595_v35 }
 0x19c   : > { %1620 = vst [vmem:[%s3032_s11 + $0x28] sm:$0xff] %v1604_v39  ;;  %v1486_v41 = vmul.f32 1.442695, %v1388_v37  ;;  %v1488_v42 = vmul.f32 1.442695, %v1401_v40  ;;  %v1443_v57 = vmax.f32 %v1401_v40, 0.0 }
 0x19d   : > { %v1442_v62 = vmax.f32 %v1388_v37, 0.0 }
 0x19e   : > { %2389 = vpow2.f32 %v1486_v41  ;;  %v1459_v1 = vmul.f32 1.050701, %v1443_v57 }
 0x19f   : > { %2391 = vpow2.f32 %v1488_v42  ;;  %v1458_v6 = vmul.f32 1.050701, %v1442_v62 }
 0x1a0   : > { %v1413_v43 = vpop.f32.mrf.mxu2 }
 0x1a1   : > { %v1414_v44 = vadd.f32 %v1413_v43, %v3021_v8  ;;  %v1426_v45 = vpop.f32.mrf.mxu3  ;;  %v1389_v46 = vpop.f32.mrf.mxu0 }
 0x1a2   : > { %v1427_v47 = vadd.f32 %v1426_v45, %v3021_v8  ;;  %v1402_v48 = vpop.f32.mrf.mxu1 }
 0x1a3   : > { %v1490_v49 = vmul.f32 1.442695, %v1414_v44  ;;  %v1444_v15 = vmax.f32 %v1414_v44, 0.0 }
 0x1a4   : > { %v2390_v50 = vpop.eup %2389  ;;  %v1492_v51 = vmul.f32 1.442695, %v1427_v47  ;;  %v1445_v10 = vmax.f32 %v1427_v47, 0.0 }
 0x1a5   : > { %v2392_v52 = vpop.eup %2391  ;;  %v1506_v54 = vsub.f32 1.0, %v2390_v50  ;;  %2393 = vpow2.f32 %v1490_v49  ;;  %v1460_v20 = vmul.f32 1.050701, %v1444_v15 }
 0x1a6   : > { %v1507_v55 = vsub.f32 1.0, %v2392_v52  ;;  %2395 = vpow2.f32 %v1492_v51  ;;  %v1461_v53 = vmul.f32 1.050701, %v1445_v10 }
 0x1a7   : > { %v1522_v56 = vmax.f32 %v1506_v54, 0.0 }
 0x1a8   : > { %v1523_v58 = vmax.f32 %v1507_v55, 0.0  ;;  %v1415_v59 = vpop.f32.mrf.mxu2 }
 0x1a9   : > { %v1538_v60 = vsub.f32 0.0, %v1522_v56  ;;  %v1428_v61 = vpop.f32.mrf.mxu3 }
 0x1aa   : > { %v1539_v63 = vsub.f32 0.0, %v1523_v58 }
 0x1ab   : > { %v2394_v0 = vpop.eup %2393  ;;  %v1554_v2 = vmul.f32 1.7580993, %v1538_v60 }
 0x1ac   : > { %v2396_v8 = vpop.eup %2395  ;;  %v1555_v3 = vmul.f32 1.7580993, %v1539_v63  ;;  %v1508_v4 = vsub.f32 1.0, %v2394_v0 }
 0x1ad   : > { %v1509_v5 = vsub.f32 1.0, %v2396_v8  ;;  %v1570_v12 = vadd.f32 %v1554_v2, %v1458_v6 }
 0x1ae   : > { %v1571_v7 = vadd.f32 %v1555_v3, %v1459_v1  ;;  %v1524_v9 = vmax.f32 %v1508_v4, 0.0 }
 0x1af   : > { %v1525_v11 = vmax.f32 %v1509_v5, 0.0 }
 0x1b0   : > { %v1596_v13 = vrot.slane %v1571_v7, 4  ;;  %v1540_v14 = vsub.f32 0.0, %v1524_v9 }
 0x1b1   : > { %v1541_v16 = vsub.f32 0.0, %v1525_v11 }
 0x1b2   : > { %v1605_v17 = vsel %vm1598_vm0, %v1570_v12, %v1596_v13  ;;  %v1556_v18 = vmul.f32 1.7580993, %v1540_v14 }
 0x1b3   : > { %1621 = vst [vmem:[%s3032_s11 + $0x30] sm:$0xff] %v1605_v17  ;;  %v1557_v19 = vmul.f32 1.7580993, %v1541_v16 }
 0x1b4   : > { %v1572_v22 = vadd.f32 %v1556_v18, %v1460_v20 }
 0x1b5   : > { %v1573_v21 = vadd.f32 %v1557_v19, %v1461_v53 }
 0x1b7   : > { %v1597_v23 = vrot.slane %v1573_v21, 4 }
 0x1b9   : > { %v1606_v24 = vsel %vm1598_vm0, %v1572_v22, %v1597_v23 }
 0x1ba   : > { %1622 = vst [vmem:[%s3032_s11 + $0x38] sm:$0xff] %v1606_v24 }
 0x1bb PF: > { %p10_p9 = scmp.ge.s32.totalorder %s2459_s16, 6   ;;  %s3076_s12 = smov %s2415_s13 }
 0x1bc   : > { %s3077_s13 = smov %s2468_s19  ;;  %s3078_s14 = smov %s2459_s16 }
 0x1bd   :  { %12 = sbr.rel (!%p10_p9) target bundleno = 2 (0x2), region = 90 }

// kernel: ipn_forward.13
= control target key start
LH: loop header
LB: loop body
LE: loop exit
PB: predicated region body
PF: predicated region fallthrough
CT: control target
= control target key end

     0   :  { %s1394_s12 = smov 0   ;;  %s1396_s13 = smov 0   ;;  %s1744_s0 = inlined_call_operand.vmem [shape: bf16[4,128], index: 0, kind: input, shape index: {}]   ;;  %s1745_s1 = inlined_call_operand.vmem [shape: bf16[128,2048], index: 1, kind: input, shape index: {}]   ;;  %s1746_s2 = inlined_call_operand.vmem [shape: f32[4,1], index: 2, kind: input, shape index: {}]   ;;  %s1747_s3 = inlined_call_operand.vmem [shape: f32[4,2048], index: 3, kind: output, shape index: {}]  }
   0x1   :  { %s1398_s14 = smov 0  }
   0x2 LB: > { %s973_s15 = sadd.s32 4294967295, %s1371_s14   ;;  %s1411_s16 = sadd.s32 1, %s1371_s14   ;;  %s1371_s14 = sphi %s1398_s14, %s1750_s14   ;;  %s1367_s13 = sphi %s1396_s13, %s1749_s13   ;;  %s1363_s12 = sphi %s1394_s12, %s1748_s12  }
   0x3   : > { %s38_s17 = ssub.s32 %s1371_s14, %s1411_s16  ;;  %s41_s18 = sadd.s32 1, %s1367_s13 }
   0x4   : > { %p39_p0 = scmp.eq.s32.totalorder %s38_s17, 0  ;;  %p48_p1 = scmp.ne.s32.totalorder %s1367_s13, %s1363_s12 }
   0x5   : > { %p49_p2 = scmp.eq.s32.totalorder %s1371_s14, 0  ;;  %p976_p4 = scmp.ge.s32.totalorder %s1371_s14, 2 }
   0x6   : > { %s1420_s19 = scalar_select %p39_p0, %s1367_s13, %s41_s18  }
   0x7   : > { %p50_p3 = por %p49_p2, %p48_p1  ;;  %127 = sbr.rel (%p976_p4) target bundleno = 80 (0x50), region = 24 }
   0xc   : > { %130 = sbr.rel (!%p50_p3) target bundleno = 80 (0x50), region = 28  ;;  %s132_s20 = sand.u32 (%p50_p3), 1, %s1367_s13  }
   0xd   : > { %s1242_s21 = sshll.u32 (%p50_p3), %s1371_s14, 5  ;;  %s977_s22 = sshll.u32 (%p50_p3), %s132_s20, 9 }
   0xe   : > { %s1428_s25 = scalar_lea.vmem (%p50_p3), %s1745_s1, %s1242_s21  ;;  %s1433_s26 = scalar_lea.vmem (%p50_p3), [#allocation2], %s977_s22 }
   0xf   : > { %v150_v0 = vld [vmem:[%s1428_s25] sm:$0xff] (%p50_p3)  ;;  %v152_v1 = vld [vmem:[%s1428_s25 + $0x8] sm:$0xff] (%p50_p3)  ;;  %v154_v2 = vld [vmem:[%s1428_s25 + $0x10] sm:$0xff] (%p50_p3) }
  0x10   : > { %151 = vst [vmem:[%s1433_s26] sm:$0xff] (%p50_p3), %v150_v0  ;;  %v156_v3 = vld [vmem:[%s1428_s25 + $0x18] sm:$0xff] (%p50_p3)  ;;  %v158_v4 = vld [vmem:[%s1428_s25 + $0x40] sm:$0xff] (%p50_p3)  ;;  %v160_v5 = vld [vmem:[%s1428_s25 + $0x48] sm:$0xff] (%p50_p3) }
  0x11   : > { %153 = vst [vmem:[%s1433_s26 + $0x8] sm:$0xff] %v152_v1  ;;  %v162_v6 = vld [vmem:[%s1428_s25 + $0x50] sm:$0xff]  ;;  %v164_v7 = vld [vmem:[%s1428_s25 + $0x58] sm:$0xff]  ;;  %v166_v8 = vld [vmem:[%s1428_s25 + $0x80] sm:$0xff] }
  0x12   : > { %155 = vst [vmem:[%s1433_s26 + $0x10] sm:$0xff] %v154_v2  ;;  %v168_v9 = vld [vmem:[%s1428_s25 + $0x88] sm:$0xff]  ;;  %v170_v10 = vld [vmem:[%s1428_s25 + $0x90] sm:$0xff]  ;;  %v172_v11 = vld [vmem:[%s1428_s25 + $0x98] sm:$0xff] }
  0x13   : > { %157 = vst [vmem:[%s1433_s26 + $0x18] sm:$0xff] %v156_v3  ;;  %v174_v12 = vld [vmem:[%s1428_s25 + $0xc0] sm:$0xff]  ;;  %v176_v13 = vld [vmem:[%s1428_s25 + $0xc8] sm:$0xff]  ;;  %v178_v14 = vld [vmem:[%s1428_s25 + $0xd0] sm:$0xff] }
  0x14   : > { %159 = vst [vmem:[%s1433_s26 + $0x20] sm:$0xff] %v158_v4  ;;  %v180_v15 = vld [vmem:[%s1428_s25 + $0xd8] sm:$0xff]  ;;  %v182_v16 = vld [vmem:[%s1428_s25 + $0x100] sm:$0xff]  ;;  %v184_v17 = vld [vmem:[%s1428_s25 + $0x108] sm:$0xff] }
  0x15   : > { %161 = vst [vmem:[%s1433_s26 + $0x28] sm:$0xff] %v160_v5  ;;  %v186_v18 = vld [vmem:[%s1428_s25 + $0x110] sm:$0xff]  ;;  %v188_v19 = vld [vmem:[%s1428_s25 + $0x118] sm:$0xff]  ;;  %v190_v20 = vld [vmem:[%s1428_s25 + $0x140] sm:$0xff] }
  0x16   : > { %163 = vst [vmem:[%s1433_s26 + $0x30] sm:$0xff] %v162_v6  ;;  %v192_v21 = vld [vmem:[%s1428_s25 + $0x148] sm:$0xff]  ;;  %v194_v22 = vld [vmem:[%s1428_s25 + $0x150] sm:$0xff]  ;;  %v196_v23 = vld [vmem:[%s1428_s25 + $0x158] sm:$0xff] }
  0x17   : > { %165 = vst [vmem:[%s1433_s26 + $0x38] sm:$0xff] %v164_v7  ;;  %v198_v24 = vld [vmem:[%s1428_s25 + $0x180] sm:$0xff]  ;;  %v200_v25 = vld [vmem:[%s1428_s25 + $0x188] sm:$0xff]  ;;  %v202_v26 = vld [vmem:[%s1428_s25 + $0x190] sm:$0xff] }
  0x18   : > { %167 = vst [vmem:[%s1433_s26 + $0x40] sm:$0xff] %v166_v8  ;;  %v204_v27 = vld [vmem:[%s1428_s25 + $0x198] sm:$0xff]  ;;  %v206_v28 = vld [vmem:[%s1428_s25 + $0x1c0] sm:$0xff]  ;;  %v208_v29 = vld [vmem:[%s1428_s25 + $0x1c8] sm:$0xff] }
  0x19   : > { %169 = vst [vmem:[%s1433_s26 + $0x48] sm:$0xff] %v168_v9  ;;  %v210_v30 = vld [vmem:[%s1428_s25 + $0x1d0] sm:$0xff]  ;;  %v212_v31 = vld [vmem:[%s1428_s25 + $0x1d8] sm:$0xff]  ;;  %v214_v32 = vld [vmem:[%s1428_s25 + $0x200] sm:$0xff] }
  0x1a   : > { %171 = vst [vmem:[%s1433_s26 + $0x50] sm:$0xff] %v170_v10  ;;  %v216_v33 = vld [vmem:[%s1428_s25 + $0x208] sm:$0xff]  ;;  %v218_v34 = vld [vmem:[%s1428_s25 + $0x210] sm:$0xff]  ;;  %v220_v35 = vld [vmem:[%s1428_s25 + $0x218] sm:$0xff] }
  0x1b   : > { %173 = vst [vmem:[%s1433_s26 + $0x58] sm:$0xff] %v172_v11  ;;  %v222_v36 = vld [vmem:[%s1428_s25 + $0x240] sm:$0xff]  ;;  %v224_v37 = vld [vmem:[%s1428_s25 + $0x248] sm:$0xff]  ;;  %v226_v38 = vld [vmem:[%s1428_s25 + $0x250] sm:$0xff] }
  0x1c   : > { %175 = vst [vmem:[%s1433_s26 + $0x60] sm:$0xff] %v174_v12  ;;  %v228_v39 = vld [vmem:[%s1428_s25 + $0x258] sm:$0xff]  ;;  %v230_v40 = vld [vmem:[%s1428_s25 + $0x280] sm:$0xff]  ;;  %v232_v41 = vld [vmem:[%s1428_s25 + $0x288] sm:$0xff] }
  0x1d   : > { %177 = vst [vmem:[%s1433_s26 + $0x68] sm:$0xff] %v176_v13  ;;  %v234_v42 = vld [vmem:[%s1428_s25 + $0x290] sm:$0xff]  ;;  %v236_v43 = vld [vmem:[%s1428_s25 + $0x298] sm:$0xff]  ;;  %v238_v44 = vld [vmem:[%s1428_s25 + $0x2c0] sm:$0xff] }
  0x1e   : > { %179 = vst [vmem:[%s1433_s26 + $0x70] sm:$0xff] %v178_v14  ;;  %v240_v45 = vld [vmem:[%s1428_s25 + $0x2c8] sm:$0xff]  ;;  %v242_v46 = vld [vmem:[%s1428_s25 + $0x2d0] sm:$0xff]  ;;  %v244_v47 = vld [vmem:[%s1428_s25 + $0x2d8] sm:$0xff] }
  0x1f   : > { %181 = vst [vmem:[%s1433_s26 + $0x78] sm:$0xff] %v180_v15  ;;  %v246_v48 = vld [vmem:[%s1428_s25 + $0x300] sm:$0xff]  ;;  %v248_v49 = vld [vmem:[%s1428_s25 + $0x308] sm:$0xff]  ;;  %v250_v50 = vld [vmem:[%s1428_s25 + $0x310] sm:$0xff] }
  0x20   : > { %183 = vst [vmem:[%s1433_s26 + $0x80] sm:$0xff] %v182_v16  ;;  %v252_v51 = vld [vmem:[%s1428_s25 + $0x318] sm:$0xff]  ;;  %v254_v52 = vld [vmem:[%s1428_s25 + $0x340] sm:$0xff]  ;;  %v256_v53 = vld [vmem:[%s1428_s25 + $0x348] sm:$0xff] }
  0x21   : > { %185 = vst [vmem:[%s1433_s26 + $0x88] sm:$0xff] %v184_v17  ;;  %v258_v54 = vld [vmem:[%s1428_s25 + $0x350] sm:$0xff]  ;;  %v260_v55 = vld [vmem:[%s1428_s25 + $0x358] sm:$0xff]  ;;  %v262_v56 = vld [vmem:[%s1428_s25 + $0x380] sm:$0xff] }
  0x22   : > { %187 = vst [vmem:[%s1433_s26 + $0x90] sm:$0xff] %v186_v18  ;;  %v264_v57 = vld [vmem:[%s1428_s25 + $0x388] sm:$0xff]  ;;  %v266_v58 = vld [vmem:[%s1428_s25 + $0x390] sm:$0xff]  ;;  %v268_v59 = vld [vmem:[%s1428_s25 + $0x398] sm:$0xff] }
  0x23   : > { %189 = vst [vmem:[%s1433_s26 + $0x98] sm:$0xff] %v188_v19  ;;  %v270_v60 = vld [vmem:[%s1428_s25 + $0x3c0] sm:$0xff]  ;;  %v272_v61 = vld [vmem:[%s1428_s25 + $0x3c8] sm:$0xff]  ;;  %v274_v62 = vld [vmem:[%s1428_s25 + $0x3d0] sm:$0xff] }
  0x24   : > { %191 = vst [vmem:[%s1433_s26 + $0xa0] sm:$0xff] %v190_v20  ;;  %v276_v63 = vld [vmem:[%s1428_s25 + $0x3d8] sm:$0xff] }
  0x25   : > { %193 = vst [vmem:[%s1433_s26 + $0xa8] sm:$0xff] %v192_v21 }
  0x26   : > { %195 = vst [vmem:[%s1433_s26 + $0xb0] sm:$0xff] %v194_v22 }
  0x27   : > { %197 = vst [vmem:[%s1433_s26 + $0xb8] sm:$0xff] %v196_v23 }
  0x28   : > { %199 = vst [vmem:[%s1433_s26 + $0xc0] sm:$0xff] %v198_v24 }
  0x29   : > { %201 = vst [vmem:[%s1433_s26 + $0xc8] sm:$0xff] %v200_v25 }
  0x2a   : > { %203 = vst [vmem:[%s1433_s26 + $0xd0] sm:$0xff] %v202_v26 }
  0x2b   : > { %205 = vst [vmem:[%s1433_s26 + $0xd8] sm:$0xff] %v204_v27 }
  0x2c   : > { %207 = vst [vmem:[%s1433_s26 + $0xe0] sm:$0xff] %v206_v28 }
  0x2d   : > { %209 = vst [vmem:[%s1433_s26 + $0xe8] sm:$0xff] %v208_v29 }
  0x2e   : > { %211 = vst [vmem:[%s1433_s26 + $0xf0] sm:$0xff] %v210_v30 }
  0x2f   : > { %213 = vst [vmem:[%s1433_s26 + $0xf8] sm:$0xff] %v212_v31 }
  0x30   : > { %215 = vst [vmem:[%s1433_s26 + $0x100] sm:$0xff] %v214_v32 }
  0x31   : > { %217 = vst [vmem:[%s1433_s26 + $0x108] sm:$0xff] %v216_v33 }
  0x32   : > { %219 = vst [vmem:[%s1433_s26 + $0x110] sm:$0xff] %v218_v34 }
  0x33   : > { %221 = vst [vmem:[%s1433_s26 + $0x118] sm:$0xff] %v220_v35 }
  0x34   : > { %223 = vst [vmem:[%s1433_s26 + $0x120] sm:$0xff] %v222_v36 }
  0x35   : > { %225 = vst [vmem:[%s1433_s26 + $0x128] sm:$0xff] %v224_v37 }
  0x36   : > { %227 = vst [vmem:[%s1433_s26 + $0x130] sm:$0xff] %v226_v38 }
  0x37   : > { %229 = vst [vmem:[%s1433_s26 + $0x138] sm:$0xff] %v228_v39 }
  0x38   : > { %231 = vst [vmem:[%s1433_s26 + $0x140] sm:$0xff] %v230_v40 }
  0x39   : > { %233 = vst [vmem:[%s1433_s26 + $0x148] sm:$0xff] %v232_v41 }
  0x3a   : > { %235 = vst [vmem:[%s1433_s26 + $0x150] sm:$0xff] %v234_v42 }
  0x3b   : > { %237 = vst [vmem:[%s1433_s26 + $0x158] sm:$0xff] %v236_v43 }
  0x3c   : > { %239 = vst [vmem:[%s1433_s26 + $0x160] sm:$0xff] %v238_v44 }
  0x3d   : > { %241 = vst [vmem:[%s1433_s26 + $0x168] sm:$0xff] %v240_v45 }
  0x3e   : > { %243 = vst [vmem:[%s1433_s26 + $0x170] sm:$0xff] %v242_v46 }
  0x3f   : > { %245 = vst [vmem:[%s1433_s26 + $0x178] sm:$0xff] %v244_v47 }
  0x40   : > { %247 = vst [vmem:[%s1433_s26 + $0x180] sm:$0xff] %v246_v48 }
  0x41   : > { %249 = vst [vmem:[%s1433_s26 + $0x188] sm:$0xff] %v248_v49 }
  0x42   : > { %251 = vst [vmem:[%s1433_s26 + $0x190] sm:$0xff] %v250_v50 }
  0x43   : > { %253 = vst [vmem:[%s1433_s26 + $0x198] sm:$0xff] %v252_v51 }
  0x44   : > { %255 = vst [vmem:[%s1433_s26 + $0x1a0] sm:$0xff] %v254_v52 }
  0x45   : > { %257 = vst [vmem:[%s1433_s26 + $0x1a8] sm:$0xff] %v256_v53 }
  0x46   : > { %259 = vst [vmem:[%s1433_s26 + $0x1b0] sm:$0xff] %v258_v54 }
  0x47   : > { %261 = vst [vmem:[%s1433_s26 + $0x1b8] sm:$0xff] %v260_v55 }
  0x48   : > { %263 = vst [vmem:[%s1433_s26 + $0x1c0] sm:$0xff] %v262_v56 }
  0x49   : > { %265 = vst [vmem:[%s1433_s26 + $0x1c8] sm:$0xff] %v264_v57 }
  0x4a   : > { %267 = vst [vmem:[%s1433_s26 + $0x1d0] sm:$0xff] %v266_v58 }
  0x4b   : > { %269 = vst [vmem:[%s1433_s26 + $0x1d8] sm:$0xff] %v268_v59 }
  0x4c   : > { %271 = vst [vmem:[%s1433_s26 + $0x1e0] sm:$0xff] %v270_v60 }
  0x4d   : > { %273 = vst [vmem:[%s1433_s26 + $0x1e8] sm:$0xff] %v272_v61 }
  0x4e   : > { %275 = vst [vmem:[%s1433_s26 + $0x1f0] sm:$0xff] %v274_v62 }
  0x4f   : > { %277 = vst [vmem:[%s1433_s26 + $0x1f8] sm:$0xff] %v276_v63 }
  0x50 PF: > { %p980_p5 = scmp.ge.s32.totalorder %s1371_s14, 1  ;;  %p282_p6 = scmp.lt.s32.totalorder %s1371_s14, 3 }
  0x52   : > { %p283_p7 = pnand %p980_p5, %p282_p6 }
  0x53   : > { %s289_s27 = sand.u32 (!%p283_p7), 1, %s1363_s12   ;;  %s982_s7 = sshll.u32 (!%p283_p7), %s973_s15, 3 }
  0x54   : > { %286 = sbr.rel (%p283_p7) target bundleno = 315 (0x13b), region = 51  ;;  %s981_s28 = sshll.u32 (!%p283_p7), %s289_s27, 9 }
  0x55   : > { %s1563_s29 = scalar_lea.vmem (!%p283_p7), [#allocation2], %s981_s28  ;;  %p314_p8 = scmp.lt.s32.totalorder (!%p283_p7), %s982_s7, 15 }
  0x59   : > { %v1210_v0 = vld [vmem:[%s1563_s29 + $0x1c0] sm:$0xf]  ;;  %v1299_v2 = vld [vmem:[%s1563_s29 + $0x1c4] sm:$0xf]  ;;  %v1218_v5 = vld [vmem:[%s1563_s29 + $0x1c8] sm:$0xf] }
  0x5a   : > { %v1303_v1 = vld [vmem:[%s1563_s29 + $0x1dc] sm:$0xf0]  ;;  %v1212_v4 = vld [vmem:[%s1563_s29 + $0x1e0] sm:$0xf0]  ;;  %v1304_v6 = vld [vmem:[%s1563_s29 + $0x1e4] sm:$0xf0] }
  0x5b   : > { %v1211_v3 = vor.u32 %v1303_v1, %v1210_v0  ;;  %v1215_v7 = vor.u32 %v1299_v2, %v1212_v4  ;;  %v1219_v8 = vor.u32 %v1304_v6, %v1218_v5  ;;  %v1300_v9 = vld [vmem:[%s1563_s29 + $0x1cc] sm:$0xf]  ;;  %v1178_v11 = vld [vmem:[%s1563_s29 + $0x180] sm:$0xf]  ;;  %v1291_v14 = vld [vmem:[%s1563_s29 + $0x184] sm:$0xf] }
  0x5c   : > { %v1220_v10 = vld [vmem:[%s1563_s29 + $0x1e8] sm:$0xf0]  ;;  %v1295_v13 = vld [vmem:[%s1563_s29 + $0x19c] sm:$0xf0]  ;;  %v1180_v15 = vld [vmem:[%s1563_s29 + $0x1a0] sm:$0xf0] }
  0x5d   : > { %710 = vmatpush.bf16.msra.mxu0 %v1211_v3  ;;  %v1223_v12 = vor.u32 %v1300_v9, %v1220_v10  ;;  %723 = vmatpush.bf16.msra.mxu1 %v1215_v7  ;;  %v1179_v16 = vor.u32 %v1295_v13, %v1178_v11  ;;  %v1183_v17 = vor.u32 %v1291_v14, %v1180_v15  ;;  %v1186_v18 = vld [vmem:[%s1563_s29 + $0x188] sm:$0xf]  ;;  %v1292_v20 = vld [vmem:[%s1563_s29 + $0x18c] sm:$0xf]  ;;  %v1146_v23 = vld [vmem:[%s1563_s29 + $0x140] sm:$0xf] }
  0x5e   : > { %736 = vmatpush.bf16.msra.mxu2 %v1219_v8  ;;  %v1296_v19 = vld [vmem:[%s1563_s29 + $0x1a4] sm:$0xf0]  ;;  %v1188_v22 = vld [vmem:[%s1563_s29 + $0x1a8] sm:$0xf0]  ;;  %v1287_v24 = vld [vmem:[%s1563_s29 + $0x15c] sm:$0xf0] }
  0x5f   : > { %749 = vmatpush.bf16.msra.mxu3 %v1223_v12  ;;  %v1187_v21 = vor.u32 %v1296_v19, %v1186_v18  ;;  %v1191_v25 = vor.u32 %v1292_v20, %v1188_v22  ;;  %v1283_v26 = vld [vmem:[%s1563_s29 + $0x144] sm:$0xf]  ;;  %v1154_v28 = vld [vmem:[%s1563_s29 + $0x148] sm:$0xf]  ;;  %v1147_v29 = vor.u32 %v1287_v24, %v1146_v23  ;;  %v1284_v31 = vld [vmem:[%s1563_s29 + $0x14c] sm:$0xf] }
  0x60   : > { %v1148_v27 = vld [vmem:[%s1563_s29 + $0x160] sm:$0xf0]  ;;  %v1288_v30 = vld [vmem:[%s1563_s29 + $0x164] sm:$0xf0]  ;;  %v1156_v32 = vld [vmem:[%s1563_s29 + $0x168] sm:$0xf0] }
  0x61   : > { %711 = vmatpush.bf16.msra.mxu0 %v1179_v16  ;;  %724 = vmatpush.bf16.msra.mxu1 %v1183_v17  ;;  %v1151_v33 = vor.u32 %v1283_v26, %v1148_v27  ;;  %v1155_v34 = vor.u32 %v1288_v30, %v1154_v28  ;;  %v1114_v35 = vld [vmem:[%s1563_s29 + $0x100] sm:$0xf]  ;;  %v1275_v37 = vld [vmem:[%s1563_s29 + $0x104] sm:$0xf]  ;;  %v1159_v38 = vor.u32 %v1284_v31, %v1156_v32  ;;  %v1122_v40 = vld [vmem:[%s1563_s29 + $0x108] sm:$0xf] }
  0x62   : > { %737 = vmatpush.bf16.msra.mxu2 %v1187_v21  ;;  %v1279_v36 = vld [vmem:[%s1563_s29 + $0x11c] sm:$0xf0]  ;;  %v1116_v39 = vld [vmem:[%s1563_s29 + $0x120] sm:$0xf0]  ;;  %v1280_v41 = vld [vmem:[%s1563_s29 + $0x124] sm:$0xf0] }
  0x63   : > { %750 = vmatpush.bf16.msra.mxu3 %v1191_v25  ;;  %v1276_v42 = vld [vmem:[%s1563_s29 + $0x10c] sm:$0xf]  ;;  %v1115_v44 = vor.u32 %v1279_v36, %v1114_v35  ;;  %v1119_v45 = vor.u32 %v1275_v37, %v1116_v39  ;;  %v1123_v46 = vor.u32 %v1280_v41, %v1122_v40  ;;  %v1082_v47 = vld [vmem:[%s1563_s29 + $0xc0] sm:$0xf]  ;;  %v1267_v49 = vld [vmem:[%s1563_s29 + $0xc4] sm:$0xf] }
  0x64   : > { %v1124_v43 = vld [vmem:[%s1563_s29 + $0x128] sm:$0xf0]  ;;  %v1271_v48 = vld [vmem:[%s1563_s29 + $0xdc] sm:$0xf0]  ;;  %v1084_v51 = vld [vmem:[%s1563_s29 + $0xe0] sm:$0xf0] }
  0x65   : > { %712 = vmatpush.bf16.msra.mxu0 %v1147_v29  ;;  %725 = vmatpush.bf16.msra.mxu1 %v1151_v33  ;;  %v1127_v50 = vor.u32 %v1276_v42, %v1124_v43  ;;  %v1090_v52 = vld [vmem:[%s1563_s29 + $0xc8] sm:$0xf]  ;;  %v1268_v54 = vld [vmem:[%s1563_s29 + $0xcc] sm:$0xf]  ;;  %v1083_v56 = vor.u32 %v1271_v48, %v1082_v47  ;;  %v1087_v57 = vor.u32 %v1267_v49, %v1084_v51  ;;  %v1050_v59 = vld [vmem:[%s1563_s29 + $0x80] sm:$0xf] }
  0x66   : > { %738 = vmatpush.bf16.msra.mxu2 %v1155_v34  ;;  %v1272_v53 = vld [vmem:[%s1563_s29 + $0xe4] sm:$0xf0]  ;;  %v1092_v55 = vld [vmem:[%s1563_s29 + $0xe8] sm:$0xf0]  ;;  %v1263_v60 = vld [vmem:[%s1563_s29 + $0x9c] sm:$0xf0] }
  0x67   : > { %751 = vmatpush.bf16.msra.mxu3 %v1159_v38  ;;  %v1091_v58 = vor.u32 %v1272_v53, %v1090_v52  ;;  %v1259_v61 = vld [vmem:[%s1563_s29 + $0x84] sm:$0xf]  ;;  %v1095_v62 = vor.u32 %v1268_v54, %v1092_v55  ;;  %v1058_v0 = vld [vmem:[%s1563_s29 + $0x88] sm:$0xf]  ;;  %v1260_v2 = vld [vmem:[%s1563_s29 + $0x8c] sm:$0xf]  ;;  %v1051_v4 = vor.u32 %v1263_v60, %v1050_v59 }
  0x68   : > { %v1052_v63 = vld [vmem:[%s1563_s29 + $0xa0] sm:$0xf0]  ;;  %v1264_v1 = vld [vmem:[%s1563_s29 + $0xa4] sm:$0xf0]  ;;  %v1060_v3 = vld [vmem:[%s1563_s29 + $0xa8] sm:$0xf0] }
  0x69   : > { %713 = vmatpush.bf16.msra.mxu0 %v1115_v44  ;;  %726 = vmatpush.bf16.msra.mxu1 %v1119_v45  ;;  %v1055_v5 = vor.u32 %v1259_v61, %v1052_v63  ;;  %v1059_v6 = vor.u32 %v1264_v1, %v1058_v0  ;;  %v1018_v7 = vld [vmem:[%s1563_s29 + $0x40] sm:$0xf]  ;;  %v1251_v9 = vld [vmem:[%s1563_s29 + $0x44] sm:$0xf]  ;;  %v1063_v10 = vor.u32 %v1260_v2, %v1060_v3  ;;  %v1026_v12 = vld [vmem:[%s1563_s29 + $0x48] sm:$0xf] }
  0x6a   : > { %739 = vmatpush.bf16.msra.mxu2 %v1123_v46  ;;  %v1255_v8 = vld [vmem:[%s1563_s29 + $0x5c] sm:$0xf0]  ;;  %v1020_v11 = vld [vmem:[%s1563_s29 + $0x60] sm:$0xf0]  ;;  %v1256_v13 = vld [vmem:[%s1563_s29 + $0x64] sm:$0xf0] }
  0x6b   : > { %752 = vmatpush.bf16.msra.mxu3 %v1127_v50  ;;  %v1252_v14 = vld [vmem:[%s1563_s29 + $0x4c] sm:$0xf]  ;;  %v1019_v16 = vor.u32 %v1255_v8, %v1018_v7  ;;  %v986_v17 = vld [vmem:[%s1563_s29] sm:$0xf]  ;;  %v1023_v19 = vor.u32 %v1251_v9, %v1020_v11  ;;  %v1027_v20 = vor.u32 %v1256_v13, %v1026_v12  ;;  %v1243_v21 = vld [vmem:[%s1563_s29 + $0x4] sm:$0xf] }
  0x6c   : > { %v1028_v15 = vld [vmem:[%s1563_s29 + $0x68] sm:$0xf0]  ;;  %v1247_v18 = vld [vmem:[%s1563_s29 + $0x1c] sm:$0xf0]  ;;  %v988_v22 = vld [vmem:[%s1563_s29 + $0x20] sm:$0xf0] }
  0x6d   : > { %714 = vmatpush.bf16.msra.mxu0 %v1083_v56  ;;  %727 = vmatpush.bf16.msra.mxu1 %v1087_v57  ;;  %v994_v23 = vld [vmem:[%s1563_s29 + $0x8] sm:$0xf]  ;;  %v1031_v24 = vor.u32 %v1252_v14, %v1028_v15  ;;  %v1244_v26 = vld [vmem:[%s1563_s29 + $0xc] sm:$0xf]  ;;  %v1226_v28 = vld [vmem:[%s1563_s29 + $0x1d0] sm:$0xf]  ;;  %v987_v31 = vor.u32 %v1247_v18, %v986_v17  ;;  %v991_v35 = vor.u32 %v1243_v21, %v988_v22 }
  0x6e   : > { %740 = vmatpush.bf16.msra.mxu2 %v1091_v58  ;;  %v1248_v25 = vld [vmem:[%s1563_s29 + $0x24] sm:$0xf0]  ;;  %v996_v27 = vld [vmem:[%s1563_s29 + $0x28] sm:$0xf0]  ;;  %v1305_v29 = vld [vmem:[%s1563_s29 + $0x1ec] sm:$0xf0] }
  0x6f   : > { %753 = vmatpush.bf16.msra.mxu3 %v1095_v62  ;;  %v1301_v30 = vld [vmem:[%s1563_s29 + $0x1d4] sm:$0xf]  ;;  %v1234_v33 = vld [vmem:[%s1563_s29 + $0x1d8] sm:$0xf]  ;;  %v995_v36 = vor.u32 %v1248_v25, %v994_v23  ;;  %v1302_v37 = vld [vmem:[%s1563_s29 + $0x1dc] sm:$0xf]  ;;  %v999_v39 = vor.u32 %v1244_v26, %v996_v27  ;;  %v1227_v40 = vor.u32 %v1305_v29, %v1226_v28 }
  0x70   : > { %v1228_v32 = vld [vmem:[%s1563_s29 + $0x1f0] sm:$0xf0]  ;;  %v1306_v34 = vld [vmem:[%s1563_s29 + $0x1f4] sm:$0xf0]  ;;  %v1236_v38 = vld [vmem:[%s1563_s29 + $0x1f8] sm:$0xf0] }
  0x71   : > { %715 = vmatpush.bf16.msra.mxu0 %v1051_v4  ;;  %728 = vmatpush.bf16.msra.mxu1 %v1055_v5  ;;  %v1231_v41 = vor.u32 %v1301_v30, %v1228_v32  ;;  %v1235_v42 = vor.u32 %v1306_v34, %v1234_v33  ;;  %v1194_v43 = vld [vmem:[%s1563_s29 + $0x190] sm:$0xf]  ;;  %v1293_v45 = vld [vmem:[%s1563_s29 + $0x194] sm:$0xf]  ;;  %v1239_v46 = vor.u32 %v1302_v37, %v1236_v38  ;;  %v1202_v48 = vld [vmem:[%s1563_s29 + $0x198] sm:$0xf] }
  0x72   : > { %741 = vmatpush.bf16.msra.mxu2 %v1059_v6  ;;  %v1297_v44 = vld [vmem:[%s1563_s29 + $0x1ac] sm:$0xf0]  ;;  %v1196_v47 = vld [vmem:[%s1563_s29 + $0x1b0] sm:$0xf0]  ;;  %v1298_v49 = vld [vmem:[%s1563_s29 + $0x1b4] sm:$0xf0] }
  0x73   : > { %754 = vmatpush.bf16.msra.mxu3 %v1063_v10  ;;  %v1294_v50 = vld [vmem:[%s1563_s29 + $0x19c] sm:$0xf]  ;;  %v1648_v52 = vld [vmem:[%s1744_s0] sm:$0x3]  ;;  %v1195_v53 = vor.u32 %v1297_v44, %v1194_v43  ;;  %v1162_v54 = vld [vmem:[%s1563_s29 + $0x150] sm:$0xf]  ;;  %v1199_v55 = vor.u32 %v1293_v45, %v1196_v47  ;;  %v1203_v56 = vor.u32 %v1298_v49, %v1202_v48 }
  0x74   : > { %v1204_v51 = vld [vmem:[%s1563_s29 + $0x1b8] sm:$0xf0]  ;;  %v1289_v57 = vld [vmem:[%s1563_s29 + $0x16c] sm:$0xf0]  ;;  %v1285_v58 = vld [vmem:[%s1563_s29 + $0x154] sm:$0xf] }
  0x75   : > { %716 = vmatpush.bf16.msra.mxu0 %v1019_v16  ;;  %729 = vmatpush.bf16.msra.mxu1 %v1023_v19  ;;  %v1164_v59 = vld [vmem:[%s1563_s29 + $0x170] sm:$0xf0]  ;;  %v1207_v60 = vor.u32 %v1294_v50, %v1204_v51  ;;  %v1170_v61 = vld [vmem:[%s1563_s29 + $0x158] sm:$0xf]  ;;  %v1286_v63 = vld [vmem:[%s1563_s29 + $0x15c] sm:$0xf]  ;;  %v1163_v1 = vor.u32 %v1289_v57, %v1162_v54 }
  0x76   : > { %742 = vmatpush.bf16.msra.mxu2 %v1027_v20  ;;  %v1290_v62 = vld [vmem:[%s1563_s29 + $0x174] sm:$0xf0]  ;;  %v1172_v0 = vld [vmem:[%s1563_s29 + $0x178] sm:$0xf0]  ;;  %v1373_v2 = vmov 0   ;;  %v1167_v4 = vor.u32 %v1285_v58, %v1164_v59  ;;  %s1752_s7 = smov (!%p314_p8, %s982_s7), 15 }
  0x77   : > { %755 = vmatpush.bf16.msra.mxu3 %v1031_v24  ;;  %1332 = vset.pattern.permute.xlu0 %v1373_v2  ;;  %v384_v3 = vld [vmem:[%s1746_s2] sm:$0xf]  ;;  %v1171_v5 = vor.u32 %v1290_v62, %v1170_v61  ;;  %v1130_v6 = vld [vmem:[%s1563_s29 + $0x110] sm:$0xf]  ;;  %v1277_v8 = vld [vmem:[%s1563_s29 + $0x114] sm:$0xf]  ;;  %v1175_v9 = vor.u32 %v1286_v63, %v1172_v0 }
  0x78   : > { %v1281_v7 = vld [vmem:[%s1563_s29 + $0x12c] sm:$0xf0]  ;;  %v1132_v10 = vld [vmem:[%s1563_s29 + $0x130] sm:$0xf0]  ;;  %v1138_v11 = vld [vmem:[%s1563_s29 + $0x118] sm:$0xf]  ;;  %387 = vperm.xlu0 %1332, %v384_v3  }
  0x79   : > { %717 = vmatpush.bf16.msra.mxu0 %v987_v31  ;;  %730 = vmatpush.bf16.msra.mxu1 %v991_v35  ;;  %v1282_v12 = vld [vmem:[%s1563_s29 + $0x134] sm:$0xf0]  ;;  %v1278_v13 = vld [vmem:[%s1563_s29 + $0x11c] sm:$0xf]  ;;  %v1131_v15 = vor.u32 %v1281_v7, %v1130_v6  ;;  %v1135_v16 = vor.u32 %v1277_v8, %v1132_v10  ;;  %v1098_v18 = vld [vmem:[%s1563_s29 + $0xd0] sm:$0xf] }
  0x7a   : > { %743 = vmatpush.bf16.msra.mxu2 %v995_v36  ;;  %v1140_v14 = vld [vmem:[%s1563_s29 + $0x138] sm:$0xf0]  ;;  %v1139_v17 = vor.u32 %v1282_v12, %v1138_v11  ;;  %v1273_v19 = vld [vmem:[%s1563_s29 + $0xec] sm:$0xf0]  ;;  %v1269_v20 = vld [vmem:[%s1563_s29 + $0xd4] sm:$0xf] }
  0x7b   : > { %756 = vmatpush.bf16.msra.mxu3 %v999_v39  ;;  %v1143_v21 = vor.u32 %v1278_v13, %v1140_v14  ;;  %v1100_v22 = vld [vmem:[%s1563_s29 + $0xf0] sm:$0xf0]  ;;  %v1106_v23 = vld [vmem:[%s1563_s29 + $0xd8] sm:$0xf]  ;;  %v1270_v25 = vld [vmem:[%s1563_s29 + $0xdc] sm:$0xf]  ;;  %v1099_v27 = vor.u32 %v1273_v19, %v1098_v18 }
  0x7c   : > { %731 = vmatmul.bf16.vlgmr.msra.gmra.mxu1 %v1648_v52  ;;  %718 = vmatmul.bf16.vlgmr.msra.gmra.mxu0 %v1648_v52  ;;  %v1274_v24 = vld [vmem:[%s1563_s29 + $0xf4] sm:$0xf0]  ;;  %v1108_v26 = vld [vmem:[%s1563_s29 + $0xf8] sm:$0xf0]  ;;  %v1103_v28 = vor.u32 %v1269_v20, %v1100_v22  ;;  %v1066_v30 = vld [vmem:[%s1563_s29 + $0x90] sm:$0xf] }
  0x7d   : > { %762 = vmatpush.bf16.msrb.mxu0 %v1227_v40  ;;  %775 = vmatpush.bf16.msrb.mxu1 %v1231_v41  ;;  %v1107_v29 = vor.u32 %v1274_v24, %v1106_v23  ;;  %v1265_v31 = vld [vmem:[%s1563_s29 + $0xac] sm:$0xf0]  ;;  %v1261_v32 = vld [vmem:[%s1563_s29 + $0x94] sm:$0xf]  ;;  %v1111_v33 = vor.u32 %v1270_v25, %v1108_v26  ;;  %v1074_v35 = vld [vmem:[%s1563_s29 + $0x98] sm:$0xf] }
  0x7e   : > { %788 = vmatpush.bf16.msrb.mxu2 %v1235_v42  ;;  %757 = vmatmul.bf16.vlgmr.msra.gmra.mxu3 %v1648_v52  ;;  %v1068_v34 = vld [vmem:[%s1563_s29 + $0xb0] sm:$0xf0]  ;;  %v1266_v36 = vld [vmem:[%s1563_s29 + $0xb4] sm:$0xf0]  ;;  %v1262_v37 = vld [vmem:[%s1563_s29 + $0x9c] sm:$0xf]  ;;  %v1067_v39 = vor.u32 %v1265_v31, %v1066_v30 }
  0x7f   : > { %801 = vmatpush.bf16.msrb.mxu3 %v1239_v46  ;;  %744 = vmatmul.bf16.vlgmr.msra.gmra.mxu2 %v1648_v52  ;;  %v1076_v38 = vld [vmem:[%s1563_s29 + $0xb8] sm:$0xf0]  ;;  %v1071_v40 = vor.u32 %v1261_v32, %v1068_v34  ;;  %v1075_v41 = vor.u32 %v1266_v36, %v1074_v35  ;;  %v1034_v42 = vld [vmem:[%s1563_s29 + $0x50] sm:$0xf]  ;;  %v1253_v44 = vld [vmem:[%s1563_s29 + $0x54] sm:$0xf] }
  0x80   : > { %v1257_v43 = vld [vmem:[%s1563_s29 + $0x6c] sm:$0xf0]  ;;  %v1079_v45 = vor.u32 %v1262_v37, %v1076_v38  ;;  %v1036_v46 = vld [vmem:[%s1563_s29 + $0x70] sm:$0xf0]  ;;  %v1042_v47 = vld [vmem:[%s1563_s29 + $0x58] sm:$0xf] }
  0x81   : > { %763 = vmatpush.bf16.msrb.mxu0 %v1195_v53  ;;  %776 = vmatpush.bf16.msrb.mxu1 %v1199_v55  ;;  %v1258_v48 = vld [vmem:[%s1563_s29 + $0x74] sm:$0xf0]  ;;  %v1254_v49 = vld [vmem:[%s1563_s29 + $0x5c] sm:$0xf]  ;;  %v1035_v51 = vor.u32 %v1257_v43, %v1034_v42  ;;  %v1039_v53 = vor.u32 %v1253_v44, %v1036_v46  ;;  %v1002_v55 = vld [vmem:[%s1563_s29 + $0x10] sm:$0xf] }
  0x82   : > { %789 = vmatpush.bf16.msrb.mxu2 %v1203_v56  ;;  %v1044_v50 = vld [vmem:[%s1563_s29 + $0x78] sm:$0xf0]  ;;  %v1043_v54 = vor.u32 %v1258_v48, %v1042_v47  ;;  %v1249_v56 = vld [vmem:[%s1563_s29 + $0x2c] sm:$0xf0]  ;;  %v1245_v57 = vld [vmem:[%s1563_s29 + $0x14] sm:$0xf] }
  0x83   : > { %802 = vmatpush.bf16.msrb.mxu3 %v1207_v60  ;;  %v1047_v58 = vor.u32 %v1254_v49, %v1044_v50  ;;  %v1004_v59 = vld [vmem:[%s1563_s29 + $0x30] sm:$0xf0]  ;;  %v1010_v60 = vld [vmem:[%s1563_s29 + $0x18] sm:$0xf]  ;;  %v1246_v62 = vld [vmem:[%s1563_s29 + $0x1c] sm:$0xf]  ;;  %v1003_v0 = vor.u32 %v1249_v56, %v1002_v55 }
  0x84   : > { %v1250_v61 = vld [vmem:[%s1563_s29 + $0x34] sm:$0xf0]  ;;  %v1012_v63 = vld [vmem:[%s1563_s29 + $0x38] sm:$0xf0]  ;;  %s983_s8 = sshll.u32 %s1752_s7, 2  ;;  %vm898_vm0 = vcmask 1043456  }
  0x85   : > { %764 = vmatpush.bf16.msrb.mxu0 %v1163_v1  ;;  %777 = vmatpush.bf16.msrb.mxu1 %v1167_v4  ;;  %v1007_v1 = vor.u32 %v1245_v57, %v1004_v59  ;;  %v1011_v2 = vor.u32 %v1250_v61, %v1010_v60  ;;  %v1015_v3 = vor.u32 %v1246_v62, %v1012_v63  ;;  %s1720_s11 = scalar_lea.vmem %s1747_s3, %s983_s8 }
  0x86   : > { %790 = vmatpush.bf16.msrb.mxu2 %v1171_v5 }
  0x87   : > { %803 = vmatpush.bf16.msrb.mxu3 %v1175_v9 }
  0x89   : > { %765 = vmatpush.bf16.msrb.mxu0 %v1131_v15  ;;  %778 = vmatpush.bf16.msrb.mxu1 %v1135_v16 }
  0x8a   : > { %791 = vmatpush.bf16.msrb.mxu2 %v1139_v17 }
  0x8b   : > { %804 = vmatpush.bf16.msrb.mxu3 %v1143_v21 }
  0x8d   : > { %766 = vmatpush.bf16.msrb.mxu0 %v1099_v27  ;;  %779 = vmatpush.bf16.msrb.mxu1 %v1103_v28 }
  0x8e   : > { %792 = vmatpush.bf16.msrb.mxu2 %v1107_v29 }
  0x8f   : > { %805 = vmatpush.bf16.msrb.mxu3 %v1111_v33 }
  0x91   : > { %767 = vmatpush.bf16.msrb.mxu0 %v1067_v39  ;;  %780 = vmatpush.bf16.msrb.mxu1 %v1071_v40 }
  0x92   : > { %793 = vmatpush.bf16.msrb.mxu2 %v1075_v41 }
  0x93   : > { %806 = vmatpush.bf16.msrb.mxu3 %v1079_v45 }
  0x95   : > { %768 = vmatpush.bf16.msrb.mxu0 %v1035_v51  ;;  %781 = vmatpush.bf16.msrb.mxu1 %v1039_v53 }
  0x96   : > { %794 = vmatpush.bf16.msrb.mxu2 %v1043_v54 }
  0x97   : > { %807 = vmatpush.bf16.msrb.mxu3 %v1047_v58 }
  0x99   : > { %769 = vmatpush.bf16.msrb.mxu0 %v1003_v0  ;;  %782 = vmatpush.bf16.msrb.mxu1 %v1007_v1 }
  0x9a   : > { %795 = vmatpush.bf16.msrb.mxu2 %v1011_v2 }
  0x9b   : > { %808 = vmatpush.bf16.msrb.mxu3 %v1015_v3 }
  0x9c   : > { %770 = vmatmul.bf16.vlgmr.msrb.gmra.mxu0 %v1648_v52  ;;  %783 = vmatmul.bf16.vlgmr.msrb.gmra.mxu1 %v1648_v52 }
  0x9d   : > { %796 = vmatmul.bf16.vlgmr.msrb.gmra.mxu2 %v1648_v52 }
  0x9e   : > { %809 = vmatmul.bf16.vlgmr.msrb.gmra.mxu3 %v1648_v52 }
  0xea   : > { %v1709_v4 = vpop.permute.xlu0 %387 }
  0xf9   : > { %v732_v5 = vpop.f32.mrf.mxu1  ;;  %v719_v8 = vpop.f32.mrf.mxu0 }
  0xfa   : > { %v733_v6 = vadd.f32 %v732_v5, %v1709_v4  ;;  %v720_v9 = vadd.f32 %v719_v8, %v1709_v4 }
  0xfc   : > { %v832_v7 = vmul.f32 1.442695, %v733_v6  ;;  %v830_v12 = vmul.f32 1.442695, %v720_v9  ;;  %v815_v19 = vmax.f32 %v733_v6, 0.0  ;;  %v814_v25 = vmax.f32 %v720_v9, 0.0 }
  0xfe   : > { %1333 = vpow2.f32 %v832_v7  ;;  %v823_v28 = vmul.f32 1.050701, %v815_v19  ;;  %v822_v37 = vmul.f32 1.050701, %v814_v25 }
  0xff   : > { %1335 = vpow2.f32 %v830_v12 }
 0x101   : > { %v758_v11 = vpop.f32.mrf.mxu3  ;;  %v734_v15 = vpop.f32.mrf.mxu1 }
 0x102   : > { %v745_v10 = vpop.f32.mrf.mxu2  ;;  %v759_v14 = vadd.f32 %v758_v11, %v1709_v4  ;;  %v721_v18 = vpop.f32.mrf.mxu0 }
 0x103   : > { %v746_v13 = vadd.f32 %v745_v10, %v1709_v4 }
 0x104   : > { %v836_v16 = vmul.f32 1.442695, %v759_v14  ;;  %v1334_v17 = vpop.eup %1333  ;;  %v817_v34 = vmax.f32 %v759_v14, 0.0 }
 0x105   : > { %v834_v52 = vmul.f32 1.442695, %v746_v13  ;;  %v847_v20 = vsub.f32 1.0, %v1334_v17  ;;  %v1336_v22 = vpop.eup %1335  ;;  %v816_v36 = vmax.f32 %v746_v13, 0.0 }
 0x106   : > { %v846_v26 = vsub.f32 1.0, %v1336_v22  ;;  %v825_v45 = vmul.f32 1.050701, %v817_v34 }
 0x107   : > { %1337 = vpow2.f32 %v834_v52  ;;  %v855_v23 = vmax.f32 %v847_v20, 0.0  ;;  %v824_v47 = vmul.f32 1.050701, %v816_v36 }
 0x108   : > { %1339 = vpow2.f32 %v836_v16  ;;  %v854_v31 = vmax.f32 %v846_v26, 0.0 }
 0x109   : > { %v760_v24 = vpop.f32.mrf.mxu3  ;;  %v863_v29 = vsub.f32 0.0, %v855_v23 }
 0x10a   : > { %v747_v21 = vpop.f32.mrf.mxu2  ;;  %v862_v38 = vsub.f32 0.0, %v854_v31 }
 0x10b   : > { %v871_v33 = vmul.f32 1.7580993, %v863_v29 }
 0x10c   : > { %v870_v42 = vmul.f32 1.7580993, %v862_v38 }
 0x10d   : > { %v1338_v27 = vpop.eup %1337  ;;  %v879_v40 = vadd.f32 %v871_v33, %v823_v28 }
 0x10e   : > { %v1340_v30 = vpop.eup %1339  ;;  %v848_v32 = vsub.f32 1.0, %v1338_v27  ;;  %v878_v48 = vadd.f32 %v870_v42, %v822_v37 }
 0x10f   : > { %v849_v35 = vsub.f32 1.0, %v1340_v30  ;;  %v894_v44 = vrot.slane %v879_v40, 4 }
 0x110   : > { %v856_v39 = vmax.f32 %v848_v32, 0.0 }
 0x111   : > { %v857_v41 = vmax.f32 %v849_v35, 0.0  ;;  %v899_v51 = vsel %vm898_vm0, %v878_v48, %v894_v44 }
 0x112   : > { %v864_v43 = vsub.f32 0.0, %v856_v39  ;;  %907 = vst [vmem:[%s1720_s11] sm:$0xff] %v899_v51 }
 0x113   : > { %v865_v46 = vsub.f32 0.0, %v857_v41 }
 0x114   : > { %v872_v49 = vmul.f32 1.7580993, %v864_v43 }
 0x115   : > { %v873_v50 = vmul.f32 1.7580993, %v865_v46 }
 0x116   : > { %v880_v54 = vadd.f32 %v872_v49, %v824_v47 }
 0x117   : > { %v881_v53 = vadd.f32 %v873_v50, %v825_v45 }
 0x119   : > { %v895_v55 = vrot.slane %v881_v53, 4  ;;  %v771_v56 = vpop.f32.mrf.mxu0  ;;  %v784_v58 = vpop.f32.mrf.mxu1 }
 0x11a   : > { %v772_v57 = vadd.f32 %v771_v56, %v1709_v4  ;;  %v785_v60 = vadd.f32 %v784_v58, %v1709_v4 }
 0x11b   : > { %v900_v59 = vsel %vm898_vm0, %v880_v54, %v895_v55 }
 0x11c   : > { %908 = vst [vmem:[%s1720_s11 + $0x8] sm:$0xff] %v900_v59  ;;  %v838_v61 = vmul.f32 1.442695, %v772_v57  ;;  %v840_v62 = vmul.f32 1.442695, %v785_v60  ;;  %v819_v13 = vmax.f32 %v785_v60, 0.0 }
 0x11d   : > { %v818_v17 = vmax.f32 %v772_v57, 0.0 }
 0x11e   : > { %1341 = vpow2.f32 %v838_v61  ;;  %v827_v20 = vmul.f32 1.050701, %v819_v13 }
 0x11f   : > { %1343 = vpow2.f32 %v840_v62  ;;  %v826_v25 = vmul.f32 1.050701, %v818_v17 }
 0x120   : > { %v797_v63 = vpop.f32.mrf.mxu2 }
 0x121   : > { %v798_v0 = vadd.f32 %v797_v63, %v1709_v4  ;;  %v810_v1 = vpop.f32.mrf.mxu3  ;;  %v773_v2 = vpop.f32.mrf.mxu0 }
 0x122   : > { %v811_v3 = vadd.f32 %v810_v1, %v1709_v4  ;;  %v786_v5 = vpop.f32.mrf.mxu1 }
 0x123   : > { %v842_v6 = vmul.f32 1.442695, %v798_v0  ;;  %v820_v33 = vmax.f32 %v798_v0, 0.0 }
 0x124   : > { %v1342_v7 = vpop.eup %1341  ;;  %v844_v8 = vmul.f32 1.442695, %v811_v3  ;;  %v821_v28 = vmax.f32 %v811_v3, 0.0 }
 0x125   : > { %v1344_v9 = vpop.eup %1343  ;;  %v850_v10 = vsub.f32 1.0, %v1342_v7  ;;  %1345 = vpow2.f32 %v842_v6  ;;  %v828_v39 = vmul.f32 1.050701, %v820_v33 }
 0x126   : > { %v851_v11 = vsub.f32 1.0, %v1344_v9  ;;  %1347 = vpow2.f32 %v844_v8  ;;  %v829_v36 = vmul.f32 1.050701, %v821_v28 }
 0x127   : > { %v858_v12 = vmax.f32 %v850_v10, 0.0 }
 0x128   : > { %v859_v14 = vmax.f32 %v851_v11, 0.0  ;;  %v799_v52 = vpop.f32.mrf.mxu2 }
 0x129   : > { %v866_v15 = vsub.f32 0.0, %v858_v12  ;;  %v812_v16 = vpop.f32.mrf.mxu3 }
 0x12a   : > { %v867_v18 = vsub.f32 0.0, %v859_v14 }
 0x12b   : > { %v1346_v19 = vpop.eup %1345  ;;  %v874_v21 = vmul.f32 1.7580993, %v866_v15 }
 0x12c   : > { %v1348_v4 = vpop.eup %1347  ;;  %v875_v22 = vmul.f32 1.7580993, %v867_v18  ;;  %v852_v23 = vsub.f32 1.0, %v1346_v19 }
 0x12d   : > { %v853_v24 = vsub.f32 1.0, %v1348_v4  ;;  %v882_v30 = vadd.f32 %v874_v21, %v826_v25 }
 0x12e   : > { %v883_v26 = vadd.f32 %v875_v22, %v827_v20  ;;  %v860_v27 = vmax.f32 %v852_v23, 0.0 }
 0x12f   : > { %v861_v29 = vmax.f32 %v853_v24, 0.0 }
 0x130   : > { %v896_v31 = vrot.slane %v883_v26, 4  ;;  %v868_v32 = vsub.f32 0.0, %v860_v27 }
 0x131   : > { %v869_v34 = vsub.f32 0.0, %v861_v29 }
 0x132   : > { %v901_v35 = vsel %vm898_vm0, %v882_v30, %v896_v31  ;;  %v876_v37 = vmul.f32 1.7580993, %v868_v32 }
 0x133   : > { %909 = vst [vmem:[%s1720_s11 + $0x10] sm:$0xff] %v901_v35  ;;  %v877_v38 = vmul.f32 1.7580993, %v869_v34 }
 0x134   : > { %v884_v41 = vadd.f32 %v876_v37, %v828_v39 }
 0x135   : > { %v885_v40 = vadd.f32 %v877_v38, %v829_v36 }
 0x137   : > { %v897_v42 = vrot.slane %v885_v40, 4 }
 0x139   : > { %v902_v43 = vsel %vm898_vm0, %v884_v41, %v897_v42 }
 0x13a   : > { %910 = vst [vmem:[%s1720_s11 + $0x18] sm:$0xff] %v902_v43 }
 0x13b PF: > { %p10_p9 = scmp.ge.s32.totalorder %s1411_s16, 4   ;;  %s1748_s12 = smov %s1367_s13 }
 0x13c   : > { %s1749_s13 = smov %s1420_s19  ;;  %s1750_s14 = smov %s1411_s16 }
 0x13d   :  { %12 = sbr.rel (!%p10_p9) target bundleno = 2 (0x2), region = 90 }

// kernel: ipn_forward.15
= control target key start
LH: loop header
LB: loop body
LE: loop exit
PB: predicated region body
PF: predicated region fallthrough
CT: control target
= control target key end

     0   :  { %s870_s12 = smov 0   ;;  %s872_s13 = smov 0   ;;  %s1064_s0 = inlined_call_operand.vmem [shape: bf16[4,128], index: 0, kind: input, shape index: {}]   ;;  %s1065_s1 = inlined_call_operand.vmem [shape: bf16[128,1024], index: 1, kind: input, shape index: {}]   ;;  %s1066_s2 = inlined_call_operand.vmem [shape: f32[4,1], index: 2, kind: input, shape index: {}]   ;;  %s1067_s3 = inlined_call_operand.vmem [shape: f32[4,1024], index: 3, kind: output, shape index: {}]  }
   0x1   :  { %s874_s14 = smov 0  }
   0x2 LB: > { %s617_s15 = sadd.s32 4294967295, %s847_s14   ;;  %s887_s16 = sadd.s32 1, %s847_s14   ;;  %s847_s14 = sphi %s874_s14, %s1070_s14   ;;  %s843_s13 = sphi %s872_s13, %s1069_s13   ;;  %s839_s12 = sphi %s870_s12, %s1068_s12  }
   0x3   : > { %s38_s17 = ssub.s32 %s847_s14, %s887_s16  ;;  %s41_s18 = sadd.s32 1, %s843_s13 }
   0x4   : > { %p39_p0 = scmp.eq.s32.totalorder %s38_s17, 0  ;;  %p48_p1 = scmp.ne.s32.totalorder %s843_s13, %s839_s12 }
   0x5   : > { %p49_p2 = scmp.eq.s32.totalorder %s847_s14, 0  ;;  %p620_p4 = scmp.ge.s32.totalorder %s847_s14, 2 }
   0x6   : > { %s896_s19 = scalar_select %p39_p0, %s843_s13, %s41_s18  }
   0x7   : > { %p50_p3 = por %p49_p2, %p48_p1  ;;  %127 = sbr.rel (%p620_p4) target bundleno = 48 (0x30), region = 24 }
   0xc   : > { %130 = sbr.rel (!%p50_p3) target bundleno = 48 (0x30), region = 28  ;;  %s132_s20 = sand.u32 (%p50_p3), 1, %s843_s13  }
   0xd   : > { %s758_s21 = sshll.u32 (%p50_p3), %s847_s14, 4  ;;  %s621_s22 = sshll.u32 (%p50_p3), %s132_s20, 8 }
   0xe   : > { %s904_s25 = scalar_lea.vmem (%p50_p3), %s1065_s1, %s758_s21  ;;  %s909_s26 = scalar_lea.vmem (%p50_p3), [#allocation2], %s621_s22 }
   0xf   : > { %v150_v0 = vld [vmem:[%s904_s25] sm:$0xff] (%p50_p3)  ;;  %v152_v1 = vld [vmem:[%s904_s25 + $0x8] sm:$0xff] (%p50_p3) }
  0x10   : > { %v154_v2 = vld [vmem:[%s904_s25 + $0x20] sm:$0xff] (%p50_p3)  ;;  %151 = vst [vmem:[%s909_s26] sm:$0xff] (%p50_p3), %v150_v0  ;;  %v156_v3 = vld [vmem:[%s904_s25 + $0x28] sm:$0xff] (%p50_p3) }
  0x11   : > { %153 = vst [vmem:[%s909_s26 + $0x8] sm:$0xff] %v152_v1  ;;  %v158_v4 = vld [vmem:[%s904_s25 + $0x40] sm:$0xff]  ;;  %v160_v5 = vld [vmem:[%s904_s25 + $0x48] sm:$0xff] }
  0x12   : > { %155 = vst [vmem:[%s909_s26 + $0x10] sm:$0xff] %v154_v2  ;;  %v162_v6 = vld [vmem:[%s904_s25 + $0x60] sm:$0xff]  ;;  %v164_v7 = vld [vmem:[%s904_s25 + $0x68] sm:$0xff] }
  0x13   : > { %157 = vst [vmem:[%s909_s26 + $0x18] sm:$0xff] %v156_v3  ;;  %v166_v8 = vld [vmem:[%s904_s25 + $0x80] sm:$0xff]  ;;  %v168_v9 = vld [vmem:[%s904_s25 + $0x88] sm:$0xff] }
  0x14   : > { %159 = vst [vmem:[%s909_s26 + $0x20] sm:$0xff] %v158_v4  ;;  %v170_v10 = vld [vmem:[%s904_s25 + $0xa0] sm:$0xff]  ;;  %v172_v11 = vld [vmem:[%s904_s25 + $0xa8] sm:$0xff] }
  0x15   : > { %161 = vst [vmem:[%s909_s26 + $0x28] sm:$0xff] %v160_v5  ;;  %v174_v12 = vld [vmem:[%s904_s25 + $0xc0] sm:$0xff]  ;;  %v176_v13 = vld [vmem:[%s904_s25 + $0xc8] sm:$0xff] }
  0x16   : > { %163 = vst [vmem:[%s909_s26 + $0x30] sm:$0xff] %v162_v6  ;;  %v178_v14 = vld [vmem:[%s904_s25 + $0xe0] sm:$0xff]  ;;  %v180_v15 = vld [vmem:[%s904_s25 + $0xe8] sm:$0xff] }
  0x17   : > { %165 = vst [vmem:[%s909_s26 + $0x38] sm:$0xff] %v164_v7  ;;  %v182_v16 = vld [vmem:[%s904_s25 + $0x100] sm:$0xff]  ;;  %v184_v17 = vld [vmem:[%s904_s25 + $0x108] sm:$0xff] }
  0x18   : > { %167 = vst [vmem:[%s909_s26 + $0x40] sm:$0xff] %v166_v8  ;;  %v186_v18 = vld [vmem:[%s904_s25 + $0x120] sm:$0xff]  ;;  %v188_v19 = vld [vmem:[%s904_s25 + $0x128] sm:$0xff] }
  0x19   : > { %169 = vst [vmem:[%s909_s26 + $0x48] sm:$0xff] %v168_v9  ;;  %v190_v20 = vld [vmem:[%s904_s25 + $0x140] sm:$0xff]  ;;  %v192_v21 = vld [vmem:[%s904_s25 + $0x148] sm:$0xff] }
  0x1a   : > { %171 = vst [vmem:[%s909_s26 + $0x50] sm:$0xff] %v170_v10  ;;  %v194_v22 = vld [vmem:[%s904_s25 + $0x160] sm:$0xff]  ;;  %v196_v23 = vld [vmem:[%s904_s25 + $0x168] sm:$0xff] }
  0x1b   : > { %173 = vst [vmem:[%s909_s26 + $0x58] sm:$0xff] %v172_v11  ;;  %v198_v24 = vld [vmem:[%s904_s25 + $0x180] sm:$0xff]  ;;  %v200_v25 = vld [vmem:[%s904_s25 + $0x188] sm:$0xff] }
  0x1c   : > { %175 = vst [vmem:[%s909_s26 + $0x60] sm:$0xff] %v174_v12  ;;  %v202_v26 = vld [vmem:[%s904_s25 + $0x1a0] sm:$0xff]  ;;  %v204_v27 = vld [vmem:[%s904_s25 + $0x1a8] sm:$0xff] }
  0x1d   : > { %177 = vst [vmem:[%s909_s26 + $0x68] sm:$0xff] %v176_v13  ;;  %v206_v28 = vld [vmem:[%s904_s25 + $0x1c0] sm:$0xff]  ;;  %v208_v29 = vld [vmem:[%s904_s25 + $0x1c8] sm:$0xff] }
  0x1e   : > { %179 = vst [vmem:[%s909_s26 + $0x70] sm:$0xff] %v178_v14  ;;  %v210_v30 = vld [vmem:[%s904_s25 + $0x1e0] sm:$0xff]  ;;  %v212_v31 = vld [vmem:[%s904_s25 + $0x1e8] sm:$0xff] }
  0x1f   : > { %181 = vst [vmem:[%s909_s26 + $0x78] sm:$0xff] %v180_v15 }
  0x20   : > { %183 = vst [vmem:[%s909_s26 + $0x80] sm:$0xff] %v182_v16 }
  0x21   : > { %185 = vst [vmem:[%s909_s26 + $0x88] sm:$0xff] %v184_v17 }
  0x22   : > { %187 = vst [vmem:[%s909_s26 + $0x90] sm:$0xff] %v186_v18 }
  0x23   : > { %189 = vst [vmem:[%s909_s26 + $0x98] sm:$0xff] %v188_v19 }
  0x24   : > { %191 = vst [vmem:[%s909_s26 + $0xa0] sm:$0xff] %v190_v20 }
  0x25   : > { %193 = vst [vmem:[%s909_s26 + $0xa8] sm:$0xff] %v192_v21 }
  0x26   : > { %195 = vst [vmem:[%s909_s26 + $0xb0] sm:$0xff] %v194_v22 }
  0x27   : > { %197 = vst [vmem:[%s909_s26 + $0xb8] sm:$0xff] %v196_v23 }
  0x28   : > { %199 = vst [vmem:[%s909_s26 + $0xc0] sm:$0xff] %v198_v24 }
  0x29   : > { %201 = vst [vmem:[%s909_s26 + $0xc8] sm:$0xff] %v200_v25 }
  0x2a   : > { %203 = vst [vmem:[%s909_s26 + $0xd0] sm:$0xff] %v202_v26 }
  0x2b   : > { %205 = vst [vmem:[%s909_s26 + $0xd8] sm:$0xff] %v204_v27 }
  0x2c   : > { %207 = vst [vmem:[%s909_s26 + $0xe0] sm:$0xff] %v206_v28 }
  0x2d   : > { %209 = vst [vmem:[%s909_s26 + $0xe8] sm:$0xff] %v208_v29 }
  0x2e   : > { %211 = vst [vmem:[%s909_s26 + $0xf0] sm:$0xff] %v210_v30 }
  0x2f   : > { %213 = vst [vmem:[%s909_s26 + $0xf8] sm:$0xff] %v212_v31 }
  0x30 PF: > { %p624_p5 = scmp.ge.s32.totalorder %s847_s14, 1  ;;  %p218_p6 = scmp.lt.s32.totalorder %s847_s14, 3 }
  0x32   : > { %p219_p7 = pnand %p624_p5, %p218_p6 }
  0x33   : > { %s225_s27 = sand.u32 (!%p219_p7), 1, %s839_s12   ;;  %s626_s7 = sshll.u32 (!%p219_p7), %s617_s15, 2 }
  0x34   : > { %222 = sbr.rel (%p219_p7) target bundleno = 250 (0xfa), region = 51  ;;  %s625_s28 = sshll.u32 (!%p219_p7), %s225_s27, 8 }
  0x35   : > { %s975_s29 = scalar_lea.vmem (!%p219_p7), [#allocation2], %s625_s28  ;;  %p250_p8 = scmp.lt.s32.totalorder (!%p219_p7), %s626_s7, 7 }
  0x39   : > { %v742_v32 = vld [vmem:[%s975_s29 + $0xe0] sm:$0xf]  ;;  %v789_v33 = vld [vmem:[%s975_s29 + $0xec] sm:$0xf0]  ;;  %v787_v34 = vld [vmem:[%s975_s29 + $0xe4] sm:$0xf] }
  0x3a   : > { %v743_v35 = vor.u32 %v789_v33, %v742_v32  ;;  %v744_v36 = vld [vmem:[%s975_s29 + $0xf0] sm:$0xf0]  ;;  %v750_v37 = vld [vmem:[%s975_s29 + $0xe8] sm:$0xf]  ;;  %v790_v38 = vld [vmem:[%s975_s29 + $0xf4] sm:$0xf0] }
  0x3b   : > { %v747_v39 = vor.u32 %v787_v34, %v744_v36  ;;  %v751_v40 = vor.u32 %v790_v38, %v750_v37  ;;  %v788_v41 = vld [vmem:[%s975_s29 + $0xec] sm:$0xf]  ;;  %v752_v42 = vld [vmem:[%s975_s29 + $0xf8] sm:$0xf0]  ;;  %v726_v43 = vld [vmem:[%s975_s29 + $0xc0] sm:$0xf] }
  0x3c   : > { %454 = vmatpush.bf16.msra.mxu0 %v743_v35  ;;  %v755_v44 = vor.u32 %v788_v41, %v752_v42  ;;  %v785_v45 = vld [vmem:[%s975_s29 + $0xcc] sm:$0xf0]  ;;  %v783_v46 = vld [vmem:[%s975_s29 + $0xc4] sm:$0xf]  ;;  %v728_v47 = vld [vmem:[%s975_s29 + $0xd0] sm:$0xf0] }
  0x3d   : > { %467 = vmatpush.bf16.msra.mxu1 %v747_v39  ;;  %480 = vmatpush.bf16.msra.mxu2 %v751_v40  ;;  %v727_v48 = vor.u32 %v785_v45, %v726_v43  ;;  %v731_v49 = vor.u32 %v783_v46, %v728_v47  ;;  %v734_v50 = vld [vmem:[%s975_s29 + $0xc8] sm:$0xf]  ;;  %v786_v51 = vld [vmem:[%s975_s29 + $0xd4] sm:$0xf0]  ;;  %v784_v52 = vld [vmem:[%s975_s29 + $0xcc] sm:$0xf] }
  0x3e   : > { %493 = vmatpush.bf16.msra.mxu3 %v755_v44  ;;  %v735_v53 = vor.u32 %v786_v51, %v734_v50  ;;  %v736_v54 = vld [vmem:[%s975_s29 + $0xd8] sm:$0xf0]  ;;  %v710_v55 = vld [vmem:[%s975_s29 + $0xa0] sm:$0xf]  ;;  %v781_v56 = vld [vmem:[%s975_s29 + $0xac] sm:$0xf0] }
  0x3f   : > { %v739_v57 = vor.u32 %v784_v52, %v736_v54  ;;  %v779_v58 = vld [vmem:[%s975_s29 + $0xa4] sm:$0xf]  ;;  %v712_v59 = vld [vmem:[%s975_s29 + $0xb0] sm:$0xf0]  ;;  %v718_v60 = vld [vmem:[%s975_s29 + $0xa8] sm:$0xf]  ;;  %v711_v61 = vor.u32 %v781_v56, %v710_v55 }
  0x40   : > { %455 = vmatpush.bf16.msra.mxu0 %v727_v48  ;;  %v782_v62 = vld [vmem:[%s975_s29 + $0xb4] sm:$0xf0]  ;;  %v780_v63 = vld [vmem:[%s975_s29 + $0xac] sm:$0xf]  ;;  %v720_v0 = vld [vmem:[%s975_s29 + $0xb8] sm:$0xf0]  ;;  %v715_v1 = vor.u32 %v779_v58, %v712_v59 }
  0x41   : > { %468 = vmatpush.bf16.msra.mxu1 %v731_v49  ;;  %481 = vmatpush.bf16.msra.mxu2 %v735_v53  ;;  %v719_v2 = vor.u32 %v782_v62, %v718_v60  ;;  %v694_v3 = vld [vmem:[%s975_s29 + $0x80] sm:$0xf]  ;;  %v777_v4 = vld [vmem:[%s975_s29 + $0x8c] sm:$0xf0]  ;;  %v775_v5 = vld [vmem:[%s975_s29 + $0x84] sm:$0xf]  ;;  %v723_v6 = vor.u32 %v780_v63, %v720_v0 }
  0x42   : > { %494 = vmatpush.bf16.msra.mxu3 %v739_v57  ;;  %v696_v7 = vld [vmem:[%s975_s29 + $0x90] sm:$0xf0]  ;;  %v702_v8 = vld [vmem:[%s975_s29 + $0x88] sm:$0xf]  ;;  %v778_v9 = vld [vmem:[%s975_s29 + $0x94] sm:$0xf0]  ;;  %v695_v12 = vor.u32 %v777_v4, %v694_v3 }
  0x43   : > { %v776_v10 = vld [vmem:[%s975_s29 + $0x8c] sm:$0xf]  ;;  %v704_v11 = vld [vmem:[%s975_s29 + $0x98] sm:$0xf0]  ;;  %v699_v13 = vor.u32 %v775_v5, %v696_v7  ;;  %v703_v14 = vor.u32 %v778_v9, %v702_v8  ;;  %v678_v15 = vld [vmem:[%s975_s29 + $0x60] sm:$0xf] }
  0x44   : > { %456 = vmatpush.bf16.msra.mxu0 %v711_v61  ;;  %v773_v16 = vld [vmem:[%s975_s29 + $0x6c] sm:$0xf0]  ;;  %v771_v17 = vld [vmem:[%s975_s29 + $0x64] sm:$0xf]  ;;  %v707_v18 = vor.u32 %v776_v10, %v704_v11  ;;  %v680_v19 = vld [vmem:[%s975_s29 + $0x70] sm:$0xf0] }
  0x45   : > { %469 = vmatpush.bf16.msra.mxu1 %v715_v1  ;;  %482 = vmatpush.bf16.msra.mxu2 %v719_v2  ;;  %v686_v20 = vld [vmem:[%s975_s29 + $0x68] sm:$0xf]  ;;  %v774_v21 = vld [vmem:[%s975_s29 + $0x74] sm:$0xf0]  ;;  %v772_v22 = vld [vmem:[%s975_s29 + $0x6c] sm:$0xf]  ;;  %v679_v24 = vor.u32 %v773_v16, %v678_v15  ;;  %v683_v25 = vor.u32 %v771_v17, %v680_v19 }
  0x46   : > { %495 = vmatpush.bf16.msra.mxu3 %v723_v6  ;;  %v688_v23 = vld [vmem:[%s975_s29 + $0x78] sm:$0xf0]  ;;  %v687_v26 = vor.u32 %v774_v21, %v686_v20  ;;  %v662_v27 = vld [vmem:[%s975_s29 + $0x40] sm:$0xf]  ;;  %v769_v28 = vld [vmem:[%s975_s29 + $0x4c] sm:$0xf0] }
  0x47   : > { %v767_v29 = vld [vmem:[%s975_s29 + $0x44] sm:$0xf]  ;;  %v691_v30 = vor.u32 %v772_v22, %v688_v23  ;;  %v664_v31 = vld [vmem:[%s975_s29 + $0x50] sm:$0xf0]  ;;  %v670_v32 = vld [vmem:[%s975_s29 + $0x48] sm:$0xf]  ;;  %v663_v36 = vor.u32 %v769_v28, %v662_v27 }
  0x48   : > { %457 = vmatpush.bf16.msra.mxu0 %v695_v12  ;;  %v770_v33 = vld [vmem:[%s975_s29 + $0x54] sm:$0xf0]  ;;  %v768_v34 = vld [vmem:[%s975_s29 + $0x4c] sm:$0xf]  ;;  %v672_v35 = vld [vmem:[%s975_s29 + $0x58] sm:$0xf0]  ;;  %v667_v38 = vor.u32 %v767_v29, %v664_v31 }
  0x49   : > { %470 = vmatpush.bf16.msra.mxu1 %v699_v13  ;;  %483 = vmatpush.bf16.msra.mxu2 %v703_v14  ;;  %v646_v37 = vld [vmem:[%s975_s29 + $0x20] sm:$0xf]  ;;  %v671_v39 = vor.u32 %v770_v33, %v670_v32  ;;  %v765_v40 = vld [vmem:[%s975_s29 + $0x2c] sm:$0xf0]  ;;  %v763_v41 = vld [vmem:[%s975_s29 + $0x24] sm:$0xf]  ;;  %v675_v43 = vor.u32 %v768_v34, %v672_v35 }
  0x4a   : > { %496 = vmatpush.bf16.msra.mxu3 %v707_v18  ;;  %v648_v42 = vld [vmem:[%s975_s29 + $0x30] sm:$0xf0]  ;;  %v654_v44 = vld [vmem:[%s975_s29 + $0x28] sm:$0xf]  ;;  %v766_v45 = vld [vmem:[%s975_s29 + $0x34] sm:$0xf0]  ;;  %v647_v50 = vor.u32 %v765_v40, %v646_v37 }
  0x4b   : > { %v764_v46 = vld [vmem:[%s975_s29 + $0x2c] sm:$0xf]  ;;  %v656_v47 = vld [vmem:[%s975_s29 + $0x38] sm:$0xf0]  ;;  %v849_v48 = vmov 0   ;;  %v651_v51 = vor.u32 %v763_v41, %v648_v42  ;;  %v655_v52 = vor.u32 %v766_v45, %v654_v44  ;;  %s1072_s7 = smov (!%p250_p8, %s626_s7), 7 }
  0x4c   : > { %458 = vmatpush.bf16.msra.mxu0 %v679_v24  ;;  %816 = vset.pattern.permute.xlu0 %v849_v48  ;;  %v288_v49 = vld [vmem:[%s1066_s2] sm:$0xf]  ;;  %v761_v54 = vld [vmem:[%s975_s29 + $0xc] sm:$0xf0]  ;;  %v759_v55 = vld [vmem:[%s975_s29 + $0x4] sm:$0xf]  ;;  %v659_v56 = vor.u32 %v764_v46, %v656_v47 }
  0x4d   : > { %471 = vmatpush.bf16.msra.mxu1 %v683_v25  ;;  %484 = vmatpush.bf16.msra.mxu2 %v687_v26  ;;  %v630_v53 = vld [vmem:[%s975_s29] sm:$0xf]  ;;  %v632_v57 = vld [vmem:[%s975_s29 + $0x10] sm:$0xf0]  ;;  %v638_v58 = vld [vmem:[%s975_s29 + $0x8] sm:$0xf] }
  0x4e   : > { %497 = vmatpush.bf16.msra.mxu3 %v691_v30  ;;  %291 = vperm.xlu0 %816, %v288_v49   ;;  %v762_v59 = vld [vmem:[%s975_s29 + $0x14] sm:$0xf0]  ;;  %v760_v60 = vld [vmem:[%s975_s29 + $0xc] sm:$0xf]  ;;  %v640_v61 = vld [vmem:[%s975_s29 + $0x18] sm:$0xf0]  ;;  %v631_v62 = vor.u32 %v761_v54, %v630_v53  ;;  %v635_v63 = vor.u32 %v759_v55, %v632_v57 }
  0x4f   : > { %v639_v0 = vor.u32 %v762_v59, %v638_v58  ;;  %v643_v1 = vor.u32 %v760_v60, %v640_v61  ;;  %v255_v2 = vld [vmem:[%s1064_s0] sm:$0x3]  ;;  %s627_s8 = sshll.u32 %s1072_s7, 2  ;;  %vm548_vm0 = vcmask 1043456  }
  0x50   : > { %459 = vmatpush.bf16.msra.mxu0 %v663_v36  ;;  %s253_s11 = scalar_lea.vmem %s1067_s3, %s627_s8 }
  0x51   : > { %472 = vmatpush.bf16.msra.mxu1 %v667_v38  ;;  %485 = vmatpush.bf16.msra.mxu2 %v671_v39 }
  0x52   : > { %498 = vmatpush.bf16.msra.mxu3 %v675_v43 }
  0x54   : > { %460 = vmatpush.bf16.msra.mxu0 %v647_v50 }
  0x55   : > { %473 = vmatpush.bf16.msra.mxu1 %v651_v51  ;;  %486 = vmatpush.bf16.msra.mxu2 %v655_v52 }
  0x56   : > { %499 = vmatpush.bf16.msra.mxu3 %v659_v56 }
  0x58   : > { %461 = vmatpush.bf16.msra.mxu0 %v631_v62 }
  0x59   : > { %474 = vmatpush.bf16.msra.mxu1 %v635_v63  ;;  %487 = vmatpush.bf16.msra.mxu2 %v639_v0 }
  0x5a   : > { %500 = vmatpush.bf16.msra.mxu3 %v643_v1 }
  0x5b   : > { %462 = vmatmul.bf16.vlgmr.msra.gmra.mxu0 %v255_v2 }
  0x5c   : > { %475 = vmatmul.bf16.vlgmr.msra.gmra.mxu1 %v255_v2  ;;  %488 = vmatmul.bf16.vlgmr.msra.gmra.mxu2 %v255_v2 }
  0x5d   : > { %501 = vmatmul.bf16.vlgmr.msra.gmra.mxu3 %v255_v2 }
  0xc0   : > { %v292_v3 = vpop.permute.xlu0 %291 }
  0xd8   : > { %v463_v4 = vpop.f32.mrf.mxu0 }
  0xd9   : > { %v464_v5 = vadd.f32 %v463_v4, %v292_v3  ;;  %v476_v6 = vpop.f32.mrf.mxu1 }
  0xda   : > { %v477_v7 = vadd.f32 %v476_v6, %v292_v3 }
  0xdb   : > { %v514_v8 = vmul.f32 1.442695, %v464_v5  ;;  %v506_v28 = vmax.f32 %v464_v5, 0.0 }
  0xdc   : > { %v516_v9 = vmul.f32 1.442695, %v477_v7  ;;  %v507_v23 = vmax.f32 %v477_v7, 0.0 }
  0xdd   : > { %817 = vpow2.f32 %v514_v8  ;;  %v510_v37 = vmul.f32 1.050701, %v506_v28 }
  0xde   : > { %819 = vpow2.f32 %v516_v9  ;;  %v511_v31 = vmul.f32 1.050701, %v507_v23 }
  0xdf   : > { %v489_v10 = vpop.f32.mrf.mxu2 }
  0xe0   : > { %v490_v11 = vadd.f32 %v489_v10, %v292_v3  ;;  %v502_v12 = vpop.f32.mrf.mxu3  ;;  %v465_v13 = vpop.f32.mrf.mxu0 }
  0xe1   : > { %v503_v14 = vadd.f32 %v502_v12, %v292_v3  ;;  %v478_v15 = vpop.f32.mrf.mxu1 }
  0xe2   : > { %v518_v16 = vmul.f32 1.442695, %v490_v11  ;;  %v508_v45 = vmax.f32 %v490_v11, 0.0 }
  0xe3   : > { %v818_v17 = vpop.eup %817  ;;  %v520_v18 = vmul.f32 1.442695, %v503_v14  ;;  %v509_v40 = vmax.f32 %v503_v14, 0.0 }
  0xe4   : > { %v820_v19 = vpop.eup %819  ;;  %v522_v20 = vsub.f32 1.0, %v818_v17  ;;  %821 = vpow2.f32 %v518_v16  ;;  %v512_v51 = vmul.f32 1.050701, %v508_v45 }
  0xe5   : > { %v523_v21 = vsub.f32 1.0, %v820_v19  ;;  %823 = vpow2.f32 %v520_v18  ;;  %v513_v49 = vmul.f32 1.050701, %v509_v40 }
  0xe6   : > { %v526_v22 = vmax.f32 %v522_v20, 0.0 }
  0xe7   : > { %v527_v24 = vmax.f32 %v523_v21, 0.0  ;;  %v491_v25 = vpop.f32.mrf.mxu2 }
  0xe8   : > { %v530_v26 = vsub.f32 0.0, %v526_v22  ;;  %v504_v27 = vpop.f32.mrf.mxu3 }
  0xe9   : > { %v531_v29 = vsub.f32 0.0, %v527_v24 }
  0xea   : > { %v822_v30 = vpop.eup %821  ;;  %v534_v33 = vmul.f32 1.7580993, %v530_v26 }
  0xeb   : > { %v824_v32 = vpop.eup %823  ;;  %v535_v34 = vmul.f32 1.7580993, %v531_v29  ;;  %v524_v35 = vsub.f32 1.0, %v822_v30 }
  0xec   : > { %v525_v36 = vsub.f32 1.0, %v824_v32  ;;  %v538_v42 = vadd.f32 %v534_v33, %v510_v37 }
  0xed   : > { %v539_v38 = vadd.f32 %v535_v34, %v511_v31  ;;  %v528_v39 = vmax.f32 %v524_v35, 0.0 }
  0xee   : > { %v529_v41 = vmax.f32 %v525_v36, 0.0 }
  0xef   : > { %v546_v43 = vrot.slane %v539_v38, 4  ;;  %v532_v44 = vsub.f32 0.0, %v528_v39 }
  0xf0   : > { %v533_v46 = vsub.f32 0.0, %v529_v41 }
  0xf1   : > { %v549_v47 = vsel %vm548_vm0, %v538_v42, %v546_v43  ;;  %v536_v48 = vmul.f32 1.7580993, %v532_v44 }
  0xf2   : > { %553 = vst [vmem:[%s253_s11] sm:$0xff] %v549_v47  ;;  %v537_v50 = vmul.f32 1.7580993, %v533_v46 }
  0xf3   : > { %v540_v53 = vadd.f32 %v536_v48, %v512_v51 }
  0xf4   : > { %v541_v52 = vadd.f32 %v537_v50, %v513_v49 }
  0xf6   : > { %v547_v54 = vrot.slane %v541_v52, 4 }
  0xf8   : > { %v550_v55 = vsel %vm548_vm0, %v540_v53, %v547_v54 }
  0xf9   : > { %554 = vst [vmem:[%s253_s11 + $0x8] sm:$0xff] %v550_v55 }
  0xfa PF: > { %p10_p9 = scmp.ge.s32.totalorder %s887_s16, 4   ;;  %s1068_s12 = smov %s843_s13 }
  0xfb   : > { %s1069_s13 = smov %s896_s19  ;;  %s1070_s14 = smov %s887_s16 }
  0xfc   :  { %12 = sbr.rel (!%p10_p9) target bundleno = 2 (0x2), region = 90 }

// kernel: ipn_forward.17
= control target key start
LH: loop header
LB: loop body
LE: loop exit
PB: predicated region body
PF: predicated region fallthrough
CT: control target
= control target key end

     0   :  { %s654_s12 = smov 0   ;;  %s656_s13 = smov 0   ;;  %s764_s0 = inlined_call_operand.vmem [shape: bf16[4,128], index: 0, kind: input, shape index: {}]   ;;  %s765_s1 = inlined_call_operand.vmem [shape: bf16[128,512], index: 1, kind: input, shape index: {}]   ;;  %s766_s2 = inlined_call_operand.vmem [shape: f32[4,1], index: 2, kind: input, shape index: {}]   ;;  %s767_s3 = inlined_call_operand.vmem [shape: f32[4,512], index: 3, kind: output, shape index: {}]  }
   0x1   :  { %s658_s14 = smov 0  }
   0x2 LB: > { %s485_s15 = sadd.s32 4294967295, %s631_s14   ;;  %s671_s16 = sadd.s32 1, %s631_s14   ;;  %s631_s14 = sphi %s658_s14, %s770_s14   ;;  %s627_s13 = sphi %s656_s13, %s769_s13   ;;  %s623_s12 = sphi %s654_s12, %s768_s12  }
   0x3   : > { %s38_s17 = ssub.s32 %s631_s14, %s671_s16  ;;  %s41_s18 = sadd.s32 1, %s627_s13 }
   0x4   : > { %p39_p0 = scmp.eq.s32.totalorder %s38_s17, 0  ;;  %p48_p1 = scmp.ne.s32.totalorder %s627_s13, %s623_s12 }
   0x5   : > { %p49_p2 = scmp.eq.s32.totalorder %s631_s14, 0  ;;  %p488_p4 = scmp.ge.s32.totalorder %s631_s14, 2 }
   0x6   : > { %s680_s19 = scalar_select %p39_p0, %s627_s13, %s41_s18  }
   0x7   : > { %p50_p3 = por %p49_p2, %p48_p1  ;;  %127 = sbr.rel (%p488_p4) target bundleno = 32 (0x20), region = 24 }
   0xc   : > { %130 = sbr.rel (!%p50_p3) target bundleno = 32 (0x20), region = 28  ;;  %s132_s20 = sand.u32 (%p50_p3), 1, %s627_s13  }
   0xd   : > { %s562_s21 = sshll.u32 (%p50_p3), %s631_s14, 3  ;;  %s489_s22 = sshll.u32 (%p50_p3), %s132_s20, 7 }
   0xe   : > { %s688_s25 = scalar_lea.vmem (%p50_p3), %s765_s1, %s562_s21  ;;  %s134_s26 = scalar_lea.vmem (%p50_p3), [#allocation2], %s489_s22 }
   0xf   : > { %v196_v0 = vld [vmem:[%s688_s25] sm:$0xff] (%p50_p3)  ;;  %v198_v1 = vld [vmem:[%s688_s25 + $0x10] sm:$0xff] (%p50_p3) }
  0x10   : > { %v200_v2 = vld [vmem:[%s688_s25 + $0x20] sm:$0xff] (%p50_p3)  ;;  %197 = vst [vmem:[%s134_s26] sm:$0xff] (%p50_p3), %v196_v0  ;;  %v202_v3 = vld [vmem:[%s688_s25 + $0x30] sm:$0xff] (%p50_p3) }
  0x11   : > { %199 = vst [vmem:[%s134_s26 + $0x8] sm:$0xff] %v198_v1  ;;  %v204_v4 = vld [vmem:[%s688_s25 + $0x40] sm:$0xff]  ;;  %v206_v5 = vld [vmem:[%s688_s25 + $0x50] sm:$0xff] }
  0x12   : > { %201 = vst [vmem:[%s134_s26 + $0x10] sm:$0xff] %v200_v2  ;;  %v208_v6 = vld [vmem:[%s688_s25 + $0x60] sm:$0xff]  ;;  %v210_v7 = vld [vmem:[%s688_s25 + $0x70] sm:$0xff] }
  0x13   : > { %203 = vst [vmem:[%s134_s26 + $0x18] sm:$0xff] %v202_v3  ;;  %v212_v8 = vld [vmem:[%s688_s25 + $0x80] sm:$0xff]  ;;  %v214_v9 = vld [vmem:[%s688_s25 + $0x90] sm:$0xff] }
  0x14   : > { %205 = vst [vmem:[%s134_s26 + $0x20] sm:$0xff] %v204_v4  ;;  %v216_v10 = vld [vmem:[%s688_s25 + $0xa0] sm:$0xff]  ;;  %v218_v11 = vld [vmem:[%s688_s25 + $0xb0] sm:$0xff] }
  0x15   : > { %207 = vst [vmem:[%s134_s26 + $0x28] sm:$0xff] %v206_v5  ;;  %v220_v12 = vld [vmem:[%s688_s25 + $0xc0] sm:$0xff]  ;;  %v222_v13 = vld [vmem:[%s688_s25 + $0xd0] sm:$0xff] }
  0x16   : > { %209 = vst [vmem:[%s134_s26 + $0x30] sm:$0xff] %v208_v6  ;;  %v224_v14 = vld [vmem:[%s688_s25 + $0xe0] sm:$0xff]  ;;  %v226_v15 = vld [vmem:[%s688_s25 + $0xf0] sm:$0xff] }
  0x17   : > { %211 = vst [vmem:[%s134_s26 + $0x38] sm:$0xff] %v210_v7 }
  0x18   : > { %213 = vst [vmem:[%s134_s26 + $0x40] sm:$0xff] %v212_v8 }
  0x19   : > { %215 = vst [vmem:[%s134_s26 + $0x48] sm:$0xff] %v214_v9 }
  0x1a   : > { %217 = vst [vmem:[%s134_s26 + $0x50] sm:$0xff] %v216_v10 }
  0x1b   : > { %219 = vst [vmem:[%s134_s26 + $0x58] sm:$0xff] %v218_v11 }
  0x1c   : > { %221 = vst [vmem:[%s134_s26 + $0x60] sm:$0xff] %v220_v12 }
  0x1d   : > { %223 = vst [vmem:[%s134_s26 + $0x68] sm:$0xff] %v222_v13 }
  0x1e   : > { %225 = vst [vmem:[%s134_s26 + $0x70] sm:$0xff] %v224_v14 }
  0x1f   : > { %227 = vst [vmem:[%s134_s26 + $0x78] sm:$0xff] %v226_v15 }
  0x20 PF: > { %p492_p5 = scmp.ge.s32.totalorder %s631_s14, 1  ;;  %p232_p6 = scmp.lt.s32.totalorder %s631_s14, 3 }
  0x22   : > { %p233_p7 = pnand %p492_p5, %p232_p6 }
  0x23   : > { %s239_s27 = sand.u32 (!%p233_p7), 1, %s623_s12   ;;  %s494_s7 = sshll.u32 (!%p233_p7), %s485_s15, 1 }
  0x24   : > { %236 = sbr.rel (%p233_p7) target bundleno = 227 (0xe3), region = 66  ;;  %s493_s28 = sshll.u32 (!%p233_p7), %s239_s27, 7 }
  0x25   : > { %s709_s29 = scalar_lea.vmem (!%p233_p7), [#allocation2], %s493_s28  ;;  %p264_p8 = scmp.lt.s32.totalorder (!%p233_p7), %s494_s7, 3 }
  0x29   : > { %v554_v16 = vld [vmem:[%s709_s29 + $0x70] sm:$0xf]  ;;  %v578_v17 = vld [vmem:[%s709_s29 + $0x74] sm:$0xf0]  ;;  %v577_v18 = vld [vmem:[%s709_s29 + $0x74] sm:$0xf] }
  0x2a   : > { %v555_v19 = vor.u32 %v578_v17, %v554_v16  ;;  %v556_v20 = vld [vmem:[%s709_s29 + $0x78] sm:$0xf0]  ;;  %v546_v21 = vld [vmem:[%s709_s29 + $0x60] sm:$0xf]  ;;  %v576_v22 = vld [vmem:[%s709_s29 + $0x64] sm:$0xf0] }
  0x2b   : > { %v559_v23 = vor.u32 %v577_v18, %v556_v20  ;;  %v575_v24 = vld [vmem:[%s709_s29 + $0x64] sm:$0xf]  ;;  %v548_v25 = vld [vmem:[%s709_s29 + $0x68] sm:$0xf0]  ;;  %v547_v26 = vor.u32 %v576_v22, %v546_v21  ;;  %v538_v28 = vld [vmem:[%s709_s29 + $0x50] sm:$0xf] }
  0x2c   : > { %372 = vmatpush.bf16.msra.mxu0 %v555_v19  ;;  %v551_v27 = vor.u32 %v575_v24, %v548_v25  ;;  %v574_v29 = vld [vmem:[%s709_s29 + $0x54] sm:$0xf0]  ;;  %v573_v30 = vld [vmem:[%s709_s29 + $0x54] sm:$0xf]  ;;  %v540_v31 = vld [vmem:[%s709_s29 + $0x58] sm:$0xf0] }
  0x2d   : > { %385 = vmatpush.bf16.msra.mxu1 %v559_v23  ;;  %v539_v32 = vor.u32 %v574_v29, %v538_v28  ;;  %v543_v33 = vor.u32 %v573_v30, %v540_v31  ;;  %v530_v34 = vld [vmem:[%s709_s29 + $0x40] sm:$0xf]  ;;  %v572_v35 = vld [vmem:[%s709_s29 + $0x44] sm:$0xf0]  ;;  %v571_v36 = vld [vmem:[%s709_s29 + $0x44] sm:$0xf] }
  0x2e   : > { %v532_v37 = vld [vmem:[%s709_s29 + $0x48] sm:$0xf0]  ;;  %v531_v38 = vor.u32 %v572_v35, %v530_v34  ;;  %v286_v39 = vld [vmem:[%s766_s2] sm:$0xf]  ;;  %v522_v41 = vld [vmem:[%s709_s29 + $0x30] sm:$0xf] }
  0x2f   : > { %v535_v40 = vor.u32 %v571_v36, %v532_v37  ;;  %v570_v42 = vld [vmem:[%s709_s29 + $0x34] sm:$0xf0]  ;;  %v633_v43 = vmov 0   ;;  %v569_v44 = vld [vmem:[%s709_s29 + $0x34] sm:$0xf]  ;;  %s772_s7 = smov (!%p264_p8, %s494_s7), 3 }
  0x30   : > { %373 = vmatpush.bf16.msra.mxu0 %v547_v26  ;;  %604 = vset.pattern.permute.xlu0 %v633_v43  ;;  %v524_v45 = vld [vmem:[%s709_s29 + $0x38] sm:$0xf0]  ;;  %v523_v46 = vor.u32 %v570_v42, %v522_v41  ;;  %v514_v48 = vld [vmem:[%s709_s29 + $0x20] sm:$0xf]  ;;  %v568_v49 = vld [vmem:[%s709_s29 + $0x24] sm:$0xf0] }
  0x31   : > { %386 = vmatpush.bf16.msra.mxu1 %v551_v27  ;;  %289 = vperm.xlu0 %604, %v286_v39   ;;  %v527_v47 = vor.u32 %v569_v44, %v524_v45  ;;  %v567_v50 = vld [vmem:[%s709_s29 + $0x24] sm:$0xf]  ;;  %v516_v51 = vld [vmem:[%s709_s29 + $0x28] sm:$0xf0]  ;;  %v515_v52 = vor.u32 %v568_v49, %v514_v48  ;;  %v506_v54 = vld [vmem:[%s709_s29 + $0x10] sm:$0xf] }
  0x32   : > { %v519_v53 = vor.u32 %v567_v50, %v516_v51  ;;  %v566_v55 = vld [vmem:[%s709_s29 + $0x14] sm:$0xf0]  ;;  %v565_v56 = vld [vmem:[%s709_s29 + $0x14] sm:$0xf]  ;;  %v508_v57 = vld [vmem:[%s709_s29 + $0x18] sm:$0xf0] }
  0x33   : > { %v507_v58 = vor.u32 %v566_v55, %v506_v54  ;;  %v511_v59 = vor.u32 %v565_v56, %v508_v57  ;;  %v498_v60 = vld [vmem:[%s709_s29] sm:$0xf]  ;;  %v564_v61 = vld [vmem:[%s709_s29 + $0x4] sm:$0xf0]  ;;  %v563_v62 = vld [vmem:[%s709_s29 + $0x4] sm:$0xf] }
  0x34   : > { %374 = vmatpush.bf16.msra.mxu0 %v539_v32  ;;  %v500_v63 = vld [vmem:[%s709_s29 + $0x8] sm:$0xf0]  ;;  %v499_v0 = vor.u32 %v564_v61, %v498_v60  ;;  %v269_v2 = vld [vmem:[%s764_s0] sm:$0x3]  ;;  %s495_s8 = sshll.u32 %s772_s7, 2  ;;  %vm419_vm0 = vcmask 1043456  }
  0x35   : > { %387 = vmatpush.bf16.msra.mxu1 %v543_v33  ;;  %v503_v1 = vor.u32 %v563_v62, %v500_v63  ;;  %s267_s11 = scalar_lea.vmem %s767_s3, %s495_s8 }
  0x38   : > { %375 = vmatpush.bf16.msra.mxu0 %v531_v38 }
  0x39   : > { %388 = vmatpush.bf16.msra.mxu1 %v535_v40 }
  0x3c   : > { %376 = vmatpush.bf16.msra.mxu0 %v523_v46 }
  0x3d   : > { %389 = vmatpush.bf16.msra.mxu1 %v527_v47 }
  0x40   : > { %377 = vmatpush.bf16.msra.mxu0 %v515_v52 }
  0x41   : > { %390 = vmatpush.bf16.msra.mxu1 %v519_v53 }
  0x44   : > { %378 = vmatpush.bf16.msra.mxu0 %v507_v58 }
  0x45   : > { %391 = vmatpush.bf16.msra.mxu1 %v511_v59 }
  0x48   : > { %379 = vmatpush.bf16.msra.mxu0 %v499_v0 }
  0x49   : > { %392 = vmatpush.bf16.msra.mxu1 %v503_v1 }
  0x4b   : > { %380 = vmatmul.bf16.vlgmr.msra.gmra.mxu0 %v269_v2 }
  0x4c   : > { %393 = vmatmul.bf16.vlgmr.msra.gmra.mxu1 %v269_v2 }
  0xa3   : > { %v290_v3 = vpop.permute.xlu0 %289 }
  0xc8   : > { %v381_v4 = vpop.f32.mrf.mxu0 }
  0xc9   : > { %v382_v5 = vadd.f32 %v381_v4, %v290_v3  ;;  %v394_v6 = vpop.f32.mrf.mxu1 }
  0xca   : > { %v395_v7 = vadd.f32 %v394_v6, %v290_v3 }
  0xcb   : > { %v402_v8 = vmul.f32 1.442695, %v382_v5  ;;  %v398_v20 = vmax.f32 %v382_v5, 0.0 }
  0xcc   : > { %v404_v9 = vmul.f32 1.442695, %v395_v7  ;;  %v399_v17 = vmax.f32 %v395_v7, 0.0 }
  0xcd   : > { %605 = vpow2.f32 %v402_v8  ;;  %v400_v25 = vmul.f32 1.050701, %v398_v20 }
  0xce   : > { %607 = vpow2.f32 %v404_v9  ;;  %v401_v23 = vmul.f32 1.050701, %v399_v17 }
  0xd0   : > { %v383_v10 = vpop.f32.mrf.mxu0 }
  0xd1   : > { %v396_v11 = vpop.f32.mrf.mxu1 }
  0xd3   : > { %v606_v12 = vpop.eup %605 }
  0xd4   : > { %v608_v13 = vpop.eup %607  ;;  %v406_v14 = vsub.f32 1.0, %v606_v12 }
  0xd5   : > { %v407_v15 = vsub.f32 1.0, %v608_v13 }
  0xd6   : > { %v408_v16 = vmax.f32 %v406_v14, 0.0 }
  0xd7   : > { %v409_v18 = vmax.f32 %v407_v15, 0.0 }
  0xd8   : > { %v410_v19 = vsub.f32 0.0, %v408_v16 }
  0xd9   : > { %v411_v21 = vsub.f32 0.0, %v409_v18 }
  0xda   : > { %v412_v22 = vmul.f32 1.7580993, %v410_v19 }
  0xdb   : > { %v413_v24 = vmul.f32 1.7580993, %v411_v21 }
  0xdc   : > { %v414_v27 = vadd.f32 %v412_v22, %v400_v25 }
  0xdd   : > { %v415_v26 = vadd.f32 %v413_v24, %v401_v23 }
  0xdf   : > { %v418_v28 = vrot.slane %v415_v26, 4 }
  0xe1   : > { %v420_v29 = vsel %vm419_vm0, %v414_v27, %v418_v28 }
  0xe2   : > { %422 = vst [vmem:[%s267_s11] sm:$0xff] %v420_v29 }
  0xe3 PF: > { %p10_p9 = scmp.ge.s32.totalorder %s671_s16, 4   ;;  %s768_s12 = smov %s627_s13 }
  0xe4   : > { %s769_s13 = smov %s680_s19  ;;  %s770_s14 = smov %s671_s16 }
  0xe5   :  { %12 = sbr.rel (!%p10_p9) target bundleno = 2 (0x2), region = 105 }

// kernel: ipn_forward.19
= control target key start
LH: loop header
LB: loop body
LE: loop exit
PB: predicated region body
PF: predicated region fallthrough
CT: control target
= control target key end

     0   :  { %v287_v1 = vmov 0   ;;  %s392_s1 = inlined_call_operand.vmem [shape: bf16[128,128], index: 1, kind: input, shape index: {}]   ;;  %s393_s2 = inlined_call_operand.vmem [shape: f32[64,1], index: 2, kind: input, shape index: {}]   ;;  %s394_s0 = inlined_call_operand.vmem [shape: bf16[64,128], index: 0, kind: input, shape index: {}]   ;;  %s395_s3 = inlined_call_operand.vmem [shape: f32[64,128], index: 3, kind: output, shape index: {}]  }
   0x1   :  { %v258_v0 = vld [vmem:[%s392_s1 + $0x38] sm:$0xff]  ;;  %285 = vset.pattern.permute.xlu1 %v287_v1  ;;  %284 = vset.pattern.permute.xlu0 %v287_v1  ;;  %v257_v2 = vld [vmem:[%s392_s1 + $0x30] sm:$0xff]  ;;  %v38_v4 = vld [vmem:[%s393_s2] sm:$0xff] }
   0x2   :  { %286 = vset.pattern.permute.xlu2 %v287_v1  ;;  %158 = vmatpush.bf16.msra.mxu0 %v258_v0  ;;  %v40_v3 = vld [vmem:[%s393_s2 + $0x10] sm:$0xff]  ;;  %v256_v5 = vld [vmem:[%s392_s1 + $0x28] sm:$0xff]  ;;  %v42_v6 = vld [vmem:[%s393_s2 + $0x20] sm:$0xff] }
   0x3   :  { %259 = vmatpush.bf16.msra.mxu1 %v258_v0  ;;  %260 = vmatpush.bf16.msra.mxu2 %v258_v0  ;;  %v41_v7 = vld [vmem:[%s393_s2 + $0x18] sm:$0xff]  ;;  %v39_v8 = vld [vmem:[%s393_s2 + $0x8] sm:$0xff]  ;;  %v255_v9 = vld [vmem:[%s392_s1 + $0x20] sm:$0xff] }
   0x4   :  { %261 = vmatpush.bf16.msra.mxu3 %v258_v0  ;;  %58 = vperm.xlu1 %285, %v40_v3   ;;  %v43_v10 = vld [vmem:[%s393_s2 + $0x28] sm:$0xff]  ;;  %v254_v11 = vld [vmem:[%s392_s1 + $0x18] sm:$0xff]  ;;  %v44_v13 = vld [vmem:[%s393_s2 + $0x30] sm:$0xff] }
   0x5   :  { %48 = vperm.xlu0 %284, %v38_v4   ;;  %68 = vperm.xlu2 %286, %v42_v6   ;;  %v45_v12 = vld [vmem:[%s393_s2 + $0x38] sm:$0xff]  ;;  %v253_v14 = vld [vmem:[%s392_s1 + $0x10] sm:$0xff]  ;;  %v252_v15 = vld [vmem:[%s392_s1 + $0x8] sm:$0xff] }
   0x6   :  { %159 = vmatpush.bf16.msra.mxu0 %v257_v2  ;;  %v251_v16 = vld [vmem:[%s392_s1] sm:$0xff]  ;;  %v248_v18 = vld [vmem:[%s394_s0 + $0x8] sm:$0xff]  ;;  %v249_v19 = vld [vmem:[%s394_s0 + $0x10] sm:$0xff] }
   0x7   :  { %262 = vmatpush.bf16.msra.mxu1 %v257_v2  ;;  %263 = vmatpush.bf16.msra.mxu2 %v257_v2  ;;  %v247_v17 = vld [vmem:[%s394_s0] sm:$0xff]  ;;  %v250_v20 = vld [vmem:[%s394_s0 + $0x18] sm:$0xff] }
   0x8   :  { %264 = vmatpush.bf16.msra.mxu3 %v257_v2 }
   0xa   :  { %160 = vmatpush.bf16.msra.mxu0 %v256_v5 }
   0xb   :  { %265 = vmatpush.bf16.msra.mxu1 %v256_v5  ;;  %266 = vmatpush.bf16.msra.mxu2 %v256_v5 }
   0xc   :  { %267 = vmatpush.bf16.msra.mxu3 %v256_v5  ;;  %63 = vperm.xlu1 %285, %v41_v7  }
   0xd   :  { %53 = vperm.xlu0 %284, %v39_v8   ;;  %73 = vperm.xlu2 %286, %v43_v10  }
   0xe   :  { %161 = vmatpush.bf16.msra.mxu0 %v255_v9 }
   0xf   :  { %268 = vmatpush.bf16.msra.mxu1 %v255_v9  ;;  %269 = vmatpush.bf16.msra.mxu2 %v255_v9 }
  0x10   :  { %270 = vmatpush.bf16.msra.mxu3 %v255_v9 }
  0x12   :  { %162 = vmatpush.bf16.msra.mxu0 %v254_v11 }
  0x13   :  { %271 = vmatpush.bf16.msra.mxu1 %v254_v11  ;;  %272 = vmatpush.bf16.msra.mxu2 %v254_v11 }
  0x14   :  { %273 = vmatpush.bf16.msra.mxu3 %v254_v11  ;;  %83 = vperm.xlu1 %285, %v45_v12  }
  0x15   :  { %78 = vperm.xlu0 %284, %v44_v13  }
  0x16   :  { %163 = vmatpush.bf16.msra.mxu0 %v253_v14 }
  0x17   :  { %274 = vmatpush.bf16.msra.mxu1 %v253_v14  ;;  %275 = vmatpush.bf16.msra.mxu2 %v253_v14 }
  0x18   :  { %276 = vmatpush.bf16.msra.mxu3 %v253_v14 }
  0x1a   :  { %164 = vmatpush.bf16.msra.mxu0 %v252_v15 }
  0x1b   :  { %277 = vmatpush.bf16.msra.mxu1 %v252_v15  ;;  %278 = vmatpush.bf16.msra.mxu2 %v252_v15 }
  0x1c   :  { %279 = vmatpush.bf16.msra.mxu3 %v252_v15 }
  0x1e   :  { %165 = vmatpush.bf16.msra.mxu0 %v251_v16 }
  0x1f   :  { %280 = vmatpush.bf16.msra.mxu1 %v251_v16  ;;  %281 = vmatpush.bf16.msra.mxu2 %v251_v16 }
  0x20   :  { %282 = vmatpush.bf16.msra.mxu3 %v251_v16 }
  0x21   :  { %166 = vmatmul.bf16.vlgmr.msra.gmra.mxu0 %v247_v17 }
  0x22   :  { %171 = vmatmul.bf16.vlgmr.msra.gmra.mxu1 %v248_v18  ;;  %176 = vmatmul.bf16.vlgmr.msra.gmra.mxu2 %v249_v19 }
  0x23   :  { %181 = vmatmul.bf16.vlgmr.msra.gmra.mxu3 %v250_v20 }
  0x5f   :  { %v69_v29 = vpop.permute.xlu2 %68 }
  0x67   :  { %v74_v40 = vpop.permute.xlu2 %73 }
  0x76   :  { %v59_v22 = vpop.permute.xlu1 %58 }
  0x77   :  { %v49_v21 = vpop.permute.xlu0 %48 }
  0x7e   :  { %v64_v28 = vpop.permute.xlu1 %63 }
  0x7f   :  { %v54_v23 = vpop.permute.xlu0 %53 }
  0x86   :  { %v84_v39 = vpop.permute.xlu1 %83 }
  0x87   :  { %v79_v30 = vpop.permute.xlu0 %78 }
  0x9e   :  { %v167_v24 = vpop.f32.mrf.mxu0 }
  0x9f   :  { %v172_v25 = vpop.f32.mrf.mxu1  ;;  %v168_v26 = vadd.f32 %v167_v24, %v49_v21 }
  0xa0   :  { %v173_v27 = vadd.f32 %v172_v25, %v59_v22 }
  0xa1   :  { %187 = vst [vmem:[%s395_s3] sm:$0xff] %v168_v26 }
  0xa2   :  { %189 = vst [vmem:[%s395_s3 + $0x10] sm:$0xff] %v173_v27 }
  0xa5   :  { %v177_v31 = vpop.f32.mrf.mxu2 }
  0xa6   :  { %v182_v32 = vpop.f32.mrf.mxu3  ;;  %v178_v33 = vadd.f32 %v177_v31, %v69_v29  ;;  %v169_v35 = vpop.f32.mrf.mxu0 }
  0xa7   :  { %v183_v34 = vadd.f32 %v182_v32, %v79_v30  ;;  %v174_v36 = vpop.f32.mrf.mxu1  ;;  %v170_v37 = vadd.f32 %v169_v35, %v54_v23 }
  0xa8   :  { %v175_v38 = vadd.f32 %v174_v36, %v64_v28  ;;  %191 = vst [vmem:[%s395_s3 + $0x20] sm:$0xff] %v178_v33 }
  0xa9   :  { %193 = vst [vmem:[%s395_s3 + $0x30] sm:$0xff] %v183_v34 }
  0xaa   :  { %188 = vst [vmem:[%s395_s3 + $0x8] sm:$0xff] %v170_v37 }
  0xab   :  { %190 = vst [vmem:[%s395_s3 + $0x18] sm:$0xff] %v175_v38 }
  0xad   :  { %v179_v41 = vpop.f32.mrf.mxu2 }
  0xae   :  { %v184_v42 = vpop.f32.mrf.mxu3  ;;  %v180_v43 = vadd.f32 %v179_v41, %v74_v40 }
  0xaf   :  { %v185_v44 = vadd.f32 %v184_v42, %v84_v39 }
  0xb0   :  { %192 = vst [vmem:[%s395_s3 + $0x28] sm:$0xff] %v180_v43 }
  0xb1   :  { %194 = vst [vmem:[%s395_s3 + $0x38] sm:$0xff] %v185_v44 }

</bundles_post_ra>
